<compile_context>
chip_gen: v5e
topology: v5e:2x2
jax: 0.10.0
libtpu: 0.0.40
codegen_flags: <defaults>
</compile_context>

<pallas_src>
import functools

import jax
import jax.numpy as jnp
from jax.experimental import pallas as pl
from jax.experimental.pallas import tpu as pltpu

# ---------------- synthetic model config (small, lane-friendly shapes) -------
PATCH = 16          # self._patch_size
C_IN = 3            # image channels
HIDDEN = 128        # embed_dim (multiple of 128 -> lane-dense activations)
N_HEADS = 2
HEAD_DIM = HIDDEN // N_HEADS
MLP_DIM = 256
N_LAYERS = 2
LN_EPS = 1e-6

PARAMS_PER_LAYER = 12

# TODO(synk): at real SigLIP2 shapes (HIDDEN~1152, S up to 1024) the
# full-array weight blocks must become row/K-tiled BlockSpecs (half-size tiles
# on v7x's 64 MiB VMEM) with an explicit vmem_limit_bytes and pipelined depth.


# ---------------- shared math helpers (used by kernel AND jnp reference) -----
def _mm(a, b):
    """a @ b on the MXU: bf16 operands (weights already bf16), f32 accumulation."""
    return jax.lax.dot_general(
        a.astype(jnp.bfloat16), b.astype(jnp.bfloat16),
        dimension_numbers=(((1,), (0,)), ((), ())),
        preferred_element_type=jnp.float32)


def _mm_t(a, b):
    """a @ b.T without materializing a transpose (contract last/last)."""
    return jax.lax.dot_general(
        a.astype(jnp.bfloat16), b.astype(jnp.bfloat16),
        dimension_numbers=(((1,), (1,)), ((), ())),
        preferred_element_type=jnp.float32)


def _ln(x, g, b):
    mu = jnp.mean(x, axis=-1, keepdims=True)
    var = jnp.mean(jnp.square(x - mu), axis=-1, keepdims=True)
    return (x - mu) * jax.lax.rsqrt(var + LN_EPS) * g + b


def _softmax_pl(s):
    # in-kernel softmax: exp + approximate reciprocal both on the EUP
    s = s - jnp.max(s, axis=-1, keepdims=True)
    p = jnp.exp(s)
    return p * pl.reciprocal(jnp.sum(p, axis=-1, keepdims=True), approx=True)


def _softmax_ref(s):
    return jax.nn.softmax(s, axis=-1)


def _layer_one(x, ln1_g, ln1_b, wqkv, bqkv, wo, bo,
               ln2_g, ln2_b, w1, b1, w2, b2, softmax_fn):
    """One transformer encoder layer on a single image's (S, D) activation."""
    D, dh = HIDDEN, HEAD_DIM
    scale = dh ** -0.5

    hn = _ln(x, ln1_g, ln1_b)
    qkv = _mm(hn, wqkv) + bqkv                    # (S, 3D), lane-dense N = 3*128

    # concat(heads) @ Wo == sum_h head_h @ Wo[h-block] -> no concats needed.
    attn = bo                                     # (1, D) broadcasts over rows
    for hh in range(N_HEADS):                     # static unroll (2 iterations)
        c = hh * dh
        q = qkv[:, c:c + dh]
        k = qkv[:, D + c:D + c + dh]
        v = qkv[:, 2 * D + c:2 * D + c + dh]
        s = _mm_t(q, k) * scale                   # (S, S) -- no explicit k.T
        o_h = _mm(softmax_fn(s), v)               # (S, dh)
        attn = attn + _mm(o_h, wo[c:c + dh, :])
    h = x + attn                                  # residual fused

    hn2 = _ln(h, ln2_g, ln2_b)
    m = jax.nn.gelu(_mm(hn2, w1) + b1, approximate=True)   # gelu_pytorch_tanh
    return h + _mm(m, w2) + b2                    # residual fused


def _head_one(h, post_g, post_b, probe, wq, bq, wkv, bkv,
              wo, bo, lg, lb, w1, b1, w2, b2, softmax_fn):
    """Post-LN + attention-pooling head for a single image."""
    D, dh = HIDDEN, HEAD_DIM
    scale = dh ** -0.5

    feat = _ln(h, post_g, post_b)                 # (S, D): last_hidden_state rows
    q = _mm(probe, wq) + bq                       # (1, D)
    kv = _mm(feat, wkv) + bkv                     # (S, 2D), lane-dense N = 2*128

    pooled = bo                                   # (1, D)
    for hh in range(N_HEADS):
        c = hh * dh
        s = _mm_t(q[:, c:c + dh], kv[:, c:c + dh]) * scale    # (1, S)
        o_h = _mm(softmax_fn(s), kv[:, D + c:D + c + dh])     # (1, dh)
        pooled = pooled + _mm(o_h, wo[c:c + dh, :])
    res = pooled
    p = _ln(pooled, lg, lb)
    m = jax.nn.gelu(_mm(p, w1) + b1, approximate=True)
    return feat, res + _mm(m, w2) + b2            # (S, D), (1, D)


def _forward_one(pv, plist, softmax_fn):
    """Full vision-model forward for one image's (S, patch_dim) patch slab."""
    patch_w, patch_b, pos = plist[0], plist[1], plist[2]
    # patch-embed matmul + bias + pos-embed (plain broadcast add, no concat)
    h = _mm(pv, patch_w) + patch_b + pos          # (S, D)
    off = 3
    for _ in range(N_LAYERS):
        h = _layer_one(h, *plist[off:off + PARAMS_PER_LAYER], softmax_fn=softmax_fn)
        off += PARAMS_PER_LAYER
    return _head_one(h, *plist[off:], softmax_fn=softmax_fn)


# ---------------- the single fused Pallas kernel ------------------------------
def _siglip2_kernel(*refs):
    # refs = [pv_ref, *param_refs, feat_ref, sum_ref]; grid step = one image.
    pv_ref = refs[0]
    feat_ref, sum_ref = refs[-2], refs[-1]
    plist = [r[...] for r in refs[1:-2]]          # tiny params, load whole
    # attention_mask is all-ones (registered `mask` buffer) -> no masking term.
    feat, summary = _forward_one(pv_ref[...], plist, _softmax_pl)
    feat_ref[...] = feat                          # (S, 128): lane-dense store
    sum_ref[...] = summary.reshape(sum_ref.shape) # (1, 1, 128)


# ---------------- parameter init (deterministic, synthetic) -------------------
def _dense(key, fan_in, fan_out):
    kw, kb = jax.random.split(key)
    w = (jax.random.normal(kw, (fan_in, fan_out), jnp.float32) * 0.02
         ).astype(jnp.bfloat16)                   # bf16-resident weights
    b = jax.random.normal(kb, (1, fan_out), jnp.float32) * 0.02
    return w, b


def init_params(key, seq_len):
    keys = jax.random.split(key, 4 + N_LAYERS)
    p = {}
    patch_dim = PATCH * PATCH * C_IN
    p["patch_w"], p["patch_b"] = _dense(keys[0], patch_dim, HIDDEN)
    # TODO(synk): real SigLIP2-NaFlex bilinearly resizes a base pos-embed grid
    # using `spatial_shapes`; here the grid is created directly at (out_h*out_w).
    p["pos_emb"] = jax.random.normal(keys[1], (seq_len, HIDDEN), jnp.float32) * 0.02
    p["layers"] = []
    for li in range(N_LAYERS):
        lk = jax.random.split(keys[2 + li], 4)
        lp = {
            "ln1_g": jnp.ones((1, HIDDEN), jnp.float32),
            "ln1_b": jnp.zeros((1, HIDDEN), jnp.float32),
            "ln2_g": jnp.ones((1, HIDDEN), jnp.float32),
            "ln2_b": jnp.zeros((1, HIDDEN), jnp.float32),
        }
        lp["wqkv"], lp["bqkv"] = _dense(lk[0], HIDDEN, 3 * HIDDEN)   # fused Q|K|V
        lp["wo"], lp["bo"] = _dense(lk[1], HIDDEN, HIDDEN)
        lp["w1"], lp["b1"] = _dense(lk[2], HIDDEN, MLP_DIM)
        lp["w2"], lp["b2"] = _dense(lk[3], MLP_DIM, HIDDEN)
        p["layers"].append(lp)
    k = 2 + N_LAYERS
    p["post_ln_g"] = jnp.ones((1, HIDDEN), jnp.float32)
    p["post_ln_b"] = jnp.zeros((1, HIDDEN), jnp.float32)
    # attention-pooling head (pooler_output)
    p["probe"] = jax.random.normal(keys[k], (1, HIDDEN), jnp.float32) * 0.02
    hk = jax.random.split(keys[k + 1], 5)
    p["hq_w"], p["hq_b"] = _dense(hk[0], HIDDEN, HIDDEN)
    p["hkv_w"], p["hkv_b"] = _dense(hk[1], HIDDEN, 2 * HIDDEN)       # fused K|V
    p["ho_w"], p["ho_b"] = _dense(hk[2], HIDDEN, HIDDEN)
    p["h_ln_g"] = jnp.ones((1, HIDDEN), jnp.float32)
    p["h_ln_b"] = jnp.zeros((1, HIDDEN), jnp.float32)
    p["h_w1"], p["h_b1"] = _dense(hk[3], HIDDEN, MLP_DIM)
    p["h_w2"], p["h_b2"] = _dense(hk[4], MLP_DIM, HIDDEN)
    return p


def _flatten_params(params):
    flat = [params["patch_w"], params["patch_b"], params["pos_emb"]]
    for lp in params["layers"]:
        flat += [lp["ln1_g"], lp["ln1_b"], lp["wqkv"], lp["bqkv"], lp["wo"], lp["bo"],
                 lp["ln2_g"], lp["ln2_b"], lp["w1"], lp["b1"], lp["w2"], lp["b2"]]
    flat += [params["post_ln_g"], params["post_ln_b"], params["probe"],
             params["hq_w"], params["hq_b"], params["hkv_w"], params["hkv_b"],
             params["ho_w"], params["ho_b"], params["h_ln_g"], params["h_ln_b"],
             params["h_w1"], params["h_b1"], params["h_w2"], params["h_b2"]]
    return flat


# ---------------- forward (SigLIP2Wrapper.forward semantics) ------------------
def _patchify(x, oh, ow):
    # rearrange 'b c (h p1) (w p2) -> b (h w) (p1 p2 c)'   [pure reshape/transpose glue]
    B, C = x.shape[0], x.shape[1]
    return (x.reshape(B, C, oh, PATCH, ow, PATCH)
             .transpose(0, 2, 4, 3, 5, 1)
             .reshape(B * oh * ow, PATCH * PATCH * C))


@functools.partial(jax.jit, static_argnames=("return_summary",))
def siglip2_forward(params, x, *, return_summary=False):
    B, C, H, W = x.shape
    oh, ow = H // PATCH, W // PATCH
    S = oh * ow
    pv = _patchify(x, oh, ow)                     # (B*S, patch_dim)
    plist = _flatten_params(params)

    # batch grid: one image per step; "parallel" -> megacore sharding on v7x.
    pv_spec = pl.BlockSpec((S, pv.shape[1]), lambda b: (b, 0))
    # weights: full-array resident blocks, constant index => DMA'd once,
    # never re-fetched across grid steps.
    p_specs = [pl.BlockSpec(p.shape, lambda b: (0, 0)) for p in plist]

    feat, summary = pl.pallas_call(
        _siglip2_kernel,
        grid=(B,),
        in_specs=[pv_spec] + p_specs,
        out_specs=(pl.BlockSpec((S, HIDDEN), lambda b: (b, 0)),
                   pl.BlockSpec((1, 1, HIDDEN), lambda b: (b, 0, 0))),
        out_shape=(jax.ShapeDtypeStruct((B * S, HIDDEN), jnp.float32),
                   jax.ShapeDtypeStruct((B, 1, HIDDEN), jnp.float32)),
        compiler_params=pltpu.CompilerParams(
            dimension_semantics=("parallel",)),
    )(pv, *plist)

    # rearrange 'b (h w) c -> b c h w'   [glue]
    features = feat.reshape(B, S, HIDDEN).transpose(0, 2, 1).reshape(B, HIDDEN, oh, ow)
    summary = summary.reshape(B, HIDDEN)
    if return_summary:
        return summary, features
    return features


# ---------------- pure-JAX reference (same math, for correctness check) -------
def siglip2_forward_ref(params, x):
    B, C, H, W = x.shape
    oh, ow = H // PATCH, W // PATCH
    S = oh * ow
    pv = _patchify(x, oh, ow)
    plist = _flatten_params(params)
    feats, sums = [], []
    for b in range(B):
        f, s = _forward_one(pv[b * S:(b + 1) * S], plist, _softmax_ref)
        feats.append(f)
        sums.append(s)
    feat = jnp.concatenate(feats, axis=0)
    summary = jnp.concatenate(sums, axis=0)
    features = feat.reshape(B, S, HIDDEN).transpose(0, 2, 1).reshape(B, HIDDEN, oh, ow)
    return summary, features


# ---------------- main ---------------------------------------------------------
if __name__ == "__main__":
    key = jax.random.PRNGKey(0)
    kx, kp = jax.random.split(key)

    B, H, W = 2, 64, 64                       # -> out_h = out_w = 4, seq = 16
    x = jax.random.normal(kx, (B, C_IN, H, W), jnp.float32)
    params = init_params(kp, seq_len=(H // PATCH) * (W // PATCH))

    summary, features = siglip2_forward(params, x, return_summary=True)
    summary = jax.block_until_ready(summary)
    features = jax.block_until_ready(features)

    # reference check against a pure-JAX implementation of the same math
    ref_summary, ref_features = siglip2_forward_ref(params, x)
    assert features.shape == (B, HIDDEN, H // PATCH, W // PATCH)
    assert summary.shape == (B, HIDDEN)
    assert jnp.allclose(features, ref_features, atol=2e-3, rtol=2e-3), \
        float(jnp.max(jnp.abs(features - ref_features)))
    assert jnp.allclose(summary, ref_summary, atol=2e-3, rtol=2e-3), \
        float(jnp.max(jnp.abs(summary - ref_summary)))

    print("KERNEL_OK")
</pallas_src>

<mosaic_0001>
module attributes {stable_mosaic.version = 11 : i64} {
  func.func @_siglip2_kernel(%arg0: i32, %arg1: memref<16x768xf32, #tpu.memory_space<vmem>>, %arg2: memref<768x128xbf16, #tpu.memory_space<vmem>>, %arg3: memref<1x128xf32, #tpu.memory_space<vmem>>, %arg4: memref<16x128xf32, #tpu.memory_space<vmem>>, %arg5: memref<1x128xf32, #tpu.memory_space<vmem>>, %arg6: memref<1x128xf32, #tpu.memory_space<vmem>>, %arg7: memref<128x384xbf16, #tpu.memory_space<vmem>>, %arg8: memref<1x384xf32, #tpu.memory_space<vmem>>, %arg9: memref<128x128xbf16, #tpu.memory_space<vmem>>, %arg10: memref<1x128xf32, #tpu.memory_space<vmem>>, %arg11: memref<1x128xf32, #tpu.memory_space<vmem>>, %arg12: memref<1x128xf32, #tpu.memory_space<vmem>>, %arg13: memref<128x256xbf16, #tpu.memory_space<vmem>>, %arg14: memref<1x256xf32, #tpu.memory_space<vmem>>, %arg15: memref<256x128xbf16, #tpu.memory_space<vmem>>, %arg16: memref<1x128xf32, #tpu.memory_space<vmem>>, %arg17: memref<1x128xf32, #tpu.memory_space<vmem>>, %arg18: memref<1x128xf32, #tpu.memory_space<vmem>>, %arg19: memref<128x384xbf16, #tpu.memory_space<vmem>>, %arg20: memref<1x384xf32, #tpu.memory_space<vmem>>, %arg21: memref<128x128xbf16, #tpu.memory_space<vmem>>, %arg22: memref<1x128xf32, #tpu.memory_space<vmem>>, %arg23: memref<1x128xf32, #tpu.memory_space<vmem>>, %arg24: memref<1x128xf32, #tpu.memory_space<vmem>>, %arg25: memref<128x256xbf16, #tpu.memory_space<vmem>>, %arg26: memref<1x256xf32, #tpu.memory_space<vmem>>, %arg27: memref<256x128xbf16, #tpu.memory_space<vmem>>, %arg28: memref<1x128xf32, #tpu.memory_space<vmem>>, %arg29: memref<1x128xf32, #tpu.memory_space<vmem>>, %arg30: memref<1x128xf32, #tpu.memory_space<vmem>>, %arg31: memref<1x128xf32, #tpu.memory_space<vmem>>, %arg32: memref<128x128xbf16, #tpu.memory_space<vmem>>, %arg33: memref<1x128xf32, #tpu.memory_space<vmem>>, %arg34: memref<128x256xbf16, #tpu.memory_space<vmem>>, %arg35: memref<1x256xf32, #tpu.memory_space<vmem>>, %arg36: memref<128x128xbf16, #tpu.memory_space<vmem>>, %arg37: memref<1x128xf32, #tpu.memory_space<vmem>>, %arg38: memref<1x128xf32, #tpu.memory_space<vmem>>, %arg39: memref<1x128xf32, #tpu.memory_space<vmem>>, %arg40: memref<128x256xbf16, #tpu.memory_space<vmem>>, %arg41: memref<1x256xf32, #tpu.memory_space<vmem>>, %arg42: memref<256x128xbf16, #tpu.memory_space<vmem>>, %arg43: memref<1x128xf32, #tpu.memory_space<vmem>>, %arg44: memref<16x128xf32, #tpu.memory_space<vmem>>, %arg45: memref<1x1x128xf32, #tpu.memory_space<vmem>>) attributes {dimension_semantics = [#tpu.dimension_semantics<parallel>], iteration_bounds = array<i64: 2>, scalar_prefetch = 0 : i64, scratch_operands = 0 : i64, tpu.core_type = #tpu.core_type<tc>, window_params = [{transform_indices = @transform_0, window_bounds = array<i64: 16, 768>}, {pipeline_mode = #tpu.pipeline_mode<synchronous>, transform_indices = @transform_1, window_bounds = array<i64: 768, 128>}, {pipeline_mode = #tpu.pipeline_mode<synchronous>, transform_indices = @transform_2, window_bounds = array<i64: 1, 128>}, {pipeline_mode = #tpu.pipeline_mode<synchronous>, transform_indices = @transform_3, window_bounds = array<i64: 16, 128>}, {pipeline_mode = #tpu.pipeline_mode<synchronous>, transform_indices = @transform_4, window_bounds = array<i64: 1, 128>}, {pipeline_mode = #tpu.pipeline_mode<synchronous>, transform_indices = @transform_5, window_bounds = array<i64: 1, 128>}, {pipeline_mode = #tpu.pipeline_mode<synchronous>, transform_indices = @transform_6, window_bounds = array<i64: 128, 384>}, {pipeline_mode = #tpu.pipeline_mode<synchronous>, transform_indices = @transform_7, window_bounds = array<i64: 1, 384>}, {pipeline_mode = #tpu.pipeline_mode<synchronous>, transform_indices = @transform_8, window_bounds = array<i64: 128, 128>}, {pipeline_mode = #tpu.pipeline_mode<synchronous>, transform_indices = @transform_9, window_bounds = array<i64: 1, 128>}, {pipeline_mode = #tpu.pipeline_mode<synchronous>, transform_indices = @transform_10, window_bounds = array<i64: 1, 128>}, {pipeline_mode = #tpu.pipeline_mode<synchronous>, transform_indices = @transform_11, window_bounds = array<i64: 1, 128>}, {pipeline_mode = #tpu.pipeline_mode<synchronous>, transform_indices = @transform_12, window_bounds = array<i64: 128, 256>}, {pipeline_mode = #tpu.pipeline_mode<synchronous>, transform_indices = @transform_13, window_bounds = array<i64: 1, 256>}, {pipeline_mode = #tpu.pipeline_mode<synchronous>, transform_indices = @transform_14, window_bounds = array<i64: 256, 128>}, {pipeline_mode = #tpu.pipeline_mode<synchronous>, transform_indices = @transform_15, window_bounds = array<i64: 1, 128>}, {pipeline_mode = #tpu.pipeline_mode<synchronous>, transform_indices = @transform_16, window_bounds = array<i64: 1, 128>}, {pipeline_mode = #tpu.pipeline_mode<synchronous>, transform_indices = @transform_17, window_bounds = array<i64: 1, 128>}, {pipeline_mode = #tpu.pipeline_mode<synchronous>, transform_indices = @transform_18, window_bounds = array<i64: 128, 384>}, {pipeline_mode = #tpu.pipeline_mode<synchronous>, transform_indices = @transform_19, window_bounds = array<i64: 1, 384>}, {pipeline_mode = #tpu.pipeline_mode<synchronous>, transform_indices = @transform_20, window_bounds = array<i64: 128, 128>}, {pipeline_mode = #tpu.pipeline_mode<synchronous>, transform_indices = @transform_21, window_bounds = array<i64: 1, 128>}, {pipeline_mode = #tpu.pipeline_mode<synchronous>, transform_indices = @transform_22, window_bounds = array<i64: 1, 128>}, {pipeline_mode = #tpu.pipeline_mode<synchronous>, transform_indices = @transform_23, window_bounds = array<i64: 1, 128>}, {pipeline_mode = #tpu.pipeline_mode<synchronous>, transform_indices = @transform_24, window_bounds = array<i64: 128, 256>}, {pipeline_mode = #tpu.pipeline_mode<synchronous>, transform_indices = @transform_25, window_bounds = array<i64: 1, 256>}, {pipeline_mode = #tpu.pipeline_mode<synchronous>, transform_indices = @transform_26, window_bounds = array<i64: 256, 128>}, {pipeline_mode = #tpu.pipeline_mode<synchronous>, transform_indices = @transform_27, window_bounds = array<i64: 1, 128>}, {pipeline_mode = #tpu.pipeline_mode<synchronous>, transform_indices = @transform_28, window_bounds = array<i64: 1, 128>}, {pipeline_mode = #tpu.pipeline_mode<synchronous>, transform_indices = @transform_29, window_bounds = array<i64: 1, 128>}, {pipeline_mode = #tpu.pipeline_mode<synchronous>, transform_indices = @transform_30, window_bounds = array<i64: 1, 128>}, {pipeline_mode = #tpu.pipeline_mode<synchronous>, transform_indices = @transform_31, window_bounds = array<i64: 128, 128>}, {pipeline_mode = #tpu.pipeline_mode<synchronous>, transform_indices = @transform_32, window_bounds = array<i64: 1, 128>}, {pipeline_mode = #tpu.pipeline_mode<synchronous>, transform_indices = @transform_33, window_bounds = array<i64: 128, 256>}, {pipeline_mode = #tpu.pipeline_mode<synchronous>, transform_indices = @transform_34, window_bounds = array<i64: 1, 256>}, {pipeline_mode = #tpu.pipeline_mode<synchronous>, transform_indices = @transform_35, window_bounds = array<i64: 128, 128>}, {pipeline_mode = #tpu.pipeline_mode<synchronous>, transform_indices = @transform_36, window_bounds = array<i64: 1, 128>}, {pipeline_mode = #tpu.pipeline_mode<synchronous>, transform_indices = @transform_37, window_bounds = array<i64: 1, 128>}, {pipeline_mode = #tpu.pipeline_mode<synchronous>, transform_indices = @transform_38, window_bounds = array<i64: 1, 128>}, {pipeline_mode = #tpu.pipeline_mode<synchronous>, transform_indices = @transform_39, window_bounds = array<i64: 128, 256>}, {pipeline_mode = #tpu.pipeline_mode<synchronous>, transform_indices = @transform_40, window_bounds = array<i64: 1, 256>}, {pipeline_mode = #tpu.pipeline_mode<synchronous>, transform_indices = @transform_41, window_bounds = array<i64: 256, 128>}, {pipeline_mode = #tpu.pipeline_mode<synchronous>, transform_indices = @transform_42, window_bounds = array<i64: 1, 128>}, {transform_indices = @transform_43, window_bounds = array<i64: 16, 128>}, {transform_indices = @transform_44, window_bounds = array<i64: 1, 1, 128>}]} {
    %c0 = arith.constant 0 : index
    %c0_0 = arith.constant 0 : index
    %0 = vector.load %arg2[%c0, %c0_0] : memref<768x128xbf16, #tpu.memory_space<vmem>>, vector<768x128xbf16>
    %c0_1 = arith.constant 0 : index
    %c0_2 = arith.constant 0 : index
    %1 = vector.load %arg3[%c0_1, %c0_2] : memref<1x128xf32, #tpu.memory_space<vmem>>, vector<1x128xf32>
    %c0_3 = arith.constant 0 : index
    %c0_4 = arith.constant 0 : index
    %2 = vector.load %arg4[%c0_3, %c0_4] : memref<16x128xf32, #tpu.memory_space<vmem>>, vector<16x128xf32>
    %c0_5 = arith.constant 0 : index
    %c0_6 = arith.constant 0 : index
    %3 = vector.load %arg5[%c0_5, %c0_6] : memref<1x128xf32, #tpu.memory_space<vmem>>, vector<1x128xf32>
    %c0_7 = arith.constant 0 : index
    %c0_8 = arith.constant 0 : index
    %4 = vector.load %arg6[%c0_7, %c0_8] : memref<1x128xf32, #tpu.memory_space<vmem>>, vector<1x128xf32>
    %c0_9 = arith.constant 0 : index
    %c0_10 = arith.constant 0 : index
    %5 = vector.load %arg7[%c0_9, %c0_10] : memref<128x384xbf16, #tpu.memory_space<vmem>>, vector<128x384xbf16>
    %c0_11 = arith.constant 0 : index
    %c0_12 = arith.constant 0 : index
    %6 = vector.load %arg8[%c0_11, %c0_12] : memref<1x384xf32, #tpu.memory_space<vmem>>, vector<1x384xf32>
    %c0_13 = arith.constant 0 : index
    %c0_14 = arith.constant 0 : index
    %7 = vector.load %arg9[%c0_13, %c0_14] : memref<128x128xbf16, #tpu.memory_space<vmem>>, vector<128x128xbf16>
    %c0_15 = arith.constant 0 : index
    %c0_16 = arith.constant 0 : index
    %8 = vector.load %arg10[%c0_15, %c0_16] : memref<1x128xf32, #tpu.memory_space<vmem>>, vector<1x128xf32>
    %c0_17 = arith.constant 0 : index
    %c0_18 = arith.constant 0 : index
    %9 = vector.load %arg11[%c0_17, %c0_18] : memref<1x128xf32, #tpu.memory_space<vmem>>, vector<1x128xf32>
    %c0_19 = arith.constant 0 : index
    %c0_20 = arith.constant 0 : index
    %10 = vector.load %arg12[%c0_19, %c0_20] : memref<1x128xf32, #tpu.memory_space<vmem>>, vector<1x128xf32>
    %c0_21 = arith.constant 0 : index
    %c0_22 = arith.constant 0 : index
    %11 = vector.load %arg13[%c0_21, %c0_22] : memref<128x256xbf16, #tpu.memory_space<vmem>>, vector<128x256xbf16>
    %c0_23 = arith.constant 0 : index
    %c0_24 = arith.constant 0 : index
    %12 = vector.load %arg14[%c0_23, %c0_24] : memref<1x256xf32, #tpu.memory_space<vmem>>, vector<1x256xf32>
    %c0_25 = arith.constant 0 : index
    %c0_26 = arith.constant 0 : index
    %13 = vector.load %arg15[%c0_25, %c0_26] : memref<256x128xbf16, #tpu.memory_space<vmem>>, vector<256x128xbf16>
    %c0_27 = arith.constant 0 : index
    %c0_28 = arith.constant 0 : index
    %14 = vector.load %arg16[%c0_27, %c0_28] : memref<1x128xf32, #tpu.memory_space<vmem>>, vector<1x128xf32>
    %c0_29 = arith.constant 0 : index
    %c0_30 = arith.constant 0 : index
    %15 = vector.load %arg17[%c0_29, %c0_30] : memref<1x128xf32, #tpu.memory_space<vmem>>, vector<1x128xf32>
    %c0_31 = arith.constant 0 : index
    %c0_32 = arith.constant 0 : index
    %16 = vector.load %arg18[%c0_31, %c0_32] : memref<1x128xf32, #tpu.memory_space<vmem>>, vector<1x128xf32>
    %c0_33 = arith.constant 0 : index
    %c0_34 = arith.constant 0 : index
    %17 = vector.load %arg19[%c0_33, %c0_34] : memref<128x384xbf16, #tpu.memory_space<vmem>>, vector<128x384xbf16>
    %c0_35 = arith.constant 0 : index
    %c0_36 = arith.constant 0 : index
    %18 = vector.load %arg20[%c0_35, %c0_36] : memref<1x384xf32, #tpu.memory_space<vmem>>, vector<1x384xf32>
    %c0_37 = arith.constant 0 : index
    %c0_38 = arith.constant 0 : index
    %19 = vector.load %arg21[%c0_37, %c0_38] : memref<128x128xbf16, #tpu.memory_space<vmem>>, vector<128x128xbf16>
    %c0_39 = arith.constant 0 : index
    %c0_40 = arith.constant 0 : index
    %20 = vector.load %arg22[%c0_39, %c0_40] : memref<1x128xf32, #tpu.memory_space<vmem>>, vector<1x128xf32>
    %c0_41 = arith.constant 0 : index
    %c0_42 = arith.constant 0 : index
    %21 = vector.load %arg23[%c0_41, %c0_42] : memref<1x128xf32, #tpu.memory_space<vmem>>, vector<1x128xf32>
    %c0_43 = arith.constant 0 : index
    %c0_44 = arith.constant 0 : index
    %22 = vector.load %arg24[%c0_43, %c0_44] : memref<1x128xf32, #tpu.memory_space<vmem>>, vector<1x128xf32>
    %c0_45 = arith.constant 0 : index
    %c0_46 = arith.constant 0 : index
    %23 = vector.load %arg25[%c0_45, %c0_46] : memref<128x256xbf16, #tpu.memory_space<vmem>>, vector<128x256xbf16>
    %c0_47 = arith.constant 0 : index
    %c0_48 = arith.constant 0 : index
    %24 = vector.load %arg26[%c0_47, %c0_48] : memref<1x256xf32, #tpu.memory_space<vmem>>, vector<1x256xf32>
    %c0_49 = arith.constant 0 : index
    %c0_50 = arith.constant 0 : index
    %25 = vector.load %arg27[%c0_49, %c0_50] : memref<256x128xbf16, #tpu.memory_space<vmem>>, vector<256x128xbf16>
    %c0_51 = arith.constant 0 : index
    %c0_52 = arith.constant 0 : index
    %26 = vector.load %arg28[%c0_51, %c0_52] : memref<1x128xf32, #tpu.memory_space<vmem>>, vector<1x128xf32>
    %c0_53 = arith.constant 0 : index
    %c0_54 = arith.constant 0 : index
    %27 = vector.load %arg29[%c0_53, %c0_54] : memref<1x128xf32, #tpu.memory_space<vmem>>, vector<1x128xf32>
    %c0_55 = arith.constant 0 : index
    %c0_56 = arith.constant 0 : index
    %28 = vector.load %arg30[%c0_55, %c0_56] : memref<1x128xf32, #tpu.memory_space<vmem>>, vector<1x128xf32>
    %c0_57 = arith.constant 0 : index
    %c0_58 = arith.constant 0 : index
    %29 = vector.load %arg31[%c0_57, %c0_58] : memref<1x128xf32, #tpu.memory_space<vmem>>, vector<1x128xf32>
    %c0_59 = arith.constant 0 : index
    %c0_60 = arith.constant 0 : index
    %30 = vector.load %arg32[%c0_59, %c0_60] : memref<128x128xbf16, #tpu.memory_space<vmem>>, vector<128x128xbf16>
    %c0_61 = arith.constant 0 : index
    %c0_62 = arith.constant 0 : index
    %31 = vector.load %arg33[%c0_61, %c0_62] : memref<1x128xf32, #tpu.memory_space<vmem>>, vector<1x128xf32>
    %c0_63 = arith.constant 0 : index
    %c0_64 = arith.constant 0 : index
    %32 = vector.load %arg34[%c0_63, %c0_64] : memref<128x256xbf16, #tpu.memory_space<vmem>>, vector<128x256xbf16>
    %c0_65 = arith.constant 0 : index
    %c0_66 = arith.constant 0 : index
    %33 = vector.load %arg35[%c0_65, %c0_66] : memref<1x256xf32, #tpu.memory_space<vmem>>, vector<1x256xf32>
    %c0_67 = arith.constant 0 : index
    %c0_68 = arith.constant 0 : index
    %34 = vector.load %arg36[%c0_67, %c0_68] : memref<128x128xbf16, #tpu.memory_space<vmem>>, vector<128x128xbf16>
    %c0_69 = arith.constant 0 : index
    %c0_70 = arith.constant 0 : index
    %35 = vector.load %arg37[%c0_69, %c0_70] : memref<1x128xf32, #tpu.memory_space<vmem>>, vector<1x128xf32>
    %c0_71 = arith.constant 0 : index
    %c0_72 = arith.constant 0 : index
    %36 = vector.load %arg38[%c0_71, %c0_72] : memref<1x128xf32, #tpu.memory_space<vmem>>, vector<1x128xf32>
    %c0_73 = arith.constant 0 : index
    %c0_74 = arith.constant 0 : index
    %37 = vector.load %arg39[%c0_73, %c0_74] : memref<1x128xf32, #tpu.memory_space<vmem>>, vector<1x128xf32>
    %c0_75 = arith.constant 0 : index
    %c0_76 = arith.constant 0 : index
    %38 = vector.load %arg40[%c0_75, %c0_76] : memref<128x256xbf16, #tpu.memory_space<vmem>>, vector<128x256xbf16>
    %c0_77 = arith.constant 0 : index
    %c0_78 = arith.constant 0 : index
    %39 = vector.load %arg41[%c0_77, %c0_78] : memref<1x256xf32, #tpu.memory_space<vmem>>, vector<1x256xf32>
    %c0_79 = arith.constant 0 : index
    %c0_80 = arith.constant 0 : index
    %40 = vector.load %arg42[%c0_79, %c0_80] : memref<256x128xbf16, #tpu.memory_space<vmem>>, vector<256x128xbf16>
    %c0_81 = arith.constant 0 : index
    %c0_82 = arith.constant 0 : index
    %41 = vector.load %arg43[%c0_81, %c0_82] : memref<1x128xf32, #tpu.memory_space<vmem>>, vector<1x128xf32>
    %c0_83 = arith.constant 0 : index
    %c0_84 = arith.constant 0 : index
    %42 = vector.load %arg1[%c0_83, %c0_84] : memref<16x768xf32, #tpu.memory_space<vmem>>, vector<16x768xf32>
    %43 = arith.truncf %42 : vector<16x768xf32> to vector<16x768xbf16>
    %cst = arith.constant dense<0.000000e+00> : vector<16x128xf32>
    %44 = tpu.matmul %43, %0, %cst {dimension_numbers = #tpu.dot_dimension_numbers<[1], [0], [0], [1], [0, 0, 1, 1], [], []>} : vector<16x768xbf16>, vector<768x128xbf16>, vector<16x128xf32> -> vector<16x128xf32>
    %45 = vector.broadcast %1 : vector<1x128xf32> to vector<16x128xf32>
    %46 = arith.addf %44, %45 : vector<16x128xf32>
    %47 = arith.addf %46, %2 : vector<16x128xf32>
    %cst_85 = arith.constant dense<0.000000e+00> : vector<16xf32>
    %48 = vector.multi_reduction <add>, %47, %cst_85 [1] : vector<16x128xf32> to vector<16xf32>
    %49 = vector.shape_cast %48 : vector<16xf32> to vector<16x1xf32>
    %cst_86 = arith.constant 1.280000e+02 : f32
    %50 = vector.broadcast %cst_86 : f32 to vector<16x1xf32>
    %51 = arith.divf %49, %50 : vector<16x1xf32>
    %52 = vector.broadcast %51 : vector<16x1xf32> to vector<16x128xf32>
    %53 = arith.subf %47, %52 : vector<16x128xf32>
    %54 = arith.mulf %53, %53 : vector<16x128xf32>
    %cst_87 = arith.constant dense<0.000000e+00> : vector<16xf32>
    %55 = vector.multi_reduction <add>, %54, %cst_87 [1] : vector<16x128xf32> to vector<16xf32>
    %56 = vector.shape_cast %55 : vector<16xf32> to vector<16x1xf32>
    %cst_88 = arith.constant 1.280000e+02 : f32
    %57 = vector.broadcast %cst_88 : f32 to vector<16x1xf32>
    %58 = arith.divf %56, %57 : vector<16x1xf32>
    %59 = vector.broadcast %51 : vector<16x1xf32> to vector<16x128xf32>
    %60 = arith.subf %47, %59 : vector<16x128xf32>
    %cst_89 = arith.constant 9.99999997E-7 : f32
    %61 = vector.broadcast %cst_89 : f32 to vector<16x1xf32>
    %62 = arith.addf %58, %61 : vector<16x1xf32>
    %63 = math.rsqrt %62 : vector<16x1xf32>
    %64 = vector.broadcast %63 : vector<16x1xf32> to vector<16x128xf32>
    %65 = arith.mulf %60, %64 : vector<16x128xf32>
    %66 = vector.broadcast %3 : vector<1x128xf32> to vector<16x128xf32>
    %67 = arith.mulf %65, %66 : vector<16x128xf32>
    %68 = vector.broadcast %4 : vector<1x128xf32> to vector<16x128xf32>
    %69 = arith.addf %67, %68 : vector<16x128xf32>
    %70 = arith.truncf %69 : vector<16x128xf32> to vector<16x128xbf16>
    %cst_90 = arith.constant dense<0.000000e+00> : vector<16x384xf32>
    %71 = tpu.matmul %70, %5, %cst_90 {dimension_numbers = #tpu.dot_dimension_numbers<[1], [0], [0], [1], [0, 0, 1, 1], [], []>} : vector<16x128xbf16>, vector<128x384xbf16>, vector<16x384xf32> -> vector<16x384xf32>
    %72 = vector.broadcast %6 : vector<1x384xf32> to vector<16x384xf32>
    %73 = arith.addf %71, %72 : vector<16x384xf32>
    %74 = vector.extract_strided_slice %73 {offsets = [0, 0], sizes = [16, 64], strides = [1, 1]} : vector<16x384xf32> to vector<16x64xf32>
    %75 = vector.extract_strided_slice %73 {offsets = [0, 128], sizes = [16, 64], strides = [1, 1]} : vector<16x384xf32> to vector<16x64xf32>
    %76 = vector.extract_strided_slice %73 {offsets = [0, 256], sizes = [16, 64], strides = [1, 1]} : vector<16x384xf32> to vector<16x64xf32>
    %77 = arith.truncf %74 : vector<16x64xf32> to vector<16x64xbf16>
    %78 = arith.truncf %75 : vector<16x64xf32> to vector<16x64xbf16>
    %cst_91 = arith.constant dense<0.000000e+00> : vector<16x16xf32>
    %79 = tpu.matmul %77, %78, %cst_91 {dimension_numbers = #tpu.dot_dimension_numbers<[1], [1], [0], [0], [0, 0, 1, 0], [], []>} : vector<16x64xbf16>, vector<16x64xbf16>, vector<16x16xf32> -> vector<16x16xf32>
    %cst_92 = arith.constant 1.250000e-01 : f32
    %80 = vector.broadcast %cst_92 : f32 to vector<16x16xf32>
    %81 = arith.mulf %79, %80 : vector<16x16xf32>
    %cst_93 = arith.constant dense<0xFF800000> : vector<16xf32>
    %82 = vector.multi_reduction <maximumf>, %81, %cst_93 [1] : vector<16x16xf32> to vector<16xf32>
    %83 = vector.shape_cast %82 : vector<16xf32> to vector<16x1xf32>
    %84 = vector.broadcast %83 : vector<16x1xf32> to vector<16x16xf32>
    %85 = arith.subf %81, %84 : vector<16x16xf32>
    %86 = math.exp %85 : vector<16x16xf32>
    %cst_94 = arith.constant dense<0.000000e+00> : vector<16xf32>
    %87 = vector.multi_reduction <add>, %86, %cst_94 [1] : vector<16x16xf32> to vector<16xf32>
    %88 = vector.shape_cast %87 : vector<16xf32> to vector<16x1xf32>
    %89 = tpu.reciprocal %88 {approx = true} : vector<16x1xf32> -> vector<16x1xf32>
    %90 = vector.broadcast %89 : vector<16x1xf32> to vector<16x16xf32>
    %91 = arith.mulf %86, %90 : vector<16x16xf32>
    %92 = arith.truncf %91 : vector<16x16xf32> to vector<16x16xbf16>
    %93 = arith.truncf %76 : vector<16x64xf32> to vector<16x64xbf16>
    %cst_95 = arith.constant dense<0.000000e+00> : vector<16x64xf32>
    %94 = tpu.matmul %92, %93, %cst_95 {dimension_numbers = #tpu.dot_dimension_numbers<[1], [0], [0], [1], [0, 0, 1, 1], [], []>} : vector<16x16xbf16>, vector<16x64xbf16>, vector<16x64xf32> -> vector<16x64xf32>
    %95 = vector.extract_strided_slice %7 {offsets = [0, 0], sizes = [64, 128], strides = [1, 1]} : vector<128x128xbf16> to vector<64x128xbf16>
    %96 = arith.truncf %94 : vector<16x64xf32> to vector<16x64xbf16>
    %cst_96 = arith.constant dense<0.000000e+00> : vector<16x128xf32>
    %97 = tpu.matmul %96, %95, %cst_96 {dimension_numbers = #tpu.dot_dimension_numbers<[1], [0], [0], [1], [0, 0, 1, 1], [], []>} : vector<16x64xbf16>, vector<64x128xbf16>, vector<16x128xf32> -> vector<16x128xf32>
    %98 = vector.broadcast %8 : vector<1x128xf32> to vector<16x128xf32>
    %99 = arith.addf %98, %97 : vector<16x128xf32>
    %100 = vector.extract_strided_slice %73 {offsets = [0, 64], sizes = [16, 64], strides = [1, 1]} : vector<16x384xf32> to vector<16x64xf32>
    %101 = vector.extract_strided_slice %73 {offsets = [0, 192], sizes = [16, 64], strides = [1, 1]} : vector<16x384xf32> to vector<16x64xf32>
    %102 = vector.extract_strided_slice %73 {offsets = [0, 320], sizes = [16, 64], strides = [1, 1]} : vector<16x384xf32> to vector<16x64xf32>
    %103 = arith.truncf %100 : vector<16x64xf32> to vector<16x64xbf16>
    %104 = arith.truncf %101 : vector<16x64xf32> to vector<16x64xbf16>
    %cst_97 = arith.constant dense<0.000000e+00> : vector<16x16xf32>
    %105 = tpu.matmul %103, %104, %cst_97 {dimension_numbers = #tpu.dot_dimension_numbers<[1], [1], [0], [0], [0, 0, 1, 0], [], []>} : vector<16x64xbf16>, vector<16x64xbf16>, vector<16x16xf32> -> vector<16x16xf32>
    %cst_98 = arith.constant 1.250000e-01 : f32
    %106 = vector.broadcast %cst_98 : f32 to vector<16x16xf32>
    %107 = arith.mulf %105, %106 : vector<16x16xf32>
    %cst_99 = arith.constant dense<0xFF800000> : vector<16xf32>
    %108 = vector.multi_reduction <maximumf>, %107, %cst_99 [1] : vector<16x16xf32> to vector<16xf32>
    %109 = vector.shape_cast %108 : vector<16xf32> to vector<16x1xf32>
    %110 = vector.broadcast %109 : vector<16x1xf32> to vector<16x16xf32>
    %111 = arith.subf %107, %110 : vector<16x16xf32>
    %112 = math.exp %111 : vector<16x16xf32>
    %cst_100 = arith.constant dense<0.000000e+00> : vector<16xf32>
    %113 = vector.multi_reduction <add>, %112, %cst_100 [1] : vector<16x16xf32> to vector<16xf32>
    %114 = vector.shape_cast %113 : vector<16xf32> to vector<16x1xf32>
    %115 = tpu.reciprocal %114 {approx = true} : vector<16x1xf32> -> vector<16x1xf32>
    %116 = vector.broadcast %115 : vector<16x1xf32> to vector<16x16xf32>
    %117 = arith.mulf %112, %116 : vector<16x16xf32>
    %118 = arith.truncf %117 : vector<16x16xf32> to vector<16x16xbf16>
    %119 = arith.truncf %102 : vector<16x64xf32> to vector<16x64xbf16>
    %cst_101 = arith.constant dense<0.000000e+00> : vector<16x64xf32>
    %120 = tpu.matmul %118, %119, %cst_101 {dimension_numbers = #tpu.dot_dimension_numbers<[1], [0], [0], [1], [0, 0, 1, 1], [], []>} : vector<16x16xbf16>, vector<16x64xbf16>, vector<16x64xf32> -> vector<16x64xf32>
    %121 = vector.extract_strided_slice %7 {offsets = [64, 0], sizes = [64, 128], strides = [1, 1]} : vector<128x128xbf16> to vector<64x128xbf16>
    %122 = arith.truncf %120 : vector<16x64xf32> to vector<16x64xbf16>
    %cst_102 = arith.constant dense<0.000000e+00> : vector<16x128xf32>
    %123 = tpu.matmul %122, %121, %cst_102 {dimension_numbers = #tpu.dot_dimension_numbers<[1], [0], [0], [1], [0, 0, 1, 1], [], []>} : vector<16x64xbf16>, vector<64x128xbf16>, vector<16x128xf32> -> vector<16x128xf32>
    %124 = arith.addf %99, %123 : vector<16x128xf32>
    %125 = arith.addf %47, %124 : vector<16x128xf32>
    %cst_103 = arith.constant dense<0.000000e+00> : vector<16xf32>
    %126 = vector.multi_reduction <add>, %125, %cst_103 [1] : vector<16x128xf32> to vector<16xf32>
    %127 = vector.shape_cast %126 : vector<16xf32> to vector<16x1xf32>
    %cst_104 = arith.constant 1.280000e+02 : f32
    %128 = vector.broadcast %cst_104 : f32 to vector<16x1xf32>
    %129 = arith.divf %127, %128 : vector<16x1xf32>
    %130 = vector.broadcast %129 : vector<16x1xf32> to vector<16x128xf32>
    %131 = arith.subf %125, %130 : vector<16x128xf32>
    %132 = arith.mulf %131, %131 : vector<16x128xf32>
    %cst_105 = arith.constant dense<0.000000e+00> : vector<16xf32>
    %133 = vector.multi_reduction <add>, %132, %cst_105 [1] : vector<16x128xf32> to vector<16xf32>
    %134 = vector.shape_cast %133 : vector<16xf32> to vector<16x1xf32>
    %cst_106 = arith.constant 1.280000e+02 : f32
    %135 = vector.broadcast %cst_106 : f32 to vector<16x1xf32>
    %136 = arith.divf %134, %135 : vector<16x1xf32>
    %137 = vector.broadcast %129 : vector<16x1xf32> to vector<16x128xf32>
    %138 = arith.subf %125, %137 : vector<16x128xf32>
    %cst_107 = arith.constant 9.99999997E-7 : f32
    %139 = vector.broadcast %cst_107 : f32 to vector<16x1xf32>
    %140 = arith.addf %136, %139 : vector<16x1xf32>
    %141 = math.rsqrt %140 : vector<16x1xf32>
    %142 = vector.broadcast %141 : vector<16x1xf32> to vector<16x128xf32>
    %143 = arith.mulf %138, %142 : vector<16x128xf32>
    %144 = vector.broadcast %9 : vector<1x128xf32> to vector<16x128xf32>
    %145 = arith.mulf %143, %144 : vector<16x128xf32>
    %146 = vector.broadcast %10 : vector<1x128xf32> to vector<16x128xf32>
    %147 = arith.addf %145, %146 : vector<16x128xf32>
    %148 = arith.truncf %147 : vector<16x128xf32> to vector<16x128xbf16>
    %cst_108 = arith.constant dense<0.000000e+00> : vector<16x256xf32>
    %149 = tpu.matmul %148, %11, %cst_108 {dimension_numbers = #tpu.dot_dimension_numbers<[1], [0], [0], [1], [0, 0, 1, 1], [], []>} : vector<16x128xbf16>, vector<128x256xbf16>, vector<16x256xf32> -> vector<16x256xf32>
    %150 = vector.broadcast %12 : vector<1x256xf32> to vector<16x256xf32>
    %151 = arith.addf %149, %150 : vector<16x256xf32>
    %152 = arith.mulf %151, %151 : vector<16x256xf32>
    %153 = arith.mulf %151, %152 : vector<16x256xf32>
    %cst_109 = arith.constant 4.471500e-02 : f32
    %154 = vector.broadcast %cst_109 : f32 to vector<16x256xf32>
    %155 = arith.mulf %154, %153 : vector<16x256xf32>
    %156 = arith.addf %151, %155 : vector<16x256xf32>
    %cst_110 = arith.constant 0.797884583 : f32
    %157 = vector.broadcast %cst_110 : f32 to vector<16x256xf32>
    %158 = arith.mulf %157, %156 : vector<16x256xf32>
    %159 = math.tanh %158 : vector<16x256xf32>
    %cst_111 = arith.constant 1.000000e+00 : f32
    %160 = vector.broadcast %cst_111 : f32 to vector<16x256xf32>
    %161 = arith.addf %160, %159 : vector<16x256xf32>
    %cst_112 = arith.constant 5.000000e-01 : f32
    %162 = vector.broadcast %cst_112 : f32 to vector<16x256xf32>
    %163 = arith.mulf %162, %161 : vector<16x256xf32>
    %164 = arith.mulf %151, %163 : vector<16x256xf32>
    %165 = arith.truncf %164 : vector<16x256xf32> to vector<16x256xbf16>
    %cst_113 = arith.constant dense<0.000000e+00> : vector<16x128xf32>
    %166 = tpu.matmul %165, %13, %cst_113 {dimension_numbers = #tpu.dot_dimension_numbers<[1], [0], [0], [1], [0, 0, 1, 1], [], []>} : vector<16x256xbf16>, vector<256x128xbf16>, vector<16x128xf32> -> vector<16x128xf32>
    %167 = arith.addf %125, %166 : vector<16x128xf32>
    %168 = vector.broadcast %14 : vector<1x128xf32> to vector<16x128xf32>
    %169 = arith.addf %167, %168 : vector<16x128xf32>
    %cst_114 = arith.constant dense<0.000000e+00> : vector<16xf32>
    %170 = vector.multi_reduction <add>, %169, %cst_114 [1] : vector<16x128xf32> to vector<16xf32>
    %171 = vector.shape_cast %170 : vector<16xf32> to vector<16x1xf32>
    %cst_115 = arith.constant 1.280000e+02 : f32
    %172 = vector.broadcast %cst_115 : f32 to vector<16x1xf32>
    %173 = arith.divf %171, %172 : vector<16x1xf32>
    %174 = vector.broadcast %173 : vector<16x1xf32> to vector<16x128xf32>
    %175 = arith.subf %169, %174 : vector<16x128xf32>
    %176 = arith.mulf %175, %175 : vector<16x128xf32>
    %cst_116 = arith.constant dense<0.000000e+00> : vector<16xf32>
    %177 = vector.multi_reduction <add>, %176, %cst_116 [1] : vector<16x128xf32> to vector<16xf32>
    %178 = vector.shape_cast %177 : vector<16xf32> to vector<16x1xf32>
    %cst_117 = arith.constant 1.280000e+02 : f32
    %179 = vector.broadcast %cst_117 : f32 to vector<16x1xf32>
    %180 = arith.divf %178, %179 : vector<16x1xf32>
    %181 = vector.broadcast %173 : vector<16x1xf32> to vector<16x128xf32>
    %182 = arith.subf %169, %181 : vector<16x128xf32>
    %cst_118 = arith.constant 9.99999997E-7 : f32
    %183 = vector.broadcast %cst_118 : f32 to vector<16x1xf32>
    %184 = arith.addf %180, %183 : vector<16x1xf32>
    %185 = math.rsqrt %184 : vector<16x1xf32>
    %186 = vector.broadcast %185 : vector<16x1xf32> to vector<16x128xf32>
    %187 = arith.mulf %182, %186 : vector<16x128xf32>
    %188 = vector.broadcast %15 : vector<1x128xf32> to vector<16x128xf32>
    %189 = arith.mulf %187, %188 : vector<16x128xf32>
    %190 = vector.broadcast %16 : vector<1x128xf32> to vector<16x128xf32>
    %191 = arith.addf %189, %190 : vector<16x128xf32>
    %192 = arith.truncf %191 : vector<16x128xf32> to vector<16x128xbf16>
    %cst_119 = arith.constant dense<0.000000e+00> : vector<16x384xf32>
    %193 = tpu.matmul %192, %17, %cst_119 {dimension_numbers = #tpu.dot_dimension_numbers<[1], [0], [0], [1], [0, 0, 1, 1], [], []>} : vector<16x128xbf16>, vector<128x384xbf16>, vector<16x384xf32> -> vector<16x384xf32>
    %194 = vector.broadcast %18 : vector<1x384xf32> to vector<16x384xf32>
    %195 = arith.addf %193, %194 : vector<16x384xf32>
    %196 = vector.extract_strided_slice %195 {offsets = [0, 0], sizes = [16, 64], strides = [1, 1]} : vector<16x384xf32> to vector<16x64xf32>
    %197 = vector.extract_strided_slice %195 {offsets = [0, 128], sizes = [16, 64], strides = [1, 1]} : vector<16x384xf32> to vector<16x64xf32>
    %198 = vector.extract_strided_slice %195 {offsets = [0, 256], sizes = [16, 64], strides = [1, 1]} : vector<16x384xf32> to vector<16x64xf32>
    %199 = arith.truncf %196 : vector<16x64xf32> to vector<16x64xbf16>
    %200 = arith.truncf %197 : vector<16x64xf32> to vector<16x64xbf16>
    %cst_120 = arith.constant dense<0.000000e+00> : vector<16x16xf32>
    %201 = tpu.matmul %199, %200, %cst_120 {dimension_numbers = #tpu.dot_dimension_numbers<[1], [1], [0], [0], [0, 0, 1, 0], [], []>} : vector<16x64xbf16>, vector<16x64xbf16>, vector<16x16xf32> -> vector<16x16xf32>
    %cst_121 = arith.constant 1.250000e-01 : f32
    %202 = vector.broadcast %cst_121 : f32 to vector<16x16xf32>
    %203 = arith.mulf %201, %202 : vector<16x16xf32>
    %cst_122 = arith.constant dense<0xFF800000> : vector<16xf32>
    %204 = vector.multi_reduction <maximumf>, %203, %cst_122 [1] : vector<16x16xf32> to vector<16xf32>
    %205 = vector.shape_cast %204 : vector<16xf32> to vector<16x1xf32>
    %206 = vector.broadcast %205 : vector<16x1xf32> to vector<16x16xf32>
    %207 = arith.subf %203, %206 : vector<16x16xf32>
    %208 = math.exp %207 : vector<16x16xf32>
    %cst_123 = arith.constant dense<0.000000e+00> : vector<16xf32>
    %209 = vector.multi_reduction <add>, %208, %cst_123 [1] : vector<16x16xf32> to vector<16xf32>
    %210 = vector.shape_cast %209 : vector<16xf32> to vector<16x1xf32>
    %211 = tpu.reciprocal %210 {approx = true} : vector<16x1xf32> -> vector<16x1xf32>
    %212 = vector.broadcast %211 : vector<16x1xf32> to vector<16x16xf32>
    %213 = arith.mulf %208, %212 : vector<16x16xf32>
    %214 = arith.truncf %213 : vector<16x16xf32> to vector<16x16xbf16>
    %215 = arith.truncf %198 : vector<16x64xf32> to vector<16x64xbf16>
    %cst_124 = arith.constant dense<0.000000e+00> : vector<16x64xf32>
    %216 = tpu.matmul %214, %215, %cst_124 {dimension_numbers = #tpu.dot_dimension_numbers<[1], [0], [0], [1], [0, 0, 1, 1], [], []>} : vector<16x16xbf16>, vector<16x64xbf16>, vector<16x64xf32> -> vector<16x64xf32>
    %217 = vector.extract_strided_slice %19 {offsets = [0, 0], sizes = [64, 128], strides = [1, 1]} : vector<128x128xbf16> to vector<64x128xbf16>
    %218 = arith.truncf %216 : vector<16x64xf32> to vector<16x64xbf16>
    %cst_125 = arith.constant dense<0.000000e+00> : vector<16x128xf32>
    %219 = tpu.matmul %218, %217, %cst_125 {dimension_numbers = #tpu.dot_dimension_numbers<[1], [0], [0], [1], [0, 0, 1, 1], [], []>} : vector<16x64xbf16>, vector<64x128xbf16>, vector<16x128xf32> -> vector<16x128xf32>
    %220 = vector.broadcast %20 : vector<1x128xf32> to vector<16x128xf32>
    %221 = arith.addf %220, %219 : vector<16x128xf32>
    %222 = vector.extract_strided_slice %195 {offsets = [0, 64], sizes = [16, 64], strides = [1, 1]} : vector<16x384xf32> to vector<16x64xf32>
    %223 = vector.extract_strided_slice %195 {offsets = [0, 192], sizes = [16, 64], strides = [1, 1]} : vector<16x384xf32> to vector<16x64xf32>
    %224 = vector.extract_strided_slice %195 {offsets = [0, 320], sizes = [16, 64], strides = [1, 1]} : vector<16x384xf32> to vector<16x64xf32>
    %225 = arith.truncf %222 : vector<16x64xf32> to vector<16x64xbf16>
    %226 = arith.truncf %223 : vector<16x64xf32> to vector<16x64xbf16>
    %cst_126 = arith.constant dense<0.000000e+00> : vector<16x16xf32>
    %227 = tpu.matmul %225, %226, %cst_126 {dimension_numbers = #tpu.dot_dimension_numbers<[1], [1], [0], [0], [0, 0, 1, 0], [], []>} : vector<16x64xbf16>, vector<16x64xbf16>, vector<16x16xf32> -> vector<16x16xf32>
    %cst_127 = arith.constant 1.250000e-01 : f32
    %228 = vector.broadcast %cst_127 : f32 to vector<16x16xf32>
    %229 = arith.mulf %227, %228 : vector<16x16xf32>
    %cst_128 = arith.constant dense<0xFF800000> : vector<16xf32>
    %230 = vector.multi_reduction <maximumf>, %229, %cst_128 [1] : vector<16x16xf32> to vector<16xf32>
    %231 = vector.shape_cast %230 : vector<16xf32> to vector<16x1xf32>
    %232 = vector.broadcast %231 : vector<16x1xf32> to vector<16x16xf32>
    %233 = arith.subf %229, %232 : vector<16x16xf32>
    %234 = math.exp %233 : vector<16x16xf32>
    %cst_129 = arith.constant dense<0.000000e+00> : vector<16xf32>
    %235 = vector.multi_reduction <add>, %234, %cst_129 [1] : vector<16x16xf32> to vector<16xf32>
    %236 = vector.shape_cast %235 : vector<16xf32> to vector<16x1xf32>
    %237 = tpu.reciprocal %236 {approx = true} : vector<16x1xf32> -> vector<16x1xf32>
    %238 = vector.broadcast %237 : vector<16x1xf32> to vector<16x16xf32>
    %239 = arith.mulf %234, %238 : vector<16x16xf32>
    %240 = arith.truncf %239 : vector<16x16xf32> to vector<16x16xbf16>
    %241 = arith.truncf %224 : vector<16x64xf32> to vector<16x64xbf16>
    %cst_130 = arith.constant dense<0.000000e+00> : vector<16x64xf32>
    %242 = tpu.matmul %240, %241, %cst_130 {dimension_numbers = #tpu.dot_dimension_numbers<[1], [0], [0], [1], [0, 0, 1, 1], [], []>} : vector<16x16xbf16>, vector<16x64xbf16>, vector<16x64xf32> -> vector<16x64xf32>
    %243 = vector.extract_strided_slice %19 {offsets = [64, 0], sizes = [64, 128], strides = [1, 1]} : vector<128x128xbf16> to vector<64x128xbf16>
    %244 = arith.truncf %242 : vector<16x64xf32> to vector<16x64xbf16>
    %cst_131 = arith.constant dense<0.000000e+00> : vector<16x128xf32>
    %245 = tpu.matmul %244, %243, %cst_131 {dimension_numbers = #tpu.dot_dimension_numbers<[1], [0], [0], [1], [0, 0, 1, 1], [], []>} : vector<16x64xbf16>, vector<64x128xbf16>, vector<16x128xf32> -> vector<16x128xf32>
    %246 = arith.addf %221, %245 : vector<16x128xf32>
    %247 = arith.addf %169, %246 : vector<16x128xf32>
    %cst_132 = arith.constant dense<0.000000e+00> : vector<16xf32>
    %248 = vector.multi_reduction <add>, %247, %cst_132 [1] : vector<16x128xf32> to vector<16xf32>
    %249 = vector.shape_cast %248 : vector<16xf32> to vector<16x1xf32>
    %cst_133 = arith.constant 1.280000e+02 : f32
    %250 = vector.broadcast %cst_133 : f32 to vector<16x1xf32>
    %251 = arith.divf %249, %250 : vector<16x1xf32>
    %252 = vector.broadcast %251 : vector<16x1xf32> to vector<16x128xf32>
    %253 = arith.subf %247, %252 : vector<16x128xf32>
    %254 = arith.mulf %253, %253 : vector<16x128xf32>
    %cst_134 = arith.constant dense<0.000000e+00> : vector<16xf32>
    %255 = vector.multi_reduction <add>, %254, %cst_134 [1] : vector<16x128xf32> to vector<16xf32>
    %256 = vector.shape_cast %255 : vector<16xf32> to vector<16x1xf32>
    %cst_135 = arith.constant 1.280000e+02 : f32
    %257 = vector.broadcast %cst_135 : f32 to vector<16x1xf32>
    %258 = arith.divf %256, %257 : vector<16x1xf32>
    %259 = vector.broadcast %251 : vector<16x1xf32> to vector<16x128xf32>
    %260 = arith.subf %247, %259 : vector<16x128xf32>
    %cst_136 = arith.constant 9.99999997E-7 : f32
    %261 = vector.broadcast %cst_136 : f32 to vector<16x1xf32>
    %262 = arith.addf %258, %261 : vector<16x1xf32>
    %263 = math.rsqrt %262 : vector<16x1xf32>
    %264 = vector.broadcast %263 : vector<16x1xf32> to vector<16x128xf32>
    %265 = arith.mulf %260, %264 : vector<16x128xf32>
    %266 = vector.broadcast %21 : vector<1x128xf32> to vector<16x128xf32>
    %267 = arith.mulf %265, %266 : vector<16x128xf32>
    %268 = vector.broadcast %22 : vector<1x128xf32> to vector<16x128xf32>
    %269 = arith.addf %267, %268 : vector<16x128xf32>
    %270 = arith.truncf %269 : vector<16x128xf32> to vector<16x128xbf16>
    %cst_137 = arith.constant dense<0.000000e+00> : vector<16x256xf32>
    %271 = tpu.matmul %270, %23, %cst_137 {dimension_numbers = #tpu.dot_dimension_numbers<[1], [0], [0], [1], [0, 0, 1, 1], [], []>} : vector<16x128xbf16>, vector<128x256xbf16>, vector<16x256xf32> -> vector<16x256xf32>
    %272 = vector.broadcast %24 : vector<1x256xf32> to vector<16x256xf32>
    %273 = arith.addf %271, %272 : vector<16x256xf32>
    %274 = arith.mulf %273, %273 : vector<16x256xf32>
    %275 = arith.mulf %273, %274 : vector<16x256xf32>
    %cst_138 = arith.constant 4.471500e-02 : f32
    %276 = vector.broadcast %cst_138 : f32 to vector<16x256xf32>
    %277 = arith.mulf %276, %275 : vector<16x256xf32>
    %278 = arith.addf %273, %277 : vector<16x256xf32>
    %cst_139 = arith.constant 0.797884583 : f32
    %279 = vector.broadcast %cst_139 : f32 to vector<16x256xf32>
    %280 = arith.mulf %279, %278 : vector<16x256xf32>
    %281 = math.tanh %280 : vector<16x256xf32>
    %cst_140 = arith.constant 1.000000e+00 : f32
    %282 = vector.broadcast %cst_140 : f32 to vector<16x256xf32>
    %283 = arith.addf %282, %281 : vector<16x256xf32>
    %cst_141 = arith.constant 5.000000e-01 : f32
    %284 = vector.broadcast %cst_141 : f32 to vector<16x256xf32>
    %285 = arith.mulf %284, %283 : vector<16x256xf32>
    %286 = arith.mulf %273, %285 : vector<16x256xf32>
    %287 = arith.truncf %286 : vector<16x256xf32> to vector<16x256xbf16>
    %cst_142 = arith.constant dense<0.000000e+00> : vector<16x128xf32>
    %288 = tpu.matmul %287, %25, %cst_142 {dimension_numbers = #tpu.dot_dimension_numbers<[1], [0], [0], [1], [0, 0, 1, 1], [], []>} : vector<16x256xbf16>, vector<256x128xbf16>, vector<16x128xf32> -> vector<16x128xf32>
    %289 = arith.addf %247, %288 : vector<16x128xf32>
    %290 = vector.broadcast %26 : vector<1x128xf32> to vector<16x128xf32>
    %291 = arith.addf %289, %290 : vector<16x128xf32>
    %cst_143 = arith.constant dense<0.000000e+00> : vector<16xf32>
    %292 = vector.multi_reduction <add>, %291, %cst_143 [1] : vector<16x128xf32> to vector<16xf32>
    %293 = vector.shape_cast %292 : vector<16xf32> to vector<16x1xf32>
    %cst_144 = arith.constant 1.280000e+02 : f32
    %294 = vector.broadcast %cst_144 : f32 to vector<16x1xf32>
    %295 = arith.divf %293, %294 : vector<16x1xf32>
    %296 = vector.broadcast %295 : vector<16x1xf32> to vector<16x128xf32>
    %297 = arith.subf %291, %296 : vector<16x128xf32>
    %298 = arith.mulf %297, %297 : vector<16x128xf32>
    %cst_145 = arith.constant dense<0.000000e+00> : vector<16xf32>
    %299 = vector.multi_reduction <add>, %298, %cst_145 [1] : vector<16x128xf32> to vector<16xf32>
    %300 = vector.shape_cast %299 : vector<16xf32> to vector<16x1xf32>
    %cst_146 = arith.constant 1.280000e+02 : f32
    %301 = vector.broadcast %cst_146 : f32 to vector<16x1xf32>
    %302 = arith.divf %300, %301 : vector<16x1xf32>
    %303 = vector.broadcast %295 : vector<16x1xf32> to vector<16x128xf32>
    %304 = arith.subf %291, %303 : vector<16x128xf32>
    %cst_147 = arith.constant 9.99999997E-7 : f32
    %305 = vector.broadcast %cst_147 : f32 to vector<16x1xf32>
    %306 = arith.addf %302, %305 : vector<16x1xf32>
    %307 = math.rsqrt %306 : vector<16x1xf32>
    %308 = vector.broadcast %307 : vector<16x1xf32> to vector<16x128xf32>
    %309 = arith.mulf %304, %308 : vector<16x128xf32>
    %310 = vector.broadcast %27 : vector<1x128xf32> to vector<16x128xf32>
    %311 = arith.mulf %309, %310 : vector<16x128xf32>
    %312 = vector.broadcast %28 : vector<1x128xf32> to vector<16x128xf32>
    %313 = arith.addf %311, %312 : vector<16x128xf32>
    %314 = arith.truncf %29 : vector<1x128xf32> to vector<1x128xbf16>
    %cst_148 = arith.constant dense<0.000000e+00> : vector<1x128xf32>
    %315 = tpu.matmul %314, %30, %cst_148 {dimension_numbers = #tpu.dot_dimension_numbers<[1], [0], [0], [1], [0, 0, 1, 1], [], []>} : vector<1x128xbf16>, vector<128x128xbf16>, vector<1x128xf32> -> vector<1x128xf32>
    %316 = arith.addf %315, %31 : vector<1x128xf32>
    %317 = arith.truncf %313 : vector<16x128xf32> to vector<16x128xbf16>
    %cst_149 = arith.constant dense<0.000000e+00> : vector<16x256xf32>
    %318 = tpu.matmul %317, %32, %cst_149 {dimension_numbers = #tpu.dot_dimension_numbers<[1], [0], [0], [1], [0, 0, 1, 1], [], []>} : vector<16x128xbf16>, vector<128x256xbf16>, vector<16x256xf32> -> vector<16x256xf32>
    %319 = vector.broadcast %33 : vector<1x256xf32> to vector<16x256xf32>
    %320 = arith.addf %318, %319 : vector<16x256xf32>
    %321 = vector.extract_strided_slice %316 {offsets = [0, 0], sizes = [1, 64], strides = [1, 1]} : vector<1x128xf32> to vector<1x64xf32>
    %322 = vector.extract_strided_slice %320 {offsets = [0, 0], sizes = [16, 64], strides = [1, 1]} : vector<16x256xf32> to vector<16x64xf32>
    %323 = arith.truncf %321 : vector<1x64xf32> to vector<1x64xbf16>
    %324 = arith.truncf %322 : vector<16x64xf32> to vector<16x64xbf16>
    %cst_150 = arith.constant dense<0.000000e+00> : vector<1x16xf32>
    %325 = tpu.matmul %323, %324, %cst_150 {dimension_numbers = #tpu.dot_dimension_numbers<[1], [1], [0], [0], [0, 0, 1, 0], [], []>} : vector<1x64xbf16>, vector<16x64xbf16>, vector<1x16xf32> -> vector<1x16xf32>
    %cst_151 = arith.constant 1.250000e-01 : f32
    %326 = vector.broadcast %cst_151 : f32 to vector<1x16xf32>
    %327 = arith.mulf %325, %326 : vector<1x16xf32>
    %cst_152 = arith.constant dense<0xFF800000> : vector<1xf32>
    %328 = vector.multi_reduction <maximumf>, %327, %cst_152 [1] : vector<1x16xf32> to vector<1xf32>
    %329 = vector.shape_cast %328 : vector<1xf32> to vector<1x1xf32>
    %330 = vector.broadcast %329 : vector<1x1xf32> to vector<1x16xf32>
    %331 = arith.subf %327, %330 : vector<1x16xf32>
    %332 = math.exp %331 : vector<1x16xf32>
    %cst_153 = arith.constant dense<0.000000e+00> : vector<1xf32>
    %333 = vector.multi_reduction <add>, %332, %cst_153 [1] : vector<1x16xf32> to vector<1xf32>
    %334 = vector.shape_cast %333 : vector<1xf32> to vector<1x1xf32>
    %335 = tpu.reciprocal %334 {approx = true} : vector<1x1xf32> -> vector<1x1xf32>
    %336 = vector.broadcast %335 : vector<1x1xf32> to vector<1x16xf32>
    %337 = arith.mulf %332, %336 : vector<1x16xf32>
    %338 = vector.extract_strided_slice %320 {offsets = [0, 128], sizes = [16, 64], strides = [1, 1]} : vector<16x256xf32> to vector<16x64xf32>
    %339 = arith.truncf %337 : vector<1x16xf32> to vector<1x16xbf16>
    %340 = arith.truncf %338 : vector<16x64xf32> to vector<16x64xbf16>
    %cst_154 = arith.constant dense<0.000000e+00> : vector<1x64xf32>
    %341 = tpu.matmul %339, %340, %cst_154 {dimension_numbers = #tpu.dot_dimension_numbers<[1], [0], [0], [1], [0, 0, 1, 1], [], []>} : vector<1x16xbf16>, vector<16x64xbf16>, vector<1x64xf32> -> vector<1x64xf32>
    %342 = vector.extract_strided_slice %34 {offsets = [0, 0], sizes = [64, 128], strides = [1, 1]} : vector<128x128xbf16> to vector<64x128xbf16>
    %343 = arith.truncf %341 : vector<1x64xf32> to vector<1x64xbf16>
    %cst_155 = arith.constant dense<0.000000e+00> : vector<1x128xf32>
    %344 = tpu.matmul %343, %342, %cst_155 {dimension_numbers = #tpu.dot_dimension_numbers<[1], [0], [0], [1], [0, 0, 1, 1], [], []>} : vector<1x64xbf16>, vector<64x128xbf16>, vector<1x128xf32> -> vector<1x128xf32>
    %345 = arith.addf %35, %344 : vector<1x128xf32>
    %346 = vector.extract_strided_slice %316 {offsets = [0, 64], sizes = [1, 64], strides = [1, 1]} : vector<1x128xf32> to vector<1x64xf32>
    %347 = vector.extract_strided_slice %320 {offsets = [0, 64], sizes = [16, 64], strides = [1, 1]} : vector<16x256xf32> to vector<16x64xf32>
    %348 = arith.truncf %346 : vector<1x64xf32> to vector<1x64xbf16>
    %349 = arith.truncf %347 : vector<16x64xf32> to vector<16x64xbf16>
    %cst_156 = arith.constant dense<0.000000e+00> : vector<1x16xf32>
    %350 = tpu.matmul %348, %349, %cst_156 {dimension_numbers = #tpu.dot_dimension_numbers<[1], [1], [0], [0], [0, 0, 1, 0], [], []>} : vector<1x64xbf16>, vector<16x64xbf16>, vector<1x16xf32> -> vector<1x16xf32>
    %cst_157 = arith.constant 1.250000e-01 : f32
    %351 = vector.broadcast %cst_157 : f32 to vector<1x16xf32>
    %352 = arith.mulf %350, %351 : vector<1x16xf32>
    %cst_158 = arith.constant dense<0xFF800000> : vector<1xf32>
    %353 = vector.multi_reduction <maximumf>, %352, %cst_158 [1] : vector<1x16xf32> to vector<1xf32>
    %354 = vector.shape_cast %353 : vector<1xf32> to vector<1x1xf32>
    %355 = vector.broadcast %354 : vector<1x1xf32> to vector<1x16xf32>
    %356 = arith.subf %352, %355 : vector<1x16xf32>
    %357 = math.exp %356 : vector<1x16xf32>
    %cst_159 = arith.constant dense<0.000000e+00> : vector<1xf32>
    %358 = vector.multi_reduction <add>, %357, %cst_159 [1] : vector<1x16xf32> to vector<1xf32>
    %359 = vector.shape_cast %358 : vector<1xf32> to vector<1x1xf32>
    %360 = tpu.reciprocal %359 {approx = true} : vector<1x1xf32> -> vector<1x1xf32>
    %361 = vector.broadcast %360 : vector<1x1xf32> to vector<1x16xf32>
    %362 = arith.mulf %357, %361 : vector<1x16xf32>
    %363 = vector.extract_strided_slice %320 {offsets = [0, 192], sizes = [16, 64], strides = [1, 1]} : vector<16x256xf32> to vector<16x64xf32>
    %364 = arith.truncf %362 : vector<1x16xf32> to vector<1x16xbf16>
    %365 = arith.truncf %363 : vector<16x64xf32> to vector<16x64xbf16>
    %cst_160 = arith.constant dense<0.000000e+00> : vector<1x64xf32>
    %366 = tpu.matmul %364, %365, %cst_160 {dimension_numbers = #tpu.dot_dimension_numbers<[1], [0], [0], [1], [0, 0, 1, 1], [], []>} : vector<1x16xbf16>, vector<16x64xbf16>, vector<1x64xf32> -> vector<1x64xf32>
    %367 = vector.extract_strided_slice %34 {offsets = [64, 0], sizes = [64, 128], strides = [1, 1]} : vector<128x128xbf16> to vector<64x128xbf16>
    %368 = arith.truncf %366 : vector<1x64xf32> to vector<1x64xbf16>
    %cst_161 = arith.constant dense<0.000000e+00> : vector<1x128xf32>
    %369 = tpu.matmul %368, %367, %cst_161 {dimension_numbers = #tpu.dot_dimension_numbers<[1], [0], [0], [1], [0, 0, 1, 1], [], []>} : vector<1x64xbf16>, vector<64x128xbf16>, vector<1x128xf32> -> vector<1x128xf32>
    %370 = arith.addf %345, %369 : vector<1x128xf32>
    %cst_162 = arith.constant dense<0.000000e+00> : vector<1xf32>
    %371 = vector.multi_reduction <add>, %370, %cst_162 [1] : vector<1x128xf32> to vector<1xf32>
    %372 = vector.shape_cast %371 : vector<1xf32> to vector<1x1xf32>
    %cst_163 = arith.constant 1.280000e+02 : f32
    %373 = vector.broadcast %cst_163 : f32 to vector<1x1xf32>
    %374 = arith.divf %372, %373 : vector<1x1xf32>
    %375 = vector.broadcast %374 : vector<1x1xf32> to vector<1x128xf32>
    %376 = arith.subf %370, %375 : vector<1x128xf32>
    %377 = arith.mulf %376, %376 : vector<1x128xf32>
    %cst_164 = arith.constant dense<0.000000e+00> : vector<1xf32>
    %378 = vector.multi_reduction <add>, %377, %cst_164 [1] : vector<1x128xf32> to vector<1xf32>
    %379 = vector.shape_cast %378 : vector<1xf32> to vector<1x1xf32>
    %cst_165 = arith.constant 1.280000e+02 : f32
    %380 = vector.broadcast %cst_165 : f32 to vector<1x1xf32>
    %381 = arith.divf %379, %380 : vector<1x1xf32>
    %382 = vector.broadcast %374 : vector<1x1xf32> to vector<1x128xf32>
    %383 = arith.subf %370, %382 : vector<1x128xf32>
    %cst_166 = arith.constant 9.99999997E-7 : f32
    %384 = vector.broadcast %cst_166 : f32 to vector<1x1xf32>
    %385 = arith.addf %381, %384 : vector<1x1xf32>
    %386 = math.rsqrt %385 : vector<1x1xf32>
    %387 = vector.broadcast %386 : vector<1x1xf32> to vector<1x128xf32>
    %388 = arith.mulf %383, %387 : vector<1x128xf32>
    %389 = arith.mulf %388, %36 : vector<1x128xf32>
    %390 = arith.addf %389, %37 : vector<1x128xf32>
    %391 = arith.truncf %390 : vector<1x128xf32> to vector<1x128xbf16>
    %cst_167 = arith.constant dense<0.000000e+00> : vector<1x256xf32>
    %392 = tpu.matmul %391, %38, %cst_167 {dimension_numbers = #tpu.dot_dimension_numbers<[1], [0], [0], [1], [0, 0, 1, 1], [], []>} : vector<1x128xbf16>, vector<128x256xbf16>, vector<1x256xf32> -> vector<1x256xf32>
    %393 = arith.addf %392, %39 : vector<1x256xf32>
    %394 = arith.mulf %393, %393 : vector<1x256xf32>
    %395 = arith.mulf %393, %394 : vector<1x256xf32>
    %cst_168 = arith.constant 4.471500e-02 : f32
    %396 = vector.broadcast %cst_168 : f32 to vector<1x256xf32>
    %397 = arith.mulf %396, %395 : vector<1x256xf32>
    %398 = arith.addf %393, %397 : vector<1x256xf32>
    %cst_169 = arith.constant 0.797884583 : f32
    %399 = vector.broadcast %cst_169 : f32 to vector<1x256xf32>
    %400 = arith.mulf %399, %398 : vector<1x256xf32>
    %401 = math.tanh %400 : vector<1x256xf32>
    %cst_170 = arith.constant 1.000000e+00 : f32
    %402 = vector.broadcast %cst_170 : f32 to vector<1x256xf32>
    %403 = arith.addf %402, %401 : vector<1x256xf32>
    %cst_171 = arith.constant 5.000000e-01 : f32
    %404 = vector.broadcast %cst_171 : f32 to vector<1x256xf32>
    %405 = arith.mulf %404, %403 : vector<1x256xf32>
    %406 = arith.mulf %393, %405 : vector<1x256xf32>
    %407 = arith.truncf %406 : vector<1x256xf32> to vector<1x256xbf16>
    %cst_172 = arith.constant dense<0.000000e+00> : vector<1x128xf32>
    %408 = tpu.matmul %407, %40, %cst_172 {dimension_numbers = #tpu.dot_dimension_numbers<[1], [0], [0], [1], [0, 0, 1, 1], [], []>} : vector<1x256xbf16>, vector<256x128xbf16>, vector<1x128xf32> -> vector<1x128xf32>
    %409 = arith.addf %370, %408 : vector<1x128xf32>
    %410 = arith.addf %409, %41 : vector<1x128xf32>
    %c0_173 = arith.constant 0 : index
    %c0_174 = arith.constant 0 : index
    %411 = vector.load %arg44[%c0_173, %c0_174] : memref<16x128xf32, #tpu.memory_space<vmem>>, vector<16x128xf32>
    tpu.vector_store %arg44[%c0_173, %c0_174], %313 {strides = array<i32>} : memref<16x128xf32, #tpu.memory_space<vmem>>, vector<16x128xf32>,
    %412 = vector.shape_cast %410 : vector<1x128xf32> to vector<1x1x128xf32>
    %c0_175 = arith.constant 0 : index
    %c0_176 = arith.constant 0 : index
    %c0_177 = arith.constant 0 : index
    %413 = vector.load %arg45[%c0_175, %c0_176, %c0_177] : memref<1x1x128xf32, #tpu.memory_space<vmem>>, vector<1x1x128xf32>
    tpu.vector_store %arg45[%c0_175, %c0_176, %c0_177], %412 {strides = array<i32>} : memref<1x1x128xf32, #tpu.memory_space<vmem>>, vector<1x1x128xf32>,
    return
  }
  func.func @transform_0(%arg0: i32) -> (i32, i32) {
    %c0_i32 = arith.constant 0 : i32
    %c0_i32_0 = arith.constant 0 : i32
    return %arg0, %c0_i32 : i32, i32
  }
  func.func @transform_1(%arg0: i32) -> (i32, i32) {
    %c0_i32 = arith.constant 0 : i32
    %c0_i32_0 = arith.constant 0 : i32
    %c0_i32_1 = arith.constant 0 : i32
    return %c0_i32, %c0_i32_0 : i32, i32
  }
  func.func @transform_2(%arg0: i32) -> (i32, i32) {
    %c0_i32 = arith.constant 0 : i32
    %c0_i32_0 = arith.constant 0 : i32
    %c0_i32_1 = arith.constant 0 : i32
    return %c0_i32, %c0_i32_0 : i32, i32
  }
  func.func @transform_3(%arg0: i32) -> (i32, i32) {
    %c0_i32 = arith.constant 0 : i32
    %c0_i32_0 = arith.constant 0 : i32
    %c0_i32_1 = arith.constant 0 : i32
    return %c0_i32, %c0_i32_0 : i32, i32
  }
  func.func @transform_4(%arg0: i32) -> (i32, i32) {
    %c0_i32 = arith.constant 0 : i32
    %c0_i32_0 = arith.constant 0 : i32
    %c0_i32_1 = arith.constant 0 : i32
    return %c0_i32, %c0_i32_0 : i32, i32
  }
  func.func @transform_5(%arg0: i32) -> (i32, i32) {
    %c0_i32 = arith.constant 0 : i32
    %c0_i32_0 = arith.constant 0 : i32
    %c0_i32_1 = arith.constant 0 : i32
    return %c0_i32, %c0_i32_0 : i32, i32
  }
  func.func @transform_6(%arg0: i32) -> (i32, i32) {
    %c0_i32 = arith.constant 0 : i32
    %c0_i32_0 = arith.constant 0 : i32
    %c0_i32_1 = arith.constant 0 : i32
    return %c0_i32, %c0_i32_0 : i32, i32
  }
  func.func @transform_7(%arg0: i32) -> (i32, i32) {
    %c0_i32 = arith.constant 0 : i32
    %c0_i32_0 = arith.constant 0 : i32
    %c0_i32_1 = arith.constant 0 : i32
    return %c0_i32, %c0_i32_0 : i32, i32
  }
  func.func @transform_8(%arg0: i32) -> (i32, i32) {
    %c0_i32 = arith.constant 0 : i32
    %c0_i32_0 = arith.constant 0 : i32
    %c0_i32_1 = arith.constant 0 : i32
    return %c0_i32, %c0_i32_0 : i32, i32
  }
  func.func @transform_9(%arg0: i32) -> (i32, i32) {
    %c0_i32 = arith.constant 0 : i32
    %c0_i32_0 = arith.constant 0 : i32
    %c0_i32_1 = arith.constant 0 : i32
    return %c0_i32, %c0_i32_0 : i32, i32
  }
  func.func @transform_10(%arg0: i32) -> (i32, i32) {
    %c0_i32 = arith.constant 0 : i32
    %c0_i32_0 = arith.constant 0 : i32
    %c0_i32_1 = arith.constant 0 : i32
    return %c0_i32, %c0_i32_0 : i32, i32
  }
  func.func @transform_11(%arg0: i32) -> (i32, i32) {
    %c0_i32 = arith.constant 0 : i32
    %c0_i32_0 = arith.constant 0 : i32
    %c0_i32_1 = arith.constant 0 : i32
    return %c0_i32, %c0_i32_0 : i32, i32
  }
  func.func @transform_12(%arg0: i32) -> (i32, i32) {
    %c0_i32 = arith.constant 0 : i32
    %c0_i32_0 = arith.constant 0 : i32
    %c0_i32_1 = arith.constant 0 : i32
    return %c0_i32, %c0_i32_0 : i32, i32
  }
  func.func @transform_13(%arg0: i32) -> (i32, i32) {
    %c0_i32 = arith.constant 0 : i32
    %c0_i32_0 = arith.constant 0 : i32
    %c0_i32_1 = arith.constant 0 : i32
    return %c0_i32, %c0_i32_0 : i32, i32
  }
  func.func @transform_14(%arg0: i32) -> (i32, i32) {
    %c0_i32 = arith.constant 0 : i32
    %c0_i32_0 = arith.constant 0 : i32
    %c0_i32_1 = arith.constant 0 : i32
    return %c0_i32, %c0_i32_0 : i32, i32
  }
  func.func @transform_15(%arg0: i32) -> (i32, i32) {
    %c0_i32 = arith.constant 0 : i32
    %c0_i32_0 = arith.constant 0 : i32
    %c0_i32_1 = arith.constant 0 : i32
    return %c0_i32, %c0_i32_0 : i32, i32
  }
  func.func @transform_16(%arg0: i32) -> (i32, i32) {
    %c0_i32 = arith.constant 0 : i32
    %c0_i32_0 = arith.constant 0 : i32
    %c0_i32_1 = arith.constant 0 : i32
    return %c0_i32, %c0_i32_0 : i32, i32
  }
  func.func @transform_17(%arg0: i32) -> (i32, i32) {
    %c0_i32 = arith.constant 0 : i32
    %c0_i32_0 = arith.constant 0 : i32
    %c0_i32_1 = arith.constant 0 : i32
    return %c0_i32, %c0_i32_0 : i32, i32
  }
  func.func @transform_18(%arg0: i32) -> (i32, i32) {
    %c0_i32 = arith.constant 0 : i32
    %c0_i32_0 = arith.constant 0 : i32
    %c0_i32_1 = arith.constant 0 : i32
    return %c0_i32, %c0_i32_0 : i32, i32
  }
  func.func @transform_19(%arg0: i32) -> (i32, i32) {
    %c0_i32 = arith.constant 0 : i32
    %c0_i32_0 = arith.constant 0 : i32
    %c0_i32_1 = arith.constant 0 : i32
    return %c0_i32, %c0_i32_0 : i32, i32
  }
  func.func @transform_20(%arg0: i32) -> (i32, i32) {
    %c0_i32 = arith.constant 0 : i32
    %c0_i32_0 = arith.constant 0 : i32
    %c0_i32_1 = arith.constant 0 : i32
    return %c0_i32, %c0_i32_0 : i32, i32
  }
  func.func @transform_21(%arg0: i32) -> (i32, i32) {
    %c0_i32 = arith.constant 0 : i32
    %c0_i32_0 = arith.constant 0 : i32
    %c0_i32_1 = arith.constant 0 : i32
    return %c0_i32, %c0_i32_0 : i32, i32
  }
  func.func @transform_22(%arg0: i32) -> (i32, i32) {
    %c0_i32 = arith.constant 0 : i32
    %c0_i32_0 = arith.constant 0 : i32
    %c0_i32_1 = arith.constant 0 : i32
    return %c0_i32, %c0_i32_0 : i32, i32
  }
  func.func @transform_23(%arg0: i32) -> (i32, i32) {
    %c0_i32 = arith.constant 0 : i32
    %c0_i32_0 = arith.constant 0 : i32
    %c0_i32_1 = arith.constant 0 : i32
    return %c0_i32, %c0_i32_0 : i32, i32
  }
  func.func @transform_24(%arg0: i32) -> (i32, i32) {
    %c0_i32 = arith.constant 0 : i32
    %c0_i32_0 = arith.constant 0 : i32
    %c0_i32_1 = arith.constant 0 : i32
    return %c0_i32, %c0_i32_0 : i32, i32
  }
  func.func @transform_25(%arg0: i32) -> (i32, i32) {
    %c0_i32 = arith.constant 0 : i32
    %c0_i32_0 = arith.constant 0 : i32
    %c0_i32_1 = arith.constant 0 : i32
    return %c0_i32, %c0_i32_0 : i32, i32
  }
  func.func @transform_26(%arg0: i32) -> (i32, i32) {
    %c0_i32 = arith.constant 0 : i32
    %c0_i32_0 = arith.constant 0 : i32
    %c0_i32_1 = arith.constant 0 : i32
    return %c0_i32, %c0_i32_0 : i32, i32
  }
  func.func @transform_27(%arg0: i32) -> (i32, i32) {
    %c0_i32 = arith.constant 0 : i32
    %c0_i32_0 = arith.constant 0 : i32
    %c0_i32_1 = arith.constant 0 : i32
    return %c0_i32, %c0_i32_0 : i32, i32
  }
  func.func @transform_28(%arg0: i32) -> (i32, i32) {
    %c0_i32 = arith.constant 0 : i32
    %c0_i32_0 = arith.constant 0 : i32
    %c0_i32_1 = arith.constant 0 : i32
    return %c0_i32, %c0_i32_0 : i32, i32
  }
  func.func @transform_29(%arg0: i32) -> (i32, i32) {
    %c0_i32 = arith.constant 0 : i32
    %c0_i32_0 = arith.constant 0 : i32
    %c0_i32_1 = arith.constant 0 : i32
    return %c0_i32, %c0_i32_0 : i32, i32
  }
  func.func @transform_30(%arg0: i32) -> (i32, i32) {
    %c0_i32 = arith.constant 0 : i32
    %c0_i32_0 = arith.constant 0 : i32
    %c0_i32_1 = arith.constant 0 : i32
    return %c0_i32, %c0_i32_0 : i32, i32
  }
  func.func @transform_31(%arg0: i32) -> (i32, i32) {
    %c0_i32 = arith.constant 0 : i32
    %c0_i32_0 = arith.constant 0 : i32
    %c0_i32_1 = arith.constant 0 : i32
    return %c0_i32, %c0_i32_0 : i32, i32
  }
  func.func @transform_32(%arg0: i32) -> (i32, i32) {
    %c0_i32 = arith.constant 0 : i32
    %c0_i32_0 = arith.constant 0 : i32
    %c0_i32_1 = arith.constant 0 : i32
    return %c0_i32, %c0_i32_0 : i32, i32
  }
  func.func @transform_33(%arg0: i32) -> (i32, i32) {
    %c0_i32 = arith.constant 0 : i32
    %c0_i32_0 = arith.constant 0 : i32
    %c0_i32_1 = arith.constant 0 : i32
    return %c0_i32, %c0_i32_0 : i32, i32
  }
  func.func @transform_34(%arg0: i32) -> (i32, i32) {
    %c0_i32 = arith.constant 0 : i32
    %c0_i32_0 = arith.constant 0 : i32
    %c0_i32_1 = arith.constant 0 : i32
    return %c0_i32, %c0_i32_0 : i32, i32
  }
  func.func @transform_35(%arg0: i32) -> (i32, i32) {
    %c0_i32 = arith.constant 0 : i32
    %c0_i32_0 = arith.constant 0 : i32
    %c0_i32_1 = arith.constant 0 : i32
    return %c0_i32, %c0_i32_0 : i32, i32
  }
  func.func @transform_36(%arg0: i32) -> (i32, i32) {
    %c0_i32 = arith.constant 0 : i32
    %c0_i32_0 = arith.constant 0 : i32
    %c0_i32_1 = arith.constant 0 : i32
    return %c0_i32, %c0_i32_0 : i32, i32
  }
  func.func @transform_37(%arg0: i32) -> (i32, i32) {
    %c0_i32 = arith.constant 0 : i32
    %c0_i32_0 = arith.constant 0 : i32
    %c0_i32_1 = arith.constant 0 : i32
    return %c0_i32, %c0_i32_0 : i32, i32
  }
  func.func @transform_38(%arg0: i32) -> (i32, i32) {
    %c0_i32 = arith.constant 0 : i32
    %c0_i32_0 = arith.constant 0 : i32
    %c0_i32_1 = arith.constant 0 : i32
    return %c0_i32, %c0_i32_0 : i32, i32
  }
  func.func @transform_39(%arg0: i32) -> (i32, i32) {
    %c0_i32 = arith.constant 0 : i32
    %c0_i32_0 = arith.constant 0 : i32
    %c0_i32_1 = arith.constant 0 : i32
    return %c0_i32, %c0_i32_0 : i32, i32
  }
  func.func @transform_40(%arg0: i32) -> (i32, i32) {
    %c0_i32 = arith.constant 0 : i32
    %c0_i32_0 = arith.constant 0 : i32
    %c0_i32_1 = arith.constant 0 : i32
    return %c0_i32, %c0_i32_0 : i32, i32
  }
  func.func @transform_41(%arg0: i32) -> (i32, i32) {
    %c0_i32 = arith.constant 0 : i32
    %c0_i32_0 = arith.constant 0 : i32
    %c0_i32_1 = arith.constant 0 : i32
    return %c0_i32, %c0_i32_0 : i32, i32
  }
  func.func @transform_42(%arg0: i32) -> (i32, i32) {
    %c0_i32 = arith.constant 0 : i32
    %c0_i32_0 = arith.constant 0 : i32
    %c0_i32_1 = arith.constant 0 : i32
    return %c0_i32, %c0_i32_0 : i32, i32
  }
  func.func @transform_43(%arg0: i32) -> (i32, i32) {
    %c0_i32 = arith.constant 0 : i32
    %c0_i32_0 = arith.constant 0 : i32
    return %arg0, %c0_i32 : i32, i32
  }
  func.func @transform_44(%arg0: i32) -> (i32, i32, i32) {
    %c0_i32 = arith.constant 0 : i32
    %c0_i32_0 = arith.constant 0 : i32
    %c0_i32_1 = arith.constant 0 : i32
    return %arg0, %c0_i32, %c0_i32_0 : i32, i32, i32
  }
}

</mosaic_0001>

<bundles_post_ra>
// kernel: siglip2_forward.1
= control target key start
LH: loop header
LB: loop body
LE: loop exit
PB: predicated region body
PF: predicated region fallthrough
CT: control target
= control target key end

     0   :  { %s6272_s6 = smov 1   ;;  %s6273_s10 = smov 2   ;;  %s7271_s0 = inlined_call_operand.smem [shape: u32[45], index: -1, kind: input, shape index: {}] }
   0x1   :  { %s6330_s5 = sld [smem:[%s7271_s0]]   ;;  %s6274_s14 = smov 3  }
   0x2   :  { %s6335_s9 = sld [smem:[%s7271_s0 + %s6272_s6]]   ;;  %s6275_s18 = smov 4  }
   0x3   :  { %s6340_s13 = sld [smem:[%s7271_s0 + %s6273_s10]]   ;;  %s6276_s22 = smov 5  }
   0x4   :  { %s6345_s17 = sld [smem:[%s7271_s0 + %s6274_s14]]   ;;  %s6277_s26 = smov 6  }
   0x5   :  { %s6350_s21 = sld [smem:[%s7271_s0 + %s6275_s18]]   ;;  %s6278_s30 = smov 7  }
   0x6   :  { %s6355_s25 = sld [smem:[%s7271_s0 + %s6276_s22]]   ;;  %s6279_s4 = smov 8  }
   0x7   :  { %7297 = sst [smem:[#allocation14_spill]] %s6330_s5  ;;  %s6280_s10 = smov 9  }
   0x8   :  { %7298 = sst [smem:[#allocation15_spill]] %s6335_s9  ;;  %s6281_s15 = smov 10  }
   0x9   :  { %s6360_s29 = sld [smem:[%s7271_s0 + %s6277_s26]]   ;;  %s6282_s20 = smov 11  }
   0xa   :  { %s6365_s3 = sld [smem:[%s7271_s0 + %s6278_s30]]   ;;  %s6283_s26 = smov 12  }
   0xb   :  { %s6370_s8 = sld [smem:[%s7271_s0 + %s6279_s4]]   ;;  %s6284_s1 = smov 13  }
   0xc   :  { %s6375_s14 = sld [smem:[%s7271_s0 + %s6280_s10]]   ;;  %s6285_s7 = smov 14  }
   0xd   :  { %s6380_s19 = sld [smem:[%s7271_s0 + %s6281_s15]]   ;;  %s6286_s15 = smov 15  }
   0xe   :  { %s6385_s24 = sld [smem:[%s7271_s0 + %s6282_s20]]   ;;  %s6287_s22 = smov 16  }
   0xf   :  { %s6390_s30 = sld [smem:[%s7271_s0 + %s6283_s26]]   ;;  %s6288_s28 = smov 17  }
  0x10   :  { %7299 = sst [smem:[#allocation16_spill]] %s6365_s3 }
  0x11   :  { %7300 = sst [smem:[#allocation17_spill]] %s6370_s8 }
  0x12   :  { %s6395_s6 = sld [smem:[%s7271_s0 + %s6284_s1]]  }
  0x13   :  { %s6400_s12 = sld [smem:[%s7271_s0 + %s6285_s7]]   ;;  %s6289_s7 = smov 18  }
  0x14   :  { %s6405_s20 = sld [smem:[%s7271_s0 + %s6286_s15]]   ;;  %s6290_s15 = smov 19  }
  0x15   :  { %s6410_s27 = sld [smem:[%s7271_s0 + %s6287_s22]]   ;;  %s6291_s22 = smov 20  }
  0x16   :  { %s6415_s4 = sld [smem:[%s7271_s0 + %s6288_s28]]   ;;  %s6292_s28 = smov 21  }
  0x18   :  { %7301 = sst [smem:[#allocation18_spill]] %s6395_s6 }
  0x19   :  { %7302 = sst [smem:[#allocation19_spill]] %s6400_s12 }
  0x1a   :  { %7303 = sst [smem:[#allocation20_spill]] %s6405_s20 }
  0x1b   :  { %7304 = sst [smem:[#allocation21_spill]] %s6410_s27 }
  0x1c   :  { %7305 = sst [smem:[#allocation22_spill]] %s6415_s4 }
  0x1d   :  { %s6420_s6 = sld [smem:[%s7271_s0 + %s6289_s7]]   ;;  %s6293_s7 = smov 22  }
  0x1e   :  { %s6425_s20 = sld [smem:[%s7271_s0 + %s6290_s15]]   ;;  %s6294_s15 = smov 23  }
  0x1f   :  { %s6430_s27 = sld [smem:[%s7271_s0 + %s6291_s22]]   ;;  %s6295_s22 = smov 24  }
  0x20   :  { %s6435_s4 = sld [smem:[%s7271_s0 + %s6292_s28]]   ;;  %s6296_s28 = smov 25  }
  0x23   :  { %7306 = sst [smem:[#allocation23_spill]] %s6420_s6 }
  0x24   :  { %7307 = sst [smem:[#allocation24_spill]] %s6425_s20 }
  0x25   :  { %7308 = sst [smem:[#allocation25_spill]] %s6430_s27 }
  0x26   :  { %7309 = sst [smem:[#allocation26_spill]] %s6435_s4 }
  0x27   :  { %s6440_s6 = sld [smem:[%s7271_s0 + %s6293_s7]]   ;;  %s6297_s7 = smov 26  }
  0x28   :  { %s6445_s20 = sld [smem:[%s7271_s0 + %s6294_s15]]   ;;  %s6298_s15 = smov 27  }
  0x29   :  { %s6450_s27 = sld [smem:[%s7271_s0 + %s6295_s22]]   ;;  %s6299_s22 = smov 28  }
  0x2a   :  { %s6455_s4 = sld [smem:[%s7271_s0 + %s6296_s28]]   ;;  %s6300_s28 = smov 29  }
  0x2d   :  { %7310 = sst [smem:[#allocation27_spill]] %s6440_s6 }
  0x2e   :  { %7311 = sst [smem:[#allocation28_spill]] %s6445_s20 }
  0x2f   :  { %7312 = sst [smem:[#allocation29_spill]] %s6450_s27 }
  0x30   :  { %7313 = sst [smem:[#allocation30_spill]] %s6455_s4 }
  0x31   :  { %s6460_s6 = sld [smem:[%s7271_s0 + %s6297_s7]]   ;;  %s6301_s7 = smov 30  }
  0x32   :  { %s6465_s20 = sld [smem:[%s7271_s0 + %s6298_s15]]   ;;  %s6302_s15 = smov 31  }
  0x33   :  { %s6470_s27 = sld [smem:[%s7271_s0 + %s6299_s22]]   ;;  %s6303_s22 = smov 32  }
  0x34   :  { %s6475_s4 = sld [smem:[%s7271_s0 + %s6300_s28]]   ;;  %s6304_s28 = smov 33  }
  0x37   :  { %7314 = sst [smem:[#allocation31_spill]] %s6460_s6 }
  0x38   :  { %7315 = sst [smem:[#allocation32_spill]] %s6465_s20 }
  0x39   :  { %7316 = sst [smem:[#allocation33_spill]] %s6470_s27 }
  0x3a   :  { %7317 = sst [smem:[#allocation34_spill]] %s6475_s4 }
  0x3b   :  { %s6480_s6 = sld [smem:[%s7271_s0 + %s6301_s7]]   ;;  %s6305_s7 = smov 34  }
  0x3c   :  { %s6485_s20 = sld [smem:[%s7271_s0 + %s6302_s15]]   ;;  %s6306_s15 = smov 35  }
  0x3d   :  { %s6490_s27 = sld [smem:[%s7271_s0 + %s6303_s22]]   ;;  %s6307_s22 = smov 36  }
  0x3e   :  { %s6495_s4 = sld [smem:[%s7271_s0 + %s6304_s28]]   ;;  %s6308_s28 = smov 37  }
  0x41   :  { %7318 = sst [smem:[#allocation35_spill]] %s6480_s6 }
  0x42   :  { %7319 = sst [smem:[#allocation36_spill]] %s6485_s20 }
  0x43   :  { %7320 = sst [smem:[#allocation37_spill]] %s6490_s27 }
  0x44   :  { %7321 = sst [smem:[#allocation38_spill]] %s6495_s4 }
  0x45   :  { %s6500_s6 = sld [smem:[%s7271_s0 + %s6305_s7]]   ;;  %s6309_s7 = smov 38  }
  0x46   :  { %s6505_s20 = sld [smem:[%s7271_s0 + %s6306_s15]]   ;;  %s6310_s15 = smov 39  }
  0x47   :  { %s6510_s27 = sld [smem:[%s7271_s0 + %s6307_s22]]   ;;  %s6311_s22 = smov 40  }
  0x48   :  { %s6515_s4 = sld [smem:[%s7271_s0 + %s6308_s28]]   ;;  %s6312_s28 = smov 41  }
  0x4b   :  { %7322 = sst [smem:[#allocation39_spill]] %s6500_s6 }
  0x4c   :  { %7323 = sst [smem:[#allocation40_spill]] %s6505_s20 }
  0x4d   :  { %7324 = sst [smem:[#allocation41_spill]] %s6510_s27 }
  0x4e   :  { %7325 = sst [smem:[#allocation42_spill]] %s6515_s4 }
  0x4f   :  { %s6520_s6 = sld [smem:[%s7271_s0 + %s6309_s7]]   ;;  %s6313_s7 = smov 42  }
  0x50   :  { %s6525_s20 = sld [smem:[%s7271_s0 + %s6310_s15]]   ;;  %s6314_s15 = smov 43  }
  0x51   :  { %s6530_s27 = sld [smem:[%s7271_s0 + %s6311_s22]]   ;;  %s6315_s22 = smov 44  }
  0x52   :  { %s6535_s4 = sld [smem:[%s7271_s0 + %s6312_s28]]  }
  0x53   :  { %s6540_s12 = sld [smem:[%s7271_s0 + %s6313_s7]]  }
  0x55   :  { %7326 = sst [smem:[#allocation43_spill]] %s6520_s6 }
  0x56   :  { %7327 = sst [smem:[#allocation44_spill]] %s6525_s20 }
  0x57   :  { %7328 = sst [smem:[#allocation45_spill]] %s6530_s27 }
  0x58   :  { %7329 = sst [smem:[#allocation46_spill]] %s6535_s4 }
  0x59   :  { %s6545_s20 = sld [smem:[%s7271_s0 + %s6314_s15]]  }
  0x5a   :  { %s6550_s27 = sld [smem:[%s7271_s0 + %s6315_s22]]  }
  0x60   :  { %7330 = sst [smem:[#allocation47_spill]] %s6550_s27 }
  0x61   :  { %95 = vsyncpa [#allocation3], 0 }
  0x62   :  { %96 = vsyncpa [#allocation6], 0 }
  0x63   :  { %97 = vsyncpa [#allocation4], 0 }
  0x64   :  { %99 = vsyncpa [#allocation4 + $0x1], 0 }
  0x65   :  { %100 = vsyncpa [#allocation9], 0 }
  0x66   :  { %102 = vsyncpa [#allocation9 + $0x1], 0  ;;  %s6552_s28 = smov 0   ;;  %s6554_s1 = smov 0  }
  0x67   :  { %s6556_s2 = smov 0   ;;  %s6558_s7 = smov 0  }
  0x68 LB: > { %s7331_s9 = sld [smem:[#allocation15_spill]]  ;;  %s6573_s0 = sadd.s32 4294967295, %s6270_s7   ;;  %s6270_s7 = sphi %s6558_s7, %s7382_s7   ;;  %s6266_s2 = sphi %s6556_s2, %s7384_s2   ;;  %s6262_s1 = sphi %s6554_s1, %s7386_s1   ;;  %s6258_s28 = sphi %s6552_s28, %s7385_s28  }
  0x69   : > { %s7332_s8 = sld [smem:[#allocation17_spill]]  ;;  %s4660_s10 = sadd.s32 4294967294, %s6270_s7  }
  0x6a   : > { %s7333_s4 = sld [smem:[#allocation46_spill]]  ;;  %s6577_s11 = sadd.s32 1, %s6270_s7  }
  0x6b   : > { %s7334_s6 = sld [smem:[#allocation43_spill]]  ;;  %s1023_s15 = sadd.s32 1, %s6266_s2 }
  0x6c   : > { %7335 = sst [smem:[#allocation48_spill]] %s6258_s28  ;;  %s1020_s16 = ssub.s32 %s6270_s7, %s6577_s11 }
  0x6d   : > { %7336 = sst [smem:[#allocation49_spill]] %s6266_s2  ;;  %p1033_p0 = scmp.ne.s32.totalorder %s6266_s2, %s6262_s1 }
  0x6e   : > { %7337 = sst [smem:[#allocation50_spill]] %s6270_s7  ;;  %p1021_p1 = scmp.eq.s32.totalorder %s1020_s16, 0 }
  0x6f   : > { %7338 = sst [smem:[#allocation51_spill]] %s6577_s11  ;;  %p1034_p2 = scmp.eq.s32.totalorder %s6573_s0, 1 }
  0x70   : > { %p1039_p3 = scmp.ne.s32.totalorder %s6262_s1, %s6258_s28  ;;  %p1040_p4 = scmp.eq.s32.totalorder %s4660_s10, 1 }
  0x71   : > { %s6588_s18 = scalar_select %p1021_p1, %s6266_s2, %s1023_s15  }
  0x72   : > { %p6590_p5 = por %p1034_p2, %p1033_p0  ;;  %p6594_p6 = por %p1040_p4, %p1039_p3 }
  0x73   : > { %7339 = sst [smem:[#allocation52_spill]] %s6588_s18  ;;  %p4661_p7 = scmp.ge.s32.totalorder %s6270_s7, 1 }
  0x74   : > { %s7341_s23 = scalar_select %p6594_p6, 1, 0 }
  0x75   : > { %p1073_p8 = scmp.lt.s32.totalorder %s6270_s7, 3  ;;  %p5922_p9 = scmp.eq.s32.totalorder %s6573_s0, 0 }
  0x76   : > { %7342 = sst [smem:[#allocation53_spill]] %s7341_s23  ;;  %s1196_s16 = sshll.u32 %s7334_s6, 4  ;;  %s1197_s16 = int_to_ptr.hbm [resolvable:$true] %s1196_s16 }
  0x77   : > { %p6601_p10 = pnand %p4661_p7, %p1073_p8  ;;  %s6316_s10 = smov [#allocation2]  }
  0x78   : > { %s1198_s15 = sshll.u32 %s6316_s10, 4  ;;  %s1217_s18 = sshll.u32 %s6540_s12, 4  ;;  %s1199_s15 = int_to_ptr.vmem [resolvable:$true] %s1198_s15  ;;  %s6615_s18 = int_to_ptr.hbm [resolvable:$true] %s1217_s18 }
  0x79   : > { %p5908_p11 = pneg %p6601_p10  ;;  %s6317_s11 = smov [#allocation5]  }
  0x7a   : > { %s6617_s23 = sshll.u32 %s6317_s11, 4  ;;  %s6108_s28 = sshra.s32 %s1197_s16, 4  ;;  %s6109_s28 = int_to_ptr.hbm [resolvable:$true] %s6108_s28  ;;  %s1220_s23 = int_to_ptr.vmem [resolvable:$true] %s6617_s23 }
  0x7b   : > { %p6611_p12 = pnand %p5922_p9, %p5908_p11  ;;  %s6110_s7 = scalar_lea.hbm %s6109_s28, 1 }
  0x7c   : > { %p6111_p13 = scmp.ne.s32.totalorder %s6109_s28, %s6110_s7  ;;  %s6115_s10 = scalar_lea.hbm %s7334_s6, 1 }
  0x7d   : > { %p6112_p0 = pneg %p6611_p12  ;;  %p6116_p3 = scmp.lt.s32.totalorder %s6109_s28, %s7334_s6 }
  0x7e   : > { %p6117_p4 = scmp.lt.s32.totalorder %s6115_s10, %s6110_s7 }
  0x7f   : > { %p6113_p1 = pnand %p6112_p0, %p6111_p13 }
  0x80   : > { %p6118_p7 = por %p6117_p4, %p6116_p3 }
  0x81   : > { %p6114_p2 = pneg %p6113_p1 }
  0x83   : > { %p6119_p8 = pnand %p6118_p7, %p6114_p2 }
  0x85   : > { %6122 = shalt.err (!%p6119_p8)
}
  0x86   : > { %5911 = dma.hbm_to_vmem [thread:$0]  (!%p6611_p12), %s1197_s16, 16, %s1199_s15, [#allocation3]  }
  0x87   : > { %s6138_s11 = sshra.s32 %s6615_s18, 4  ;;  %s6145_s28 = scalar_lea.hbm %s6540_s12, 1  ;;  %s6139_s11 = int_to_ptr.hbm [resolvable:$true] %s6138_s11 }
  0x88   : > { %s6140_s27 = scalar_lea.hbm %s6139_s11, 1  ;;  %p6146_p2 = scmp.lt.s32.totalorder %s6139_s11, %s6540_s12 }
  0x89   : > { %p6141_p11 = scmp.ne.s32.totalorder %s6139_s11, %s6140_s27  ;;  %p6147_p3 = scmp.lt.s32.totalorder %s6145_s28, %s6140_s27 }
  0x8b   : > { %p6143_p13 = pnand %p6141_p11, %p6112_p0  ;;  %p6148_p4 = por %p6147_p3, %p6146_p2 }
  0x8d   : > { %p6144_p1 = pneg %p6143_p13 }
  0x8f   : > { %p6149_p7 = pnand %p6148_p4, %p6144_p1 }
  0x91   : > { %6152 = shalt.err (!%p6149_p7)
}
  0x92   : > { %5914 = dma.hbm_to_vmem [thread:$0]  (!%p6611_p12), %s6615_s18, 16, %s1220_s23, [#allocation6]  }
  0x93   : > { %1242 = sbr.rel (%p6601_p10) target bundleno = 5666 (0x1622), region = 192 }
  0x98   : > { %6241 = dma.done.wait (%p5922_p9), [#allocation3], 16  }
  0x99   : > { %6243 = vsyncadd (%p5922_p9), [#allocation3], 4294967280 }
  0x9a   : > { %6245 = dma.done.wait (%p5922_p9), [#allocation6], 16  }
  0x9b   : > { %6247 = vsyncadd (%p5922_p9), [#allocation6], 4294967280  ;;  %v5661_v0 = vld [vmem:[%s7331_s9 + $0x38] sm:$0xff]  ;;  %v5660_v4 = vld [vmem:[%s7331_s9 + $0x30] sm:$0xff]  ;;  %s4669_s27 = sshll.u32 %s6573_s0, 1  ;;  %s7345_s5 = sld [smem:[#allocation14_spill]] }
  0x9c   : > { %v5669_v1 = vld [vmem:[%s7331_s9 + $0x78] sm:$0xff]  ;;  %2090 = vmatpush.bf16.msra.mxu0 %v5661_v0  ;;  %v5668_v5 = vld [vmem:[%s7331_s9 + $0x70] sm:$0xff]  ;;  %v5659_v8 = vld [vmem:[%s7331_s9 + $0x28] sm:$0xff]  ;;  %p1360_p9 = scmp.lt.s32.totalorder %s4669_s27, 3  ;;  %s7346_s3 = sld [smem:[#allocation16_spill]]  ;;  %vm2413_vm7 = vcmask 523264  }
  0x9d   : > { %v5677_v2 = vld [vmem:[%s7331_s9 + $0xb8] sm:$0xff]  ;;  %2104 = vmatpush.bf16.msra.mxu1 %v5669_v1  ;;  %v5676_v6 = vld [vmem:[%s7331_s9 + $0xb0] sm:$0xff]  ;;  %v5667_v9 = vld [vmem:[%s7331_s9 + $0x68] sm:$0xff]  ;;  %s7288_s18 = smov 64   ;;  %vm2436_vm8 = vcmask 130048   ;;  %s7347_s23 = sld [smem:[#allocation19_spill]] }
  0x9e   : > { %v5685_v3 = vld [vmem:[%s7331_s9 + $0xf8] sm:$0xff]  ;;  %2118 = vmatpush.bf16.msra.mxu2 %v5677_v2  ;;  %v5684_v7 = vld [vmem:[%s7331_s9 + $0xf0] sm:$0xff]  ;;  %v5675_v10 = vld [vmem:[%s7331_s9 + $0xa8] sm:$0xff]  ;;  %s7388_s27 = smov (!%p1360_p9, %s4669_s27), 3  ;;  %s7348_s26 = sld [smem:[#allocation18_spill]] }
  0x9f   : > { %2132 = vmatpush.bf16.msra.mxu3 %v5685_v3  ;;  %v5683_v11 = vld [vmem:[%s7331_s9 + $0xe8] sm:$0xff]  ;;  %v5658_v12 = vld [vmem:[%s7331_s9 + $0x20] sm:$0xff]  ;;  %v5657_v16 = vld [vmem:[%s7331_s9 + $0x18] sm:$0xff]  ;;  %s5895_s2 = smul.u32 48, %s7388_s27  ;;  %s7349_s16 = sld [smem:[#allocation20_spill]] }
  0xa0   : > { %2091 = vmatpush.bf16.msra.mxu0 %v5660_v4  ;;  %v5666_v13 = vld [vmem:[%s7331_s9 + $0x60] sm:$0xff]  ;;  %v5665_v17 = vld [vmem:[%s7331_s9 + $0x58] sm:$0xff]  ;;  %v5656_v20 = vld [vmem:[%s7331_s9 + $0x10] sm:$0xff]  ;;  %s7350_s15 = sld [smem:[#allocation23_spill]] }
  0xa1   : > { %2105 = vmatpush.bf16.msra.mxu1 %v5668_v5  ;;  %v5674_v14 = vld [vmem:[%s7331_s9 + $0xa0] sm:$0xff]  ;;  %v5673_v18 = vld [vmem:[%s7331_s9 + $0x98] sm:$0xff]  ;;  %v5664_v21 = vld [vmem:[%s7331_s9 + $0x50] sm:$0xff]  ;;  %s6678_s7 = scalar_lea.vmem %s7345_s5, %s5895_s2  ;;  %s7351_s10 = sld [smem:[#allocation21_spill]] }
  0xa2   : > { %2119 = vmatpush.bf16.msra.mxu2 %v5676_v6  ;;  %v5682_v15 = vld [vmem:[%s7331_s9 + $0xe0] sm:$0xff]  ;;  %v5681_v19 = vld [vmem:[%s7331_s9 + $0xd8] sm:$0xff]  ;;  %v5672_v22 = vld [vmem:[%s7331_s9 + $0x90] sm:$0xff]  ;;  %s7352_s11 = sld [smem:[#allocation22_spill]] }
  0xa3   : > { %2133 = vmatpush.bf16.msra.mxu3 %v5684_v7  ;;  %v5680_v23 = vld [vmem:[%s7331_s9 + $0xd0] sm:$0xff]  ;;  %v5655_v24 = vld [vmem:[%s7331_s9 + $0x8] sm:$0xff]  ;;  %v5654_v28 = vld [vmem:[%s7331_s9] sm:$0xff]  ;;  %s7353_s28 = sld [smem:[#allocation24_spill]] }
  0xa4   : > { %2092 = vmatpush.bf16.msra.mxu0 %v5659_v8  ;;  %v5663_v25 = vld [vmem:[%s7331_s9 + $0x48] sm:$0xff]  ;;  %v5662_v29 = vld [vmem:[%s7331_s9 + $0x40] sm:$0xff]  ;;  %v1787_v31 = vld [vmem:[%s6678_s7 + $0x30] sm:$0xff]  ;;  %s7354_s27 = sld [smem:[#allocation25_spill]] }
  0xa5   : > { %2106 = vmatpush.bf16.msra.mxu1 %v5667_v9  ;;  %v5671_v26 = vld [vmem:[%s7331_s9 + $0x88] sm:$0xff]  ;;  %v1781_v30 = vld [vmem:[%s6678_s7] sm:$0xff]  ;;  %v1788_v33 = vld [vmem:[%s6678_s7 + $0x38] sm:$0xff]  ;;  %s7355_s2 = sld [smem:[#allocation26_spill]] }
  0xa6   : > { %2120 = vmatpush.bf16.msra.mxu2 %v5675_v10  ;;  %v5679_v27 = vld [vmem:[%s7331_s9 + $0xc8] sm:$0xff]  ;;  %v5693_v34 = vld [vmem:[%s7331_s9 + $0x138] sm:$0xff]  ;;  %v5670_v36 = vld [vmem:[%s7331_s9 + $0x80] sm:$0xff]  ;;  %v1793_v40 = vpack.c.bf16 %v1787_v31, %v1781_v30  ;;  %v6318_v31 = vmov 128.0  }
  0xa7   : > { %2134 = vmatpush.bf16.msra.mxu3 %v5683_v11  ;;  %v1782_v32 = vld [vmem:[%s6678_s7 + $0x8] sm:$0xff]  ;;  %v5701_v35 = vld [vmem:[%s7331_s9 + $0x178] sm:$0xff]  ;;  %v5678_v37 = vld [vmem:[%s7331_s9 + $0xc0] sm:$0xff]  ;;  %6024 = vrcp.f32 %v6318_v31 }
  0xa8   : > { %2093 = vmatpush.bf16.msra.mxu0 %v5658_v12  ;;  %v1783_v38 = vld [vmem:[%s6678_s7 + $0x10] sm:$0xff]  ;;  %v1789_v39 = vld [vmem:[%s6678_s7 + $0x40] sm:$0xff]  ;;  %v1784_v41 = vld [vmem:[%s6678_s7 + $0x18] sm:$0xff]  ;;  %v1794_v43 = vpack.c.bf16 %v1788_v33, %v1782_v32 }
  0xa9   : > { %2107 = vmatpush.bf16.msra.mxu1 %v5666_v13  ;;  %v1790_v42 = vld [vmem:[%s6678_s7 + $0x48] sm:$0xff]  ;;  %v5692_v44 = vld [vmem:[%s7331_s9 + $0x130] sm:$0xff]  ;;  %v1795_v46 = vpack.c.bf16 %v1789_v39, %v1783_v38  ;;  %v5690_v50 = vld [vmem:[%s7331_s9 + $0x120] sm:$0xff] }
  0xaa   : > { %2121 = vmatpush.bf16.msra.mxu2 %v5674_v14  ;;  %v5700_v45 = vld [vmem:[%s7331_s9 + $0x170] sm:$0xff]  ;;  %v1796_v47 = vpack.c.bf16 %v1790_v42, %v1784_v41  ;;  %v5691_v48 = vld [vmem:[%s7331_s9 + $0x128] sm:$0xff]  ;;  %v5698_v51 = vld [vmem:[%s7331_s9 + $0x160] sm:$0xff] }
  0xab   : > { %2135 = vmatpush.bf16.msra.mxu3 %v5682_v15  ;;  %v5699_v49 = vld [vmem:[%s7331_s9 + $0x168] sm:$0xff]  ;;  %v5689_v52 = vld [vmem:[%s7331_s9 + $0x118] sm:$0xff]  ;;  %v5688_v54 = vld [vmem:[%s7331_s9 + $0x110] sm:$0xff] }
  0xac   : > { %2094 = vmatpush.bf16.msra.mxu0 %v5657_v16  ;;  %v5697_v53 = vld [vmem:[%s7331_s9 + $0x158] sm:$0xff]  ;;  %v5696_v55 = vld [vmem:[%s7331_s9 + $0x150] sm:$0xff]  ;;  %v5687_v56 = vld [vmem:[%s7331_s9 + $0x108] sm:$0xff] }
  0xad   : > { %2108 = vmatpush.bf16.msra.mxu1 %v5665_v17  ;;  %v5695_v57 = vld [vmem:[%s7331_s9 + $0x148] sm:$0xff]  ;;  %v5686_v58 = vld [vmem:[%s7331_s9 + $0x100] sm:$0xff]  ;;  %v1791_v61 = vld [vmem:[%s6678_s7 + $0x50] sm:$0xff]  ;;  %v6025_v32 = vpop.eup %6024 }
  0xae   : > { %2122 = vmatpush.bf16.msra.mxu2 %v5673_v18  ;;  %v5694_v59 = vld [vmem:[%s7331_s9 + $0x140] sm:$0xff]  ;;  %v1786_v62 = vld [vmem:[%s6678_s7 + $0x28] sm:$0xff]  ;;  %v1792_v63 = vld [vmem:[%s6678_s7 + $0x58] sm:$0xff]  ;;  %v2181_v33 = vmul.f32 128.0, %v6025_v32  ;;  %vm2185_vm0 = vweird.f32 %v6025_v32  ;;  %s6188_s9 = scalar_lea.hbm %s6545_s20, 32 }
  0xaf   : > { %2136 = vmatpush.bf16.msra.mxu3 %v5681_v19  ;;  %v1785_v60 = vld [vmem:[%s6678_s7 + $0x20] sm:$0xff]  ;;  %v1798_v1 = vpack.c.bf16 %v1792_v63, %v1786_v62  ;;  %v5708_v31 = vld [vmem:[%s6360_s29 + $0x34] sm:$0xf]  ;;  %s7356_s7 = sld [smem:[#allocation29_spill]] }
  0xb0   : > { %2095 = vmatpush.bf16.msra.mxu0 %v5656_v20  ;;  %v1797_v0 = vpack.c.bf16 %v1791_v61, %v1785_v60  ;;  %v6009_v4 = vld [vmem:[%s6340_s13] ss:$0 sm:$0xff]  ;;  %v4945_v60 = vld [vmem:[%s6360_s29 + $0x98] sm:$0xf]  ;;  %v5722_v61 = vld [vmem:[%s6360_s29 + $0xa0] sm:$0xf0] }
  0xb1   : > { %2109 = vmatpush.bf16.msra.mxu1 %v5664_v21  ;;  %v1465_v19 = vld [vmem:[%s6345_s17] sm:$0xff]  ;;  %v4946_v63 = vor.u32 %v5722_v61, %v4945_v60 }
  0xb2   : > { %2123 = vmatpush.bf16.msra.mxu2 %v5672_v22 }
  0xb3   : > { %2137 = vmatpush.bf16.msra.mxu3 %v5680_v23 }
  0xb4   : > { %2096 = vmatpush.bf16.msra.mxu0 %v5655_v24 }
  0xb5   : > { %2110 = vmatpush.bf16.msra.mxu1 %v5663_v25 }
  0xb6   : > { %2124 = vmatpush.bf16.msra.mxu2 %v5671_v26 }
  0xb7   : > { %2138 = vmatpush.bf16.msra.mxu3 %v5679_v27  ;;  %v1466_v27 = vld [vmem:[%s6345_s17 + $0x8] sm:$0xff] }
  0xb8   : > { %2097 = vmatpush.bf16.msra.mxu0 %v5654_v28 }
  0xb9   : > { %2111 = vmatpush.bf16.msra.mxu1 %v5662_v29 }
  0xba   : > { %2125 = vmatpush.bf16.msra.mxu2 %v5670_v36 }
  0xbb   : > { %2139 = vmatpush.bf16.msra.mxu3 %v5678_v37  ;;  %2098 = vmatmul.bf16.vlgmr.msra.gmra.mxu0 %v1793_v40 }
  0xbc   : > { %2146 = vmatpush.bf16.msrb.mxu0 %v5693_v34  ;;  %2112 = vmatmul.bf16.vlgmr.msra.gmra.mxu1 %v1794_v43  ;;  %v2182_v34 = vsub.f32 1.0, %v2181_v33  ;;  %v4891_v33 = vld [vmem:[%s6360_s29 + $0x3c] sm:$0xf0] }
  0xbd   : > { %2160 = vmatpush.bf16.msrb.mxu1 %v5701_v35  ;;  %2126 = vmatmul.bf16.vlgmr.msra.gmra.mxu2 %v1795_v46  ;;  %v4949_v46 = vld [vmem:[%s6360_s29 + $0xa8] sm:$0xf] }
  0xbe   : > { %2140 = vmatmul.bf16.vlgmr.msra.gmra.mxu3 %v1796_v47  ;;  %v2183_v35 = vmul.f32 %v6025_v32, %v2182_v34  ;;  %v5724_v47 = vld [vmem:[%s6360_s29 + $0xb0] sm:$0xf0]  ;;  %v4897_v34 = vld [vmem:[%s6360_s29 + $0x38] sm:$0xf] }
  0xc0   : > { %2147 = vmatpush.bf16.msrb.mxu0 %v5692_v44  ;;  %v2184_v36 = vadd.f32 %v6025_v32, %v2183_v35  ;;  %v5710_v35 = vld [vmem:[%s6360_s29 + $0x40] sm:$0xf0] }
  0xc1   : > { %2161 = vmatpush.bf16.msrb.mxu1 %v5700_v45 }
  0xc2   : > { %v6721_v37 = vsel %vm2185_vm0, %v6025_v32, %v2184_v36  ;;  %v4894_v36 = vor.u32 %v5708_v31, %v4891_v33 }
  0xc4   : > { %2148 = vmatpush.bf16.msrb.mxu0 %v5691_v48  ;;  %v5723_v48 = vld [vmem:[%s6360_s29 + $0xac] sm:$0xf] }
  0xc5   : > { %2162 = vmatpush.bf16.msrb.mxu1 %v5699_v49  ;;  %v4950_v49 = vor.u32 %v5724_v47, %v4949_v46  ;;  %v4885_v46 = vld [vmem:[%s6360_s29 + $0x20] sm:$0xf]  ;;  %v5707_v47 = vld [vmem:[%s6360_s29 + $0x28] sm:$0xf0] }
  0xc7   : > { %2369 = vmatpush.bf16.msrb.mxu2 %v4950_v49  ;;  %v4886_v49 = vor.u32 %v5707_v47, %v4885_v46 }
  0xc8   : > { %2149 = vmatpush.bf16.msrb.mxu0 %v5690_v50  ;;  %v4951_v50 = vld [vmem:[%s6360_s29 + $0xb4] sm:$0xf0] }
  0xc9   : > { %2163 = vmatpush.bf16.msrb.mxu1 %v5698_v51  ;;  %v4957_v51 = vld [vmem:[%s6360_s29 + $0xb0] sm:$0xf] }
  0xcc   : > { %2150 = vmatpush.bf16.msrb.mxu0 %v5689_v52  ;;  %v5725_v52 = vld [vmem:[%s6360_s29 + $0xb8] sm:$0xf0] }
  0xcd   : > { %2164 = vmatpush.bf16.msrb.mxu1 %v5697_v53  ;;  %v4954_v53 = vor.u32 %v5723_v48, %v4951_v50  ;;  %v4865_v50 = vld [vmem:[%s6360_s29] sm:$0xf] }
  0xcf   : > { %2383 = vmatpush.bf16.msrb.mxu3 %v4954_v53 }
  0xd0   : > { %2151 = vmatpush.bf16.msrb.mxu0 %v5688_v54  ;;  %v4958_v54 = vor.u32 %v5725_v52, %v4957_v51  ;;  %v5703_v51 = vld [vmem:[%s6360_s29 + $0x8] sm:$0xf0]  ;;  %v5702_v52 = vld [vmem:[%s6360_s29 + $0x4] sm:$0xf] }
  0xd1   : > { %2165 = vmatpush.bf16.msrb.mxu1 %v5696_v55  ;;  %v4937_v55 = vld [vmem:[%s6360_s29 + $0x90] sm:$0xf] }
  0xd4   : > { %2152 = vmatpush.bf16.msrb.mxu0 %v5687_v56  ;;  %v5721_v56 = vld [vmem:[%s6360_s29 + $0x98] sm:$0xf0] }
  0xd5   : > { %2166 = vmatpush.bf16.msrb.mxu1 %v5695_v57  ;;  %v5720_v57 = vld [vmem:[%s6360_s29 + $0x94] sm:$0xf] }
  0xd8   : > { %2153 = vmatpush.bf16.msrb.mxu0 %v5686_v58  ;;  %v4938_v58 = vor.u32 %v5721_v56, %v4937_v55  ;;  %v4867_v55 = vld [vmem:[%s6360_s29 + $0xc] sm:$0xf0]  ;;  %v4873_v56 = vld [vmem:[%s6360_s29 + $0x8] sm:$0xf] }
  0xd9   : > { %2167 = vmatpush.bf16.msrb.mxu1 %v5694_v59  ;;  %v4939_v59 = vld [vmem:[%s6360_s29 + $0x9c] sm:$0xf0] }
  0xda   : > { %v4942_v62 = vor.u32 %v5720_v57, %v4939_v59  ;;  %2370 = vmatpush.bf16.msrb.mxu2 %v4938_v58  ;;  %v5704_v57 = vld [vmem:[%s6360_s29 + $0x10] sm:$0xf0]  ;;  %v4870_v59 = vor.u32 %v5702_v52, %v4867_v55 }
  0xdb   : > { %2154 = vmatmul.bf16.vlgmr.msrb.gmra.mxu0 %v1797_v0  ;;  %v4925_v0 = vld [vmem:[%s6360_s29 + $0x78] sm:$0xf]  ;;  %v4874_v60 = vor.u32 %v5704_v57, %v4873_v56 }
  0xdc   : > { %2168 = vmatmul.bf16.vlgmr.msrb.gmra.mxu1 %v1798_v1  ;;  %2397 = vmatpush.bf16.msra.mxu0 %v4958_v54  ;;  %v5718_v1 = vld [vmem:[%s6360_s29 + $0x80] sm:$0xf0]  ;;  %v4866_v54 = vor.u32 %v5703_v51, %v4865_v50 }
  0xdd   : > { %2384 = vmatpush.bf16.msrb.mxu3 %v4942_v62 }
  0xe0   : > { %2398 = vmatpush.bf16.msra.mxu0 %v4946_v63 }
 0x138   : > { %v2099_v2 = vpop.f32.mrf.mxu0 }
 0x139   : > { %v2113_v3 = vpop.f32.mrf.mxu1  ;;  %v2100_v5 = vadd.f32 %v6009_v4, %v2099_v2  ;;  %v5717_v2 = vld [vmem:[%s6360_s29 + $0x7c] sm:$0xf] }
 0x13b   : > { %v2114_v7 = vadd.f32 %v2113_v3, %v2100_v5  ;;  %v4926_v3 = vor.u32 %v5718_v1, %v4925_v0  ;;  %v4933_v5 = vld [vmem:[%s6360_s29 + $0x80] sm:$0xf] }
 0x13d   : > { %2371 = vmatpush.bf16.msrb.mxu2 %v4926_v3 }
 0x140   : > { %v2127_v6 = vpop.f32.mrf.mxu2  ;;  %v2101_v8 = vpop.f32.mrf.mxu0 }
 0x141   : > { %v2115_v9 = vpop.f32.mrf.mxu1  ;;  %v2141_v10 = vpop.f32.mrf.mxu3  ;;  %v2128_v11 = vadd.f32 %v2127_v6, %v2114_v7  ;;  %v2102_v12 = vadd.f32 %v6009_v4, %v2101_v8  ;;  %v4927_v4 = vld [vmem:[%s6360_s29 + $0x84] sm:$0xf0]  ;;  %v5719_v6 = vld [vmem:[%s6360_s29 + $0x88] sm:$0xf0] }
 0x142   : > { %v4930_v7 = vor.u32 %v5717_v2, %v4927_v4  ;;  %v4934_v8 = vor.u32 %v5719_v6, %v4933_v5 }
 0x143   : > { %v2142_v13 = vadd.f32 %v2141_v10, %v2128_v11  ;;  %v2116_v14 = vadd.f32 %v2115_v9, %v2102_v12  ;;  %v4913_v9 = vld [vmem:[%s6360_s29 + $0x60] sm:$0xf]  ;;  %v5715_v10 = vld [vmem:[%s6360_s29 + $0x68] sm:$0xf0]  ;;  %v5714_v11 = vld [vmem:[%s6360_s29 + $0x64] sm:$0xf] }
 0x144   : > { %2385 = vmatpush.bf16.msrb.mxu3 %v4930_v7  ;;  %2399 = vmatpush.bf16.msra.mxu0 %v4934_v8  ;;  %v4914_v12 = vor.u32 %v5715_v10, %v4913_v9 }
 0x146   : > { %2372 = vmatpush.bf16.msrb.mxu2 %v4914_v12 }
 0x148   : > { %v2129_v15 = vpop.f32.mrf.mxu2 }
 0x149   : > { %v2130_v20 = vadd.f32 %v2129_v15, %v2116_v14  ;;  %v2143_v22 = vpop.f32.mrf.mxu3  ;;  %v4921_v14 = vld [vmem:[%s6360_s29 + $0x68] sm:$0xf]  ;;  %v5716_v15 = vld [vmem:[%s6360_s29 + $0x70] sm:$0xf0] }
 0x14b   : > { %v2144_v24 = vadd.f32 %v2143_v22, %v2130_v20  ;;  %v5711_v20 = vld [vmem:[%s6360_s29 + $0x4c] sm:$0xf]  ;;  %v4903_v22 = vld [vmem:[%s6360_s29 + $0x54] sm:$0xf0] }
 0x158   : > { %v2155_v16 = vpop.f32.mrf.mxu0 }
 0x159   : > { %v2169_v17 = vpop.f32.mrf.mxu1  ;;  %v2156_v18 = vadd.f32 %v2155_v16, %v2142_v13  ;;  %v4915_v13 = vld [vmem:[%s6360_s29 + $0x6c] sm:$0xf0] }
 0x15a   : > { %v4918_v16 = vor.u32 %v5714_v11, %v4915_v13 }
 0x15b   : > { %v2170_v21 = vadd.f32 %v2169_v17, %v2156_v18  ;;  %v4922_v17 = vor.u32 %v5716_v15, %v4921_v14  ;;  %v4901_v18 = vld [vmem:[%s6360_s29 + $0x48] sm:$0xf]  ;;  %v6010_v14 = vld [vmem:[%s6350_s21] ss:$0 sm:$0xff] }
 0x15c   : > { %2386 = vmatpush.bf16.msrb.mxu3 %v4918_v16 }
 0x15d   : > { %v6714_v23 = vadd.f32 %v2170_v21, %v1465_v19  ;;  %2400 = vmatpush.bf16.msra.mxu0 %v4922_v17  ;;  %v5712_v19 = vld [vmem:[%s6360_s29 + $0x50] sm:$0xf0] }
 0x15e   : > { %v4902_v21 = vor.u32 %v5712_v19, %v4901_v18  ;;  %v6011_v19 = vld [vmem:[%s6355_s25] ss:$0 sm:$0xff] }
 0x15f   : > { %2176 = vadd.xlane.f32.xlu0 %v6714_v23 }
 0x160   : > { %v2157_v25 = vpop.f32.mrf.mxu0  ;;  %2373 = vmatpush.bf16.msrb.mxu2 %v4902_v21 }
 0x161   : > { %v2158_v26 = vadd.f32 %v2157_v25, %v2144_v24  ;;  %v2171_v28 = vpop.f32.mrf.mxu1  ;;  %v4909_v24 = vld [vmem:[%s6360_s29 + $0x50] sm:$0xf]  ;;  %v5713_v25 = vld [vmem:[%s6360_s29 + $0x58] sm:$0xf0] }
 0x163   : > { %v2172_v29 = vadd.f32 %v2171_v28, %v2158_v26  ;;  %v4906_v26 = vor.u32 %v5711_v20, %v4903_v22  ;;  %v4889_v28 = vld [vmem:[%s6360_s29 + $0x30] sm:$0xf] }
 0x165   : > { %v6718_v30 = vadd.f32 %v2172_v29, %v1466_v27  ;;  %v4910_v27 = vor.u32 %v5713_v25, %v4909_v24  ;;  %2387 = vmatpush.bf16.msrb.mxu3 %v4906_v26  ;;  %v5709_v29 = vld [vmem:[%s6360_s29 + $0x38] sm:$0xf0]  ;;  %v1501_v26 = vld [vmem:[%s7346_s3] sm:$0x7]  ;;  %s7369_s3 = sld [smem:[#allocation37_spill]] }
 0x166   : > { %v4890_v32 = vor.u32 %v5709_v29, %v4889_v28  ;;  %v2236_v33 = vperm.slane %v1501_v26, 1 }
 0x167   : > { %2178 = vadd.xlane.f32.xlu0 %v6718_v30  ;;  %2401 = vmatpush.bf16.msra.mxu0 %v4910_v27 }
 0x168   : > { %2374 = vmatpush.bf16.msrb.mxu2 %v4890_v32 }
 0x169   : > { %2388 = vmatpush.bf16.msrb.mxu3 %v4894_v36 }
 0x1d2   : > { %v2177_v38 = vpop.xlane.xlu0 %2176 }
 0x1d3   : > { %v2187_v39 = vmul.f32 %v6721_v37, %v2177_v38  ;;  %v4898_v38 = vor.u32 %v5710_v35, %v4897_v34 }
 0x1d5   : > { %v6725_v40 = vsub.f32 %v6714_v23, %v2187_v39  ;;  %2402 = vmatpush.bf16.msra.mxu0 %v4898_v38  ;;  %v4877_v39 = vld [vmem:[%s6360_s29 + $0x18] sm:$0xf] }
 0x1d7   : > { %v2191_v41 = vmul.f32 %v6725_v40, %v6725_v40 }
 0x1d9   : > { %2193 = vadd.xlane.f32.xlu1 %v2191_v41  ;;  %v5706_v41 = vld [vmem:[%s6360_s29 + $0x20] sm:$0xf0]  ;;  %2403 = vmatpush.bf16.msra.mxu0 %v4886_v49 }
 0x1da   : > { %v2179_v42 = vpop.xlane.xlu0 %2178 }
 0x1db   : > { %v2188_v43 = vmul.f32 %v6721_v37, %v2179_v42  ;;  %v5705_v42 = vld [vmem:[%s6360_s29 + $0x1c] sm:$0xf] }
 0x1dd   : > { %v6731_v44 = vsub.f32 %v6718_v30, %v2188_v43  ;;  %v4878_v43 = vor.u32 %v5706_v41, %v4877_v39  ;;  %2404 = vmatpush.bf16.msra.mxu0 %v4874_v60  ;;  %v2235_v41 = vperm.slane %v1501_v26, 0 }
 0x1df   : > { %v2192_v45 = vmul.f32 %v6731_v44, %v6731_v44  ;;  %2375 = vmatpush.bf16.msrb.mxu2 %v4878_v43 }
 0x1e1   : > { %2195 = vadd.xlane.f32.xlu1 %v2192_v45  ;;  %v4879_v45 = vld [vmem:[%s6360_s29 + $0x24] sm:$0xf0] }
 0x1e2   : > { %v4882_v48 = vor.u32 %v5705_v42, %v4879_v45 }
 0x1e3   : > { %2376 = vmatpush.bf16.msrb.mxu2 %v4866_v54 }
 0x1e4   : > { %2389 = vmatpush.bf16.msrb.mxu3 %v4882_v48 }
 0x1e8   : > { %2390 = vmatpush.bf16.msrb.mxu3 %v4870_v59 }
 0x24c   : > { %v2194_v53 = vpop.xlane.xlu1 %2193 }
 0x24d   : > { %v2197_v58 = vmul.f32 %v2194_v53, %v6721_v37 }
 0x24f   : > { %v2199_v61 = vadd.f32 1e-06, %v2197_v58 }
 0x251   : > { %6026 = vrsqrt.f32 %v2199_v61  ;;  %vm2207_vm2 = vweird.f32 %v2199_v61 }
 0x254   : > { %v2196_v62 = vpop.xlane.xlu1 %2195 }
 0x255   : > { %v2198_v63 = vmul.f32 %v2196_v62, %v6721_v37 }
 0x257   : > { %v6027_v0 = vpop.eup %6026  ;;  %v2200_v1 = vadd.f32 1e-06, %v2198_v63 }
 0x258   : > { %v2202_v2 = vmul.f32 %v6027_v0, %v2199_v61  ;;  %vm2208_vm1 = vweird.f32 %v6027_v0 }
 0x259   : > { %6028 = vrsqrt.f32 %v2200_v1  ;;  %vm2209_vm3 = vmor %vm2207_vm2, %vm2208_vm1  ;;  %vm2217_vm5 = vweird.f32 %v2200_v1 }
 0x25a   : > { %v2203_v3 = vmul.f32 %v6027_v0, %v2202_v2 }
 0x25c   : > { %v2204_v4 = vmul.f32 0.5, %v2203_v3 }
 0x25e   : > { %v2205_v5 = vsub.f32 1.5, %v2204_v4 }
 0x25f   : > { %v6029_v6 = vpop.eup %6028 }
 0x260   : > { %v2206_v7 = vmul.f32 %v6027_v0, %v2205_v5  ;;  %v2212_v8 = vmul.f32 %v6029_v6, %v2200_v1  ;;  %vm2218_vm4 = vweird.f32 %v6029_v6 }
 0x261   : > { %vm2219_vm6 = vmor %vm2217_vm5, %vm2218_vm4 }
 0x262   : > { %v2213_v9 = vmul.f32 %v6029_v6, %v2212_v8  ;;  %v2210_v10 = vsel %vm2209_vm3, %v6027_v0, %v2206_v7 }
 0x263   : > { %v2221_v13 = vmul.f32 %v2210_v10, %v6725_v40  ;;  %v2237_v40 = vperm.slane %v1501_v26, 2  ;;  %v5729_v26 = vld [vmem:[%s7332_s8 + $0x18] sm:$0xff] }
 0x264   : > { %v2214_v11 = vmul.f32 0.5, %v2213_v9  ;;  %2510 = vmatpush.bf16.msra.mxu3 %v5729_v26  ;;  %v5033_v26 = vld [vmem:[%s6390_s30 + $0x48] sm:$0xf0] }
 0x265   : > { %v2226_v18 = vmul.f32 %v6010_v14, %v2221_v13 }
 0x266   : > { %v2215_v12 = vsub.f32 1.5, %v2214_v11 }
 0x267   : > { %v2231_v21 = vadd.f32 %v6011_v19, %v2226_v18 }
 0x268   : > { %v2216_v15 = vmul.f32 %v6029_v6, %v2215_v12 }
 0x26a   : > { %v2220_v16 = vsel %vm2219_vm6, %v6029_v6, %v2216_v15 }
 0x26b   : > { %v2222_v17 = vmul.f32 %v2220_v16, %v6731_v44 }
 0x26d   : > { %v2227_v20 = vmul.f32 %v6010_v14, %v2222_v17 }
 0x26f   : > { %v2232_v22 = vadd.f32 %v6011_v19, %v2227_v20 }
 0x271   : > { %v2233_v24 = vpack.c.bf16 %v2232_v22, %v2231_v21 }
 0x273   : > { %2377 = vmatmul.bf16.vlgmr.msrb.gmra.mxu2 %v2233_v24  ;;  %2391 = vmatmul.bf16.vlgmr.msrb.gmra.mxu3 %v2233_v24 }
 0x274   : > { %2405 = vmatmul.bf16.vlgmr.msra.gmra.mxu0 %v2233_v24 }
 0x2f1   : > { %v2406_v25 = vpop.f32.mrf.mxu0 }
 0x2f2   : > { %v2407_v31 = vadd.f32 %v2406_v25, %v2237_v40 }
 0x2f6   : > { %v2392_v27 = vpop.f32.mrf.mxu3  ;;  %v2378_v28 = vpop.f32.mrf.mxu2 }
 0x2f7   : > { %v2393_v35 = vadd.f32 %v2392_v27, %v2236_v33  ;;  %v2379_v45 = vadd.f32 %v2378_v28, %v2235_v41 }
 0x2f9   : > { %v2408_v29 = vpop.f32.mrf.mxu0 }
 0x2fa   : > { %v2409_v32 = vadd.f32 %v2408_v29, %v2237_v40 }
 0x2fc   : > { %v6790_v34 = vpack.c.bf16 %v2409_v32, %v2407_v31 }
 0x2fe   : > { %2471 = vmatpush.bf16.msra.mxu2 %v6790_v34  ;;  %v2394_v44 = vpop.f32.mrf.mxu3  ;;  %v2380_v39 = vpop.f32.mrf.mxu2 }
 0x2ff   : > { %v2395_v36 = vadd.f32 %v2394_v44, %v2236_v33  ;;  %v2381_v43 = vadd.f32 %v2380_v39, %v2235_v41  ;;  %v5728_v44 = vld [vmem:[%s7332_s8 + $0x10] sm:$0xff] }
 0x300   : > { %2511 = vmatpush.bf16.msra.mxu3 %v5728_v44  ;;  %v5739_v44 = vld [vmem:[%s6390_s30 + $0x24] sm:$0xf0] }
 0x301   : > { %v2412_v38 = vpack.c.bf16 %v2395_v36, %v2393_v35  ;;  %v2411_v46 = vpack.c.bf16 %v2381_v43, %v2379_v45  ;;  %v5727_v35 = vld [vmem:[%s7332_s8 + $0x8] sm:$0xff]  ;;  %v5726_v36 = vld [vmem:[%s7332_s8] sm:$0xff]  ;;  %v5732_v43 = vld [vmem:[%s7332_s8 + $0x30] sm:$0xff] }
 0x302   : > { %v5731_v45 = vld [vmem:[%s7332_s8 + $0x28] sm:$0xff] }
 0x303   : > { %2529 = vrot.lane.b32.xlu2 %v2412_v38, %s7288_s18  ;;  %v2418_v42 = vsel %vm2413_vm7, %v2412_v38, 0  ;;  %v5733_v38 = vld [vmem:[%s7332_s8 + $0x38] sm:$0xff] }
 0x304   : > { %2427 = vmatpush.bf16.xpose.msra.mxu1 %v2418_v42  ;;  %2512 = vmatpush.bf16.msra.mxu3 %v5727_v35  ;;  %v5738_v35 = vld [vmem:[%s6390_s30 + $0x24] sm:$0xf] }
 0x308   : > { %2513 = vmatpush.bf16.msra.mxu3 %v5726_v36 }
 0x30b   : > { %2526 = vrot.lane.b32.xlu2 %v2411_v46, %s7288_s18  ;;  %4959 = vmatmul.msk.bf16.vlgmr.msra.gmra.mxu1 %vm2413_vm7, %v2411_v46  ;;  %v5730_v46 = vld [vmem:[%s7332_s8 + $0x20] sm:$0xff] }
 0x30c   : > { %2629 = vmatpush.bf16.msrb.mxu3 %v5733_v38  ;;  %v5017_v38 = vld [vmem:[%s6390_s30 + $0x28] sm:$0xf0] }
 0x310   : > { %2630 = vmatpush.bf16.msrb.mxu3 %v5732_v43  ;;  %v5736_v43 = vld [vmem:[%s6390_s30 + $0x14] sm:$0xf] }
 0x314   : > { %2631 = vmatpush.bf16.msrb.mxu3 %v5731_v45 }
 0x318   : > { %2632 = vmatpush.bf16.msrb.mxu3 %v5730_v46  ;;  %v5009_v46 = vld [vmem:[%s6390_s30 + $0x18] sm:$0xf0] }
 0x35d   : > { %v2530_v47 = vpop.permute.xlu2 %2529 }
 0x35e   : > { %v2535_v48 = vsel %vm2413_vm7, %v2530_v47, 0 }
 0x35f   : > { %2544 = vmatpush.bf16.xpose.msrb.mxu1 %v2535_v48 }
 0x365   : > { %v2527_v49 = vpop.permute.xlu2 %2526 }
 0x366   : > { %4978 = vmatmul.msk.bf16.vlgmr.msrb.gmra.mxu1 %vm2413_vm7, %v2527_v49 }
 0x388   : > { %v2429_v50 = vpop.f32.mrf.mxu1 }
 0x389   : > { %v2434_v51 = vmul.f32 0.125, %v2429_v50 }
 0x38b   : > { %v2437_v52 = vsel %vm2436_vm8, %v2434_v51, -inf }
 0x38c   : > { %2438 = vmax.xlane.f32.xlu0 %v2437_v52  ;;  %v6012_v52 = vld [vmem:[%s6375_s14] ss:$0 sm:$0xff] }
 0x390   : > { %v2431_v53 = vpop.f32.mrf.mxu1 }
 0x391   : > { %v2435_v54 = vmul.f32 0.125, %v2431_v53 }
 0x393   : > { %v2440_v55 = vsel %vm2436_vm8, %v2435_v54, -inf }
 0x394   : > { %2441 = vmax.xlane.f32.xlu1 %v2440_v55 }
 0x3e3   : > { %v2546_v56 = vpop.f32.mrf.mxu1 }
 0x3e4   : > { %v2551_v57 = vmul.f32 0.125, %v2546_v56 }
 0x3e6   : > { %v2553_v58 = vsel %vm2436_vm8, %v2551_v57, -inf }
 0x3e7   : > { %2554 = vmax.xlane.f32.xlu2 %v2553_v58 }
 0x3eb   : > { %v2548_v59 = vpop.f32.mrf.mxu1 }
 0x3ec   : > { %v2552_v60 = vmul.f32 0.125, %v2548_v59 }
 0x3ee   : > { %v2556_v61 = vsel %vm2436_vm8, %v2552_v60, -inf }
 0x3ef   : > { %2557 = vmax.xlane.f32.xlu0 %v2556_v61 }
 0x3ff   : > { %v2439_v62 = vpop.xlane.xlu0 %2438 }
 0x400   : > { %v2443_v63 = vsub.f32 %v2434_v51, %v2439_v62 }
 0x402   : > { %v2445_v0 = vmul.f32 1.442695, %v2443_v63 }
 0x404   : > { %6030 = vpow2.f32 %v2445_v0 }
 0x407   : > { %v2442_v1 = vpop.xlane.xlu1 %2441 }
 0x408   : > { %v2444_v2 = vsub.f32 %v2435_v54, %v2442_v1 }
 0x40a   : > { %v6031_v3 = vpop.eup %6030  ;;  %v2447_v4 = vmul.f32 1.442695, %v2444_v2 }
 0x40b   : > { %v2449_v5 = vsel %vm2436_vm8, %v6031_v3, 0.0 }
 0x40c   : > { %6032 = vpow2.f32 %v2447_v4  ;;  %2450 = vadd.xlane.f32.xlu1 %v2449_v5  ;;  %v5749_v4 = vld [vmem:[%s6390_s30 + $0x74] sm:$0xf0]  ;;  %v5748_v5 = vld [vmem:[%s6390_s30 + $0x74] sm:$0xf] }
 0x412   : > { %v6033_v6 = vpop.eup %6032 }
 0x413   : > { %v2452_v7 = vsel %vm2436_vm8, %v6033_v6, 0.0 }
 0x414   : > { %2453 = vadd.xlane.f32.xlu0 %v2452_v7  ;;  %v5057_v7 = vld [vmem:[%s6390_s30 + $0x78] sm:$0xf0] }
 0x45a   : > { %v2555_v8 = vpop.xlane.xlu2 %2554 }
 0x45b   : > { %v2559_v9 = vsub.f32 %v2551_v57, %v2555_v8  ;;  %v5060_v8 = vor.u32 %v5748_v5, %v5057_v7 }
 0x45d   : > { %v2561_v10 = vmul.f32 1.442695, %v2559_v9  ;;  %2793 = vmatpush.bf16.msra.mxu1 %v5060_v8  ;;  %v5047_v9 = vld [vmem:[%s6390_s30 + $0x60] sm:$0xf] }
 0x45f   : > { %6034 = vpow2.f32 %v2561_v10  ;;  %v5747_v10 = vld [vmem:[%s6390_s30 + $0x64] sm:$0xf0] }
 0x462   : > { %v2558_v11 = vpop.xlane.xlu0 %2557 }
 0x463   : > { %v2560_v12 = vsub.f32 %v2552_v60, %v2558_v11  ;;  %v5746_v11 = vld [vmem:[%s6390_s30 + $0x64] sm:$0xf] }
 0x465   : > { %v6035_v13 = vpop.eup %6034  ;;  %v2563_v14 = vmul.f32 1.442695, %v2560_v12  ;;  %v5048_v12 = vor.u32 %v5747_v10, %v5047_v9 }
 0x466   : > { %v2565_v15 = vsel %vm2436_vm8, %v6035_v13, 0.0 }
 0x467   : > { %6036 = vpow2.f32 %v2563_v14  ;;  %2566 = vadd.xlane.f32.xlu1 %v2565_v15  ;;  %v5039_v15 = vld [vmem:[%s6390_s30 + $0x50] sm:$0xf] }
 0x46d   : > { %v6037_v16 = vpop.eup %6036 }
 0x46e   : > { %v2568_v17 = vsel %vm2436_vm8, %v6037_v16, 0.0 }
 0x46f   : > { %2569 = vadd.xlane.f32.xlu0 %v2568_v17  ;;  %v5744_v17 = vld [vmem:[%s6390_s30 + $0x54] sm:$0xf] }
 0x47f   : > { %v2451_v18 = vpop.xlane.xlu1 %2450 }
 0x480   : > { %2577 = vrot.lane.b32.xlu1 %v6790_v34, %s7288_s18  ;;  %6038 = vrcp.f32 %v2451_v18 }
 0x486   : > { %v6039_v20 = vpop.eup %6038 }
 0x487   : > { %v2454_v19 = vpop.xlane.xlu0 %2453  ;;  %v2457_v22 = vmul.f32 %v6039_v20, %v6031_v3  ;;  %v5055_v3 = vld [vmem:[%s6390_s30 + $0x70] sm:$0xf] }
 0x488   : > { %6040 = vrcp.f32 %v2454_v19  ;;  %v5041_v19 = vld [vmem:[%s6390_s30 + $0x58] sm:$0xf0] }
 0x489   : > { %v5044_v20 = vor.u32 %v5744_v17, %v5041_v19 }
 0x48e   : > { %v6041_v21 = vpop.eup %6040 }
 0x48f   : > { %v2458_v24 = vmul.f32 %v6041_v21, %v6033_v6  ;;  %v5056_v6 = vor.u32 %v5749_v4, %v5055_v3  ;;  %v5031_v21 = vld [vmem:[%s6390_s30 + $0x40] sm:$0xf] }
 0x491   : > { %v2459_v25 = vpack.c.bf16 %v2458_v24, %v2457_v22  ;;  %2779 = vmatpush.bf16.msrb.mxu0 %v5056_v6  ;;  %v5743_v22 = vld [vmem:[%s6390_s30 + $0x44] sm:$0xf0]  ;;  %v5742_v24 = vld [vmem:[%s6390_s30 + $0x44] sm:$0xf] }
 0x493   : > { %4960 = vmatmul.msk.bf16.vlgmr.msra.gmra.mxu2 %vm2436_vm8, %v2459_v25  ;;  %v5032_v25 = vor.u32 %v5743_v22, %v5031_v21  ;;  %v5765_v21 = vld [vmem:[%s7347_s23 + $0x78] sm:$0xff]  ;;  %v5756_v22 = vld [vmem:[%s7347_s23 + $0x30] sm:$0xff] }
 0x495   : > { %2780 = vmatpush.bf16.msrb.mxu0 %v5048_v12 }
 0x4da   : > { %v2567_v27 = vpop.xlane.xlu1 %2566 }
 0x4e2   : > { %v2570_v40 = vpop.xlane.xlu0 %2569 }
 0x4e3   : > { %6042 = vrcp.f32 %v2570_v40  ;;  %v5036_v40 = vor.u32 %v5742_v24, %v5033_v26  ;;  %v5755_v24 = vld [vmem:[%s7347_s23 + $0x28] sm:$0xff]  ;;  %v5754_v26 = vld [vmem:[%s7347_s23 + $0x20] sm:$0xff] }
 0x4e4   : > { %6044 = vrcp.f32 %v2567_v27  ;;  %v5023_v27 = vld [vmem:[%s6390_s30 + $0x30] sm:$0xf] }
 0x4e9   : > { %v6043_v28 = vpop.eup %6042 }
 0x4ea   : > { %v6045_v29 = vpop.eup %6044  ;;  %v2574_v31 = vmul.f32 %v6043_v28, %v6037_v16  ;;  %v5745_v16 = vld [vmem:[%s6390_s30 + $0x54] sm:$0xf0] }
 0x4eb   : > { %v2573_v32 = vmul.f32 %v6045_v29, %v6035_v13  ;;  %v5049_v13 = vld [vmem:[%s6390_s30 + $0x68] sm:$0xf0]  ;;  %v5040_v18 = vor.u32 %v5745_v16, %v5039_v15  ;;  %v5741_v28 = vld [vmem:[%s6390_s30 + $0x34] sm:$0xf0]  ;;  %v5740_v29 = vld [vmem:[%s6390_s30 + $0x34] sm:$0xf] }
 0x4ec   : > { %v5052_v14 = vor.u32 %v5746_v11, %v5049_v13  ;;  %v6013_v11 = vld [vmem:[%s6380_s19] ss:$0 sm:$0xff] }
 0x4ed   : > { %v2575_v34 = vpack.c.bf16 %v2574_v31, %v2573_v32  ;;  %2781 = vmatpush.bf16.msrb.mxu0 %v5040_v18  ;;  %v5024_v31 = vor.u32 %v5741_v28, %v5023_v27  ;;  %v5025_v32 = vld [vmem:[%s6390_s30 + $0x38] sm:$0xf0]  ;;  %v6014_v16 = vld [vmem:[%s6385_s24] ss:$0 sm:$0xff] }
 0x4ee   : > { %2794 = vmatpush.bf16.msra.mxu1 %v5052_v14  ;;  %v5753_v27 = vld [vmem:[%s7347_s23 + $0x18] sm:$0xff] }
 0x4ef   : > { %v5761_v28 = vld [vmem:[%s7347_s23 + $0x58] sm:$0xff] }
 0x4f1   : > { %2782 = vmatpush.bf16.msrb.mxu0 %v5032_v25  ;;  %v5763_v25 = vld [vmem:[%s7347_s23 + $0x68] sm:$0xff] }
 0x4f2   : > { %v2578_v33 = vpop.permute.xlu1 %2577  ;;  %2795 = vmatpush.bf16.msra.mxu1 %v5044_v20 }
 0x4f3   : > { %2590 = vmatpush.bf16.msrb.mxu2 %v2578_v33  ;;  %v5028_v33 = vor.u32 %v5740_v29, %v5025_v32  ;;  %v5752_v29 = vld [vmem:[%s7347_s23 + $0x10] sm:$0xff]  ;;  %v1537_v32 = vld [vmem:[%s7348_s26] sm:$0x3]  ;;  %s7357_s26 = smov %s7356_s7 }
 0x4f5   : > { %2783 = vmatpush.bf16.msrb.mxu0 %v5024_v31  ;;  %v5760_v31 = vld [vmem:[%s7347_s23 + $0x50] sm:$0xff] }
 0x4f6   : > { %4979 = vmatmul.msk.bf16.vlgmr.msrb.gmra.mxu2 %vm2436_vm8, %v2575_v34  ;;  %2796 = vmatpush.bf16.msra.mxu1 %v5036_v40  ;;  %v5015_v34 = vld [vmem:[%s6390_s30 + $0x20] sm:$0xf] }
 0x4f7   : > { %v5016_v36 = vor.u32 %v5739_v44, %v5015_v34  ;;  %v5762_v40 = vld [vmem:[%s7347_s23 + $0x60] sm:$0xff]  ;;  %v5759_v34 = vld [vmem:[%s7347_s23 + $0x48] sm:$0xff]  ;;  %v2695_v44 = vperm.slane %v1537_v32, 0 }
 0x4f9   : > { %2784 = vmatpush.bf16.msrb.mxu0 %v5016_v36 }
 0x4fa   : > { %2797 = vmatpush.bf16.msra.mxu1 %v5028_v33  ;;  %v5751_v33 = vld [vmem:[%s7347_s23 + $0x8] sm:$0xff] }
 0x516   : > { %v2473_v39 = vpop.f32.mrf.mxu2 }
 0x51e   : > { %v2475_v41 = vpop.f32.mrf.mxu2 }
 0x51f   : > { %v2478_v42 = vpack.c.bf16 %v2475_v41, %v2473_v39  ;;  %v5020_v39 = vor.u32 %v5738_v35, %v5017_v38  ;;  %v5007_v41 = vld [vmem:[%s6390_s30 + $0x10] sm:$0xf]  ;;  %v2696_v35 = vperm.slane %v1537_v32, 1 }
 0x521   : > { %4977 = vmatmul.msk.bf16.vlgmr.msra.gmra.mxu3 %vm2413_vm7, %v2478_v42  ;;  %2798 = vmatpush.bf16.msra.mxu1 %v5020_v39  ;;  %v5737_v42 = vld [vmem:[%s6390_s30 + $0x14] sm:$0xf0]  ;;  %v5750_v39 = vld [vmem:[%s7347_s23] sm:$0xff] }
 0x522   : > { %v5008_v45 = vor.u32 %v5737_v42, %v5007_v41  ;;  %2955 = vmatpush.bf16.msra.mxu3 %v5765_v21  ;;  %v5758_v41 = vld [vmem:[%s7347_s23 + $0x40] sm:$0xff] }
 0x524   : > { %2785 = vmatpush.bf16.msrb.mxu0 %v5008_v45 }
 0x579   : > { %v2592_v47 = vpop.f32.mrf.mxu2 }
 0x581   : > { %v2594_v48 = vpop.f32.mrf.mxu2 }
 0x582   : > { %v2597_v49 = vpack.c.bf16 %v2594_v48, %v2592_v47  ;;  %v4999_v47 = vld [vmem:[%s6390_s30] sm:$0xf]  ;;  %v5735_v48 = vld [vmem:[%s6390_s30 + $0x4] sm:$0xf0] }
 0x584   : > { %4996 = vmatmul.msk.bf16.vlgmr.msrb.gmra.mxu3 %vm2413_vm7, %v2597_v49 }
 0x5a4   : > { %v2515_v50 = vpop.f32.mrf.mxu3 }
 0x5a5   : > { %v2523_v53 = vadd.f32 %v6012_v52, %v2515_v50  ;;  %v5012_v50 = vor.u32 %v5736_v43, %v5009_v46 }
 0x5a7   : > { %2799 = vmatpush.bf16.msra.mxu1 %v5012_v50 }
 0x5ac   : > { %v2517_v51 = vpop.f32.mrf.mxu3 }
 0x5ad   : > { %v2524_v57 = vadd.f32 %v6012_v52, %v2517_v51  ;;  %v5734_v51 = vld [vmem:[%s6390_s30 + $0x4] sm:$0xf]  ;;  %v5001_v52 = vld [vmem:[%s6390_s30 + $0x8] sm:$0xf0] }
 0x607   : > { %v2634_v54 = vpop.f32.mrf.mxu3 }
 0x608   : > { %v2639_v55 = vadd.f32 %v2634_v54, %v2523_v53  ;;  %v5000_v54 = vor.u32 %v5735_v48, %v4999_v47 }
 0x60a   : > { %v6823_v56 = vadd.f32 %v2639_v55, %v6714_v23  ;;  %v5004_v55 = vor.u32 %v5734_v51, %v5001_v52  ;;  %2786 = vmatpush.bf16.msrb.mxu0 %v5000_v54 }
 0x60c   : > { %2643 = vadd.xlane.f32.xlu0 %v6823_v56  ;;  %2800 = vmatpush.bf16.msra.mxu1 %v5004_v55 }
 0x60f   : > { %v2636_v58 = vpop.f32.mrf.mxu3 }
 0x610   : > { %v2640_v59 = vadd.f32 %v2636_v58, %v2524_v57 }
 0x612   : > { %v6827_v60 = vadd.f32 %v2640_v59, %v6718_v30 }
 0x614   : > { %2645 = vadd.xlane.f32.xlu0 %v6827_v60 }
 0x67f   : > { %v2644_v61 = vpop.xlane.xlu0 %2643 }
 0x680   : > { %v2647_v62 = vmul.f32 %v2644_v61, %v6721_v37 }
 0x682   : > { %v6832_v23 = vsub.f32 %v6823_v56, %v2647_v62 }
 0x684   : > { %v2651_v63 = vmul.f32 %v6832_v23, %v6832_v23 }
 0x686   : > { %2653 = vadd.xlane.f32.xlu2 %v2651_v63 }
 0x687   : > { %v2646_v0 = vpop.xlane.xlu0 %2645 }
 0x688   : > { %v2648_v30 = vmul.f32 %v2646_v0, %v6721_v37 }
 0x68a   : > { %v6838_v1 = vsub.f32 %v6827_v60, %v2648_v30 }
 0x68c   : > { %v2652_v2 = vmul.f32 %v6838_v1, %v6838_v1 }
 0x68e   : > { %2655 = vadd.xlane.f32.xlu0 %v2652_v2 }
 0x6f9   : > { %v2654_v49 = vpop.xlane.xlu2 %2653 }
 0x6fa   : > { %v2657_v53 = vmul.f32 %v2654_v49, %v6721_v37 }
 0x6fc   : > { %v2659_v57 = vadd.f32 1e-06, %v2657_v53 }
 0x6fe   : > { %6046 = vrsqrt.f32 %v2659_v57  ;;  %vm2667_vm10 = vweird.f32 %v2659_v57 }
 0x701   : > { %v2656_v58 = vpop.xlane.xlu0 %2655 }
 0x702   : > { %v2658_v59 = vmul.f32 %v2656_v58, %v6721_v37 }
 0x704   : > { %v6047_v61 = vpop.eup %6046  ;;  %v2660_v62 = vadd.f32 1e-06, %v2658_v59 }
 0x705   : > { %v2662_v63 = vmul.f32 %v6047_v61, %v2659_v57  ;;  %vm2668_vm9 = vweird.f32 %v6047_v61 }
 0x706   : > { %6048 = vrsqrt.f32 %v2660_v62  ;;  %vm2669_vm11 = vmor %vm2667_vm10, %vm2668_vm9  ;;  %vm2677_vm13 = vweird.f32 %v2660_v62 }
 0x707   : > { %v2663_v0 = vmul.f32 %v6047_v61, %v2662_v63 }
 0x709   : > { %v2664_v30 = vmul.f32 0.5, %v2663_v0 }
 0x70b   : > { %v2665_v2 = vsub.f32 1.5, %v2664_v30 }
 0x70c   : > { %v6049_v3 = vpop.eup %6048 }
 0x70d   : > { %v2666_v4 = vmul.f32 %v6047_v61, %v2665_v2  ;;  %v2672_v5 = vmul.f32 %v6049_v3, %v2660_v62  ;;  %vm2678_vm12 = vweird.f32 %v6049_v3 }
 0x70e   : > { %vm2679_vm14 = vmor %vm2677_vm13, %vm2678_vm12 }
 0x70f   : > { %v2673_v6 = vmul.f32 %v6049_v3, %v2672_v5  ;;  %v2670_v7 = vsel %vm2669_vm11, %v6047_v61, %v2666_v4 }
 0x710   : > { %v2681_v10 = vmul.f32 %v2670_v7, %v6832_v23  ;;  %v5757_v23 = vld [vmem:[%s7347_s23 + $0x38] sm:$0xff] }
 0x711   : > { %v2674_v8 = vmul.f32 0.5, %v2673_v6  ;;  %2941 = vmatpush.bf16.msra.mxu2 %v5757_v23 }
 0x712   : > { %v2686_v15 = vmul.f32 %v6013_v11, %v2681_v10 }
 0x713   : > { %v2675_v9 = vsub.f32 1.5, %v2674_v8 }
 0x714   : > { %v2691_v18 = vadd.f32 %v6014_v16, %v2686_v15 }
 0x715   : > { %v2676_v12 = vmul.f32 %v6049_v3, %v2675_v9  ;;  %2942 = vmatpush.bf16.msra.mxu2 %v5756_v22 }
 0x717   : > { %v2680_v13 = vsel %vm2679_vm14, %v6049_v3, %v2676_v12 }
 0x718   : > { %v2682_v14 = vmul.f32 %v2680_v13, %v6838_v1  ;;  %v5764_v1 = vld [vmem:[%s7347_s23 + $0x70] sm:$0xff] }
 0x719   : > { %2956 = vmatpush.bf16.msra.mxu3 %v5764_v1  ;;  %2943 = vmatpush.bf16.msra.mxu2 %v5755_v24 }
 0x71a   : > { %v2687_v17 = vmul.f32 %v6013_v11, %v2682_v14 }
 0x71c   : > { %v2692_v19 = vadd.f32 %v6014_v16, %v2687_v17 }
 0x71d   : > { %2957 = vmatpush.bf16.msra.mxu3 %v5763_v25  ;;  %2944 = vmatpush.bf16.msra.mxu2 %v5754_v26 }
 0x71e   : > { %v2693_v20 = vpack.c.bf16 %v2692_v19, %v2691_v18 }
 0x720   : > { %2787 = vmatmul.bf16.vlgmr.msrb.gmra.mxu0 %v2693_v20  ;;  %2801 = vmatmul.bf16.vlgmr.msra.gmra.mxu1 %v2693_v20 }
 0x721   : > { %2958 = vmatpush.bf16.msra.mxu3 %v5762_v40  ;;  %2945 = vmatpush.bf16.msra.mxu2 %v5753_v27  ;;  %v6015_v40 = vld [vmem:[%s7349_s16] ss:$0 sm:$0xff]  ;;  %s7358_s16 = sld [smem:[#allocation27_spill]] }
 0x725   : > { %2959 = vmatpush.bf16.msra.mxu3 %v5761_v28  ;;  %2946 = vmatpush.bf16.msra.mxu2 %v5752_v29 }
 0x729   : > { %2960 = vmatpush.bf16.msra.mxu3 %v5760_v31  ;;  %2947 = vmatpush.bf16.msra.mxu2 %v5751_v33 }
 0x72d   : > { %2961 = vmatpush.bf16.msra.mxu3 %v5759_v34  ;;  %2948 = vmatpush.bf16.msra.mxu2 %v5750_v39 }
 0x731   : > { %2962 = vmatpush.bf16.msra.mxu3 %v5758_v41 }
 0x79d   : > { %v2788_v36 = vpop.f32.mrf.mxu0  ;;  %v2802_v38 = vpop.f32.mrf.mxu1 }
 0x79e   : > { %v2789_v42 = vadd.f32 %v2788_v36, %v2695_v44  ;;  %v2803_v43 = vadd.f32 %v2802_v38, %v2696_v35 }
 0x7a0   : > { %v2807_v45 = vmul.f32 %v2789_v42, %v2789_v42  ;;  %v2808_v46 = vmul.f32 %v2803_v43, %v2803_v43 }
 0x7a2   : > { %v2811_v47 = vmul.f32 %v2807_v45, %v2789_v42  ;;  %v2812_v48 = vmul.f32 %v2808_v46, %v2803_v43  ;;  %v5787_v45 = vld [vmem:[%s7350_s15 + $0xac] sm:$0xf] }
 0x7a4   : > { %v2815_v49 = vmul.f32 0.044715, %v2811_v47  ;;  %v2816_v50 = vmul.f32 0.044715, %v2812_v48  ;;  %v5213_v47 = vld [vmem:[%s7350_s15 + $0xb4] sm:$0xf0] }
 0x7a5   : > { %v2790_v51 = vpop.f32.mrf.mxu0  ;;  %v2804_v52 = vpop.f32.mrf.mxu1  ;;  %v5219_v48 = vld [vmem:[%s7350_s15 + $0xb0] sm:$0xf] }
 0x7a6   : > { %v2819_v53 = vadd.f32 %v2815_v49, %v2789_v42  ;;  %v2820_v54 = vadd.f32 %v2816_v50, %v2803_v43  ;;  %v2791_v55 = vadd.f32 %v2790_v51, %v2695_v44  ;;  %v2805_v57 = vadd.f32 %v2804_v52, %v2696_v35  ;;  %v5789_v49 = vld [vmem:[%s7350_s15 + $0xb8] sm:$0xf0]  ;;  %v5199_v52 = vld [vmem:[%s7350_s15 + $0x90] sm:$0xf] }
 0x7a7   : > { %v5216_v50 = vor.u32 %v5787_v45, %v5213_v47  ;;  %v5220_v51 = vor.u32 %v5789_v49, %v5219_v48  ;;  %v5127_v47 = vld [vmem:[%s7350_s15] sm:$0xf]  ;;  %v5767_v48 = vld [vmem:[%s7350_s15 + $0x8] sm:$0xf0]  ;;  %v5766_v49 = vld [vmem:[%s7350_s15 + $0x4] sm:$0xf] }
 0x7a8   : > { %v2823_v58 = vmul.f32 0.7978846, %v2819_v53  ;;  %v2809_v59 = vmul.f32 %v2791_v55, %v2791_v55  ;;  %v2810_v61 = vmul.f32 %v2805_v57, %v2805_v57  ;;  %v2824_v62 = vmul.f32 0.7978846, %v2820_v54  ;;  %v5785_v53 = vld [vmem:[%s7350_s15 + $0x98] sm:$0xf0] }
 0x7a9   : > { %3176 = vmatpush.bf16.msrb.mxu1 %v5216_v50  ;;  %3190 = vmatpush.bf16.msrb.mxu2 %v5220_v51  ;;  %v5784_v54 = vld [vmem:[%s7350_s15 + $0x94] sm:$0xf]  ;;  %v5128_v51 = vor.u32 %v5767_v48, %v5127_v47 }
 0x7aa   : > { %v2813_v63 = vmul.f32 %v2809_v59, %v2791_v55  ;;  %v2814_v0 = vmul.f32 %v2810_v61, %v2805_v57  ;;  %6050 = vtanh.f32 %v2823_v58  ;;  %v5207_v58 = vld [vmem:[%s7350_s15 + $0x98] sm:$0xf]  ;;  %v5786_v59 = vld [vmem:[%s7350_s15 + $0xa0] sm:$0xf0] }
 0x7ab   : > { %6052 = vtanh.f32 %v2824_v62  ;;  %v5208_v62 = vor.u32 %v5786_v59, %v5207_v58 }
 0x7ac   : > { %v2817_v30 = vmul.f32 0.044715, %v2813_v63  ;;  %v2818_v2 = vmul.f32 0.044715, %v2814_v0  ;;  %v5187_v63 = vld [vmem:[%s7350_s15 + $0x78] sm:$0xf] }
 0x7ad   : > { %3191 = vmatpush.bf16.msrb.mxu2 %v5208_v62  ;;  %v5782_v0 = vld [vmem:[%s7350_s15 + $0x80] sm:$0xf0] }
 0x7ae   : > { %v2821_v3 = vadd.f32 %v2817_v30, %v2791_v55  ;;  %v2822_v4 = vadd.f32 %v2818_v2, %v2805_v57  ;;  %v5781_v30 = vld [vmem:[%s7350_s15 + $0x7c] sm:$0xf]  ;;  %v5188_v2 = vor.u32 %v5782_v0, %v5187_v63 }
 0x7b0   : > { %v2825_v5 = vmul.f32 0.7978846, %v2821_v3  ;;  %v2826_v6 = vmul.f32 0.7978846, %v2822_v4  ;;  %v6051_v7 = vpop.eup %6050  ;;  %v5189_v3 = vld [vmem:[%s7350_s15 + $0x84] sm:$0xf0] }
 0x7b1   : > { %v6053_v8 = vpop.eup %6052  ;;  %v2831_v9 = vadd.f32 1.0, %v6051_v7  ;;  %v5195_v4 = vld [vmem:[%s7350_s15 + $0x80] sm:$0xf] }
 0x7b2   : > { %6054 = vtanh.f32 %v2825_v5  ;;  %v2832_v10 = vadd.f32 1.0, %v6053_v8  ;;  %v5783_v5 = vld [vmem:[%s7350_s15 + $0x88] sm:$0xf0]  ;;  %v5175_v8 = vld [vmem:[%s7350_s15 + $0x60] sm:$0xf] }
 0x7b3   : > { %6056 = vtanh.f32 %v2826_v6  ;;  %v2835_v13 = vmul.f32 0.5, %v2831_v9  ;;  %v5192_v6 = vor.u32 %v5781_v30, %v5189_v3  ;;  %v5196_v7 = vor.u32 %v5783_v5, %v5195_v4  ;;  %v5779_v9 = vld [vmem:[%s7350_s15 + $0x68] sm:$0xf0] }
 0x7b4   : > { %v2836_v15 = vmul.f32 0.5, %v2832_v10  ;;  %v5778_v10 = vld [vmem:[%s7350_s15 + $0x64] sm:$0xf] }
 0x7b5   : > { %v2839_v19 = vmul.f32 %v2835_v13, %v2789_v42  ;;  %v5211_v42 = vld [vmem:[%s7350_s15 + $0xa8] sm:$0xf]  ;;  %3192 = vmatpush.bf16.msrb.mxu2 %v5196_v7 }
 0x7b6   : > { %v2840_v23 = vmul.f32 %v2836_v15, %v2803_v43  ;;  %v5788_v43 = vld [vmem:[%s7350_s15 + $0xb0] sm:$0xf0]  ;;  %v5183_v13 = vld [vmem:[%s7350_s15 + $0x68] sm:$0xf] }
 0x7b7   : > { %v5212_v46 = vor.u32 %v5788_v43, %v5211_v42  ;;  %v5147_v42 = vld [vmem:[%s7350_s15 + $0x20] sm:$0xf]  ;;  %v5771_v43 = vld [vmem:[%s7350_s15 + $0x28] sm:$0xf0] }
 0x7b8   : > { %v6055_v11 = vpop.eup %6054 }
 0x7b9   : > { %v6057_v12 = vpop.eup %6056  ;;  %v2833_v14 = vadd.f32 1.0, %v6055_v11  ;;  %3162 = vmatpush.bf16.msra.mxu0 %v5212_v46  ;;  %v5176_v11 = vor.u32 %v5779_v9, %v5175_v8  ;;  %v5148_v46 = vor.u32 %v5771_v43, %v5147_v42 }
 0x7ba   : > { %v2834_v16 = vadd.f32 1.0, %v6057_v12  ;;  %v5177_v12 = vld [vmem:[%s7350_s15 + $0x6c] sm:$0xf0] }
 0x7bb   : > { %v2837_v17 = vmul.f32 0.5, %v2833_v14  ;;  %v5780_v14 = vld [vmem:[%s7350_s15 + $0x70] sm:$0xf0]  ;;  %v5180_v15 = vor.u32 %v5778_v10, %v5177_v12 }
 0x7bc   : > { %v2838_v18 = vmul.f32 0.5, %v2834_v16  ;;  %v5184_v16 = vor.u32 %v5780_v14, %v5183_v13  ;;  %v6016_v13 = vld [vmem:[%s7351_s10] ss:$0 sm:$0xff]  ;;  %s7359_s10 = sld [smem:[#allocation28_spill]] }
 0x7bd   : > { %v2841_v20 = vmul.f32 %v2837_v17, %v2791_v55  ;;  %v5200_v55 = vor.u32 %v5785_v53, %v5199_v52  ;;  %v5163_v17 = vld [vmem:[%s7350_s15 + $0x48] sm:$0xf]  ;;  %v5129_v52 = vld [vmem:[%s7350_s15 + $0xc] sm:$0xf0] }
 0x7be   : > { %v2842_v21 = vmul.f32 %v2838_v18, %v2805_v57  ;;  %v5201_v57 = vld [vmem:[%s7350_s15 + $0x9c] sm:$0xf0]  ;;  %3193 = vmatpush.bf16.msrb.mxu2 %v5184_v16  ;;  %v5776_v18 = vld [vmem:[%s7350_s15 + $0x50] sm:$0xf0]  ;;  %v5135_v53 = vld [vmem:[%s7350_s15 + $0x8] sm:$0xf] }
 0x7bf   : > { %v2843_v22 = vpack.c.bf16 %v2841_v20, %v2839_v19  ;;  %v5204_v61 = vor.u32 %v5784_v54, %v5201_v57  ;;  %3163 = vmatpush.bf16.msra.mxu0 %v5200_v55  ;;  %v5775_v19 = vld [vmem:[%s7350_s15 + $0x4c] sm:$0xf]  ;;  %v5164_v20 = vor.u32 %v5776_v18, %v5163_v17  ;;  %v5768_v54 = vld [vmem:[%s7350_s15 + $0x10] sm:$0xf0]  ;;  %v5132_v57 = vor.u32 %v5766_v49, %v5129_v52  ;;  %v6017_v18 = vld [vmem:[%s7352_s11] ss:$0 sm:$0xff] }
 0x7c0   : > { %v2844_v1 = vpack.c.bf16 %v2842_v21, %v2840_v23  ;;  %v5165_v23 = vld [vmem:[%s7350_s15 + $0x54] sm:$0xf0]  ;;  %v5171_v21 = vld [vmem:[%s7350_s15 + $0x50] sm:$0xf]  ;;  %v5136_v58 = vor.u32 %v5768_v54, %v5135_v53  ;;  %s7360_s11 = sld [smem:[#allocation31_spill]] }
 0x7c1   : > { %2949 = vmatmul.bf16.vlgmr.msra.gmra.mxu2 %v2843_v22  ;;  %3177 = vmatpush.bf16.msrb.mxu1 %v5204_v61  ;;  %v5777_v22 = vld [vmem:[%s7350_s15 + $0x58] sm:$0xf0] }
 0x7c2   : > { %2963 = vmatmul.bf16.vlgmr.msra.gmra.mxu3 %v2844_v1  ;;  %v5168_v1 = vor.u32 %v5775_v19, %v5165_v23 }
 0x7c3   : > { %3164 = vmatpush.bf16.msra.mxu0 %v5188_v2 }
 0x7c5   : > { %3178 = vmatpush.bf16.msrb.mxu1 %v5192_v6 }
 0x7c7   : > { %3165 = vmatpush.bf16.msra.mxu0 %v5176_v11 }
 0x7c9   : > { %3179 = vmatpush.bf16.msrb.mxu1 %v5180_v15 }
 0x7cb   : > { %3166 = vmatpush.bf16.msra.mxu0 %v5164_v20 }
 0x7cd   : > { %3180 = vmatpush.bf16.msrb.mxu1 %v5168_v1 }
 0x844   : > { %v2950_v24 = vpop.f32.mrf.mxu2 }
 0x845   : > { %v2964_v25 = vpop.f32.mrf.mxu3 }
 0x846   : > { %v2965_v26 = vadd.f32 %v2964_v25, %v2950_v24  ;;  %v5172_v24 = vor.u32 %v5777_v22, %v5171_v21  ;;  %v5151_v25 = vld [vmem:[%s7350_s15 + $0x30] sm:$0xf] }
 0x848   : > { %v2969_v27 = vadd.f32 %v2965_v26, %v6823_v56  ;;  %3194 = vmatpush.bf16.msrb.mxu2 %v5172_v24  ;;  %v5773_v26 = vld [vmem:[%s7350_s15 + $0x38] sm:$0xf0] }
 0x84a   : > { %v6899_v28 = vadd.f32 %v6015_v40, %v2969_v27  ;;  %v5152_v27 = vor.u32 %v5773_v26, %v5151_v25 }
 0x84c   : > { %2976 = vadd.xlane.f32.xlu1 %v6899_v28  ;;  %v2952_v29 = vpop.f32.mrf.mxu2  ;;  %3167 = vmatpush.bf16.msra.mxu0 %v5152_v27 }
 0x84d   : > { %v2966_v31 = vpop.f32.mrf.mxu3 }
 0x84e   : > { %v2967_v32 = vadd.f32 %v2966_v31, %v2952_v29  ;;  %v5153_v29 = vld [vmem:[%s7350_s15 + $0x3c] sm:$0xf0]  ;;  %v5159_v31 = vld [vmem:[%s7350_s15 + $0x38] sm:$0xf] }
 0x850   : > { %v2970_v33 = vadd.f32 %v2967_v32, %v6827_v60  ;;  %v5774_v32 = vld [vmem:[%s7350_s15 + $0x40] sm:$0xf0] }
 0x852   : > { %v6903_v34 = vadd.f32 %v6015_v40, %v2970_v33  ;;  %v5772_v40 = vld [vmem:[%s7350_s15 + $0x34] sm:$0xf] }
 0x853   : > { %v5156_v33 = vor.u32 %v5772_v40, %v5153_v29 }
 0x854   : > { %2978 = vadd.xlane.f32.xlu2 %v6903_v34 }
 0x855   : > { %3181 = vmatpush.bf16.msrb.mxu1 %v5156_v33 }
 0x8bf   : > { %v2977_v44 = vpop.xlane.xlu1 %2976 }
 0x8c0   : > { %v2980_v56 = vmul.f32 %v2977_v44, %v6721_v37  ;;  %v5160_v44 = vor.u32 %v5774_v32, %v5159_v31 }
 0x8c2   : > { %v6908_v35 = vsub.f32 %v6899_v28, %v2980_v56  ;;  %3195 = vmatpush.bf16.msrb.mxu2 %v5160_v44  ;;  %v5139_v56 = vld [vmem:[%s7350_s15 + $0x18] sm:$0xf] }
 0x8c4   : > { %v2984_v36 = vmul.f32 %v6908_v35, %v6908_v35 }
 0x8c6   : > { %2986 = vadd.xlane.f32.xlu0 %v2984_v36  ;;  %v5770_v36 = vld [vmem:[%s7350_s15 + $0x20] sm:$0xf0]  ;;  %3196 = vmatpush.bf16.msrb.mxu2 %v5148_v46 }
 0x8c7   : > { %v2979_v38 = vpop.xlane.xlu2 %2978 }
 0x8c8   : > { %v2981_v60 = vmul.f32 %v2979_v38, %v6721_v37  ;;  %v5769_v38 = vld [vmem:[%s7350_s15 + $0x1c] sm:$0xf] }
 0x8ca   : > { %v6914_v39 = vsub.f32 %v6903_v34, %v2981_v60  ;;  %v5140_v60 = vor.u32 %v5770_v36, %v5139_v56  ;;  %3197 = vmatpush.bf16.msrb.mxu2 %v5136_v58 }
 0x8cc   : > { %v2985_v41 = vmul.f32 %v6914_v39, %v6914_v39  ;;  %3168 = vmatpush.bf16.msra.mxu0 %v5140_v60 }
 0x8ce   : > { %2988 = vadd.xlane.f32.xlu2 %v2985_v41  ;;  %v5141_v41 = vld [vmem:[%s7350_s15 + $0x24] sm:$0xf0] }
 0x8cf   : > { %v5144_v45 = vor.u32 %v5769_v38, %v5141_v41 }
 0x8d0   : > { %3169 = vmatpush.bf16.msra.mxu0 %v5128_v51 }
 0x8d1   : > { %3182 = vmatpush.bf16.msrb.mxu1 %v5144_v45 }
 0x8d5   : > { %3183 = vmatpush.bf16.msrb.mxu1 %v5132_v57 }
 0x939   : > { %v2987_v50 = vpop.xlane.xlu0 %2986 }
 0x93a   : > { %v2990_v55 = vmul.f32 %v2987_v50, %v6721_v37 }
 0x93c   : > { %v2992_v59 = vadd.f32 1e-06, %v2990_v55 }
 0x93e   : > { %6058 = vrsqrt.f32 %v2992_v59  ;;  %vm3000_vm0 = vweird.f32 %v2992_v59 }
 0x941   : > { %v2989_v61 = vpop.xlane.xlu2 %2988 }
 0x942   : > { %v2991_v62 = vmul.f32 %v2989_v61, %v6721_v37 }
 0x944   : > { %v6059_v63 = vpop.eup %6058  ;;  %v2993_v0 = vadd.f32 1e-06, %v2991_v62 }
 0x945   : > { %v2995_v30 = vmul.f32 %v6059_v63, %v2992_v59  ;;  %vm3001_vm15 = vweird.f32 %v6059_v63 }
 0x946   : > { %6060 = vrsqrt.f32 %v2993_v0  ;;  %vm3002_vm1 = vmor %vm3000_vm0, %vm3001_vm15  ;;  %vm3010_vm3 = vweird.f32 %v2993_v0 }
 0x947   : > { %v2996_v2 = vmul.f32 %v6059_v63, %v2995_v30 }
 0x949   : > { %v2997_v3 = vmul.f32 0.5, %v2996_v2 }
 0x94b   : > { %v2998_v4 = vsub.f32 1.5, %v2997_v3 }
 0x94c   : > { %v6061_v5 = vpop.eup %6060 }
 0x94d   : > { %v2999_v6 = vmul.f32 %v6059_v63, %v2998_v4  ;;  %v3005_v7 = vmul.f32 %v6061_v5, %v2993_v0  ;;  %vm3011_vm2 = vweird.f32 %v6061_v5 }
 0x94e   : > { %vm3012_vm4 = vmor %vm3010_vm3, %vm3011_vm2  ;;  %vm4015_vm3 = vcmask 122880  }
 0x94f   : > { %v3006_v8 = vmul.f32 %v6061_v5, %v3005_v7  ;;  %v3003_v9 = vsel %vm3002_vm1, %v6059_v63, %v2999_v6 }
 0x950   : > { %v3014_v12 = vmul.f32 %v3003_v9, %v6908_v35  ;;  %v1605_v35 = vld [vmem:[%s7353_s28] sm:$0x7]  ;;  %s7361_s28 = sld [smem:[#allocation30_spill]] }
 0x951   : > { %v3007_v10 = vmul.f32 0.5, %v3006_v8  ;;  %v3028_v24 = vperm.slane %v1605_v35, 0  ;;  %v3029_v25 = vperm.slane %v1605_v35, 1  ;;  %v3030_v56 = vperm.slane %v1605_v35, 2 }
 0x952   : > { %v3019_v17 = vmul.f32 %v6016_v13, %v3014_v12 }
 0x953   : > { %v3008_v11 = vsub.f32 1.5, %v3007_v10 }
 0x954   : > { %v3024_v20 = vadd.f32 %v6017_v18, %v3019_v17 }
 0x955   : > { %v3009_v14 = vmul.f32 %v6061_v5, %v3008_v11 }
 0x957   : > { %v3013_v15 = vsel %vm3012_vm4, %v6061_v5, %v3009_v14 }
 0x958   : > { %v3015_v16 = vmul.f32 %v3013_v15, %v6914_v39 }
 0x95a   : > { %v3020_v19 = vmul.f32 %v6016_v13, %v3015_v16 }
 0x95c   : > { %v3025_v23 = vadd.f32 %v6017_v18, %v3020_v19  ;;  %v5797_v18 = vld [vmem:[%s7354_s27 + $0x38] sm:$0xff] }
 0x95e   : > { %v3026_v21 = vpack.c.bf16 %v3025_v23, %v3024_v20 }
 0x960   : > { %3170 = vmatmul.bf16.vlgmr.msra.gmra.mxu0 %v3026_v21  ;;  %3184 = vmatmul.bf16.vlgmr.msrb.gmra.mxu1 %v3026_v21 }
 0x961   : > { %3198 = vmatmul.bf16.vlgmr.msrb.gmra.mxu2 %v3026_v21 }
 0x9dd   : > { %v3171_v22 = vpop.f32.mrf.mxu0  ;;  %v3185_v1 = vpop.f32.mrf.mxu1 }
 0x9de   : > { %v3172_v29 = vadd.f32 %v3171_v22, %v3028_v24  ;;  %v3186_v31 = vadd.f32 %v3185_v1, %v3029_v25 }
 0x9e4   : > { %v3199_v26 = vpop.f32.mrf.mxu2 }
 0x9e5   : > { %v3173_v40 = vpop.f32.mrf.mxu0  ;;  %v3187_v27 = vpop.f32.mrf.mxu1  ;;  %v3200_v60 = vadd.f32 %v3199_v26, %v3030_v56 }
 0x9e6   : > { %v3174_v39 = vadd.f32 %v3173_v40, %v3028_v24  ;;  %v3188_v32 = vadd.f32 %v3187_v27, %v3029_v25 }
 0x9e8   : > { %v3204_v33 = vpack.c.bf16 %v3174_v39, %v3172_v29  ;;  %v3205_v44 = vpack.c.bf16 %v3188_v32, %v3186_v31  ;;  %v5796_v39 = vld [vmem:[%s7354_s27 + $0x30] sm:$0xff]  ;;  %v5793_v32 = vld [vmem:[%s7354_s27 + $0x18] sm:$0xff] }
 0x9e9   : > { %3301 = vmatpush.bf16.msrb.mxu0 %v5793_v32  ;;  %v5802_v32 = vld [vmem:[%s7357_s26 + $0x24] sm:$0xf] }
 0x9ea   : > { %3320 = vrot.lane.b32.xlu0 %v3205_v44, %s7288_s18  ;;  %3317 = vrot.lane.b32.xlu2 %v3204_v33, %s7288_s18  ;;  %v3210_v36 = vsel %vm2413_vm7, %v3205_v44, 0  ;;  %v5792_v44 = vld [vmem:[%s7354_s27 + $0x10] sm:$0xff] }
 0x9eb   : > { %3219 = vmatpush.bf16.xpose.msrb.mxu3 %v3210_v36  ;;  %v5791_v36 = vld [vmem:[%s7354_s27 + $0x8] sm:$0xff] }
 0x9ec   : > { %v3201_v38 = vpop.f32.mrf.mxu2 }
 0x9ed   : > { %v3202_v41 = vadd.f32 %v3201_v38, %v3030_v56  ;;  %v5794_v56 = vld [vmem:[%s7354_s27 + $0x20] sm:$0xff]  ;;  %3302 = vmatpush.bf16.msrb.mxu0 %v5792_v44  ;;  %v5279_v44 = vld [vmem:[%s7357_s26 + $0x28] sm:$0xf0] }
 0x9ee   : > { %v5790_v38 = vld [vmem:[%s7354_s27] sm:$0xff] }
 0x9ef   : > { %v3251_v42 = vpack.c.bf16 %v3202_v41, %v3200_v60 }
 0x9f1   : > { %3303 = vmatpush.bf16.msrb.mxu0 %v5791_v36  ;;  %v5269_v36 = vld [vmem:[%s7357_s26 + $0x10] sm:$0xf] }
 0x9f2   : > { %5221 = vmatmul.msk.bf16.vlgmr.msrb.gmra.mxu3 %vm2413_vm7, %v3204_v33  ;;  %v5795_v33 = vld [vmem:[%s7354_s27 + $0x28] sm:$0xff] }
 0x9f3   : > { %3262 = vmatpush.bf16.msra.mxu3 %v3251_v42 }
 0x9f5   : > { %3304 = vmatpush.bf16.msrb.mxu0 %v5790_v38  ;;  %v5801_v38 = vld [vmem:[%s7357_s26 + $0x14] sm:$0xf0] }
 0x9f7   : > { %3420 = vmatpush.bf16.msrb.mxu3 %v5797_v18  ;;  %v5303_v18 = vld [vmem:[%s7357_s26 + $0x58] sm:$0xf0] }
 0x9fb   : > { %3421 = vmatpush.bf16.msrb.mxu3 %v5796_v39  ;;  %v5803_v39 = vld [vmem:[%s7357_s26 + $0x24] sm:$0xf0] }
 0x9ff   : > { %3422 = vmatpush.bf16.msrb.mxu3 %v5795_v33 }
 0xa03   : > { %3423 = vmatpush.bf16.msrb.mxu3 %v5794_v56  ;;  %v5282_v56 = vor.u32 %v5802_v32, %v5279_v44 }
 0xa44   : > { %v3318_v46 = vpop.permute.xlu2 %3317 }
 0xa5c   : > { %v3321_v43 = vpop.permute.xlu0 %3320 }
 0xa5d   : > { %v3326_v45 = vsel %vm2413_vm7, %v3321_v43, 0 }
 0xa5e   : > { %3335 = vmatpush.bf16.xpose.msra.mxu1 %v3326_v45 }
 0xa65   : > { %5240 = vmatmul.msk.bf16.vlgmr.msra.gmra.mxu1 %vm2413_vm7, %v3318_v46 }
 0xa75   : > { %v3221_v47 = vpop.f32.mrf.mxu3 }
 0xa76   : > { %v3226_v48 = vmul.f32 0.125, %v3221_v47  ;;  %v6018_v47 = vld [vmem:[%s7355_s2] ss:$0 sm:$0xff]  ;;  %s7362_s2 = sld [smem:[#allocation32_spill]] }
 0xa78   : > { %v3228_v49 = vsel %vm2436_vm8, %v3226_v48, -inf }
 0xa79   : > { %3229 = vmax.xlane.f32.xlu1 %v3228_v49 }
 0xa7d   : > { %v3223_v50 = vpop.f32.mrf.mxu3 }
 0xa7e   : > { %v3227_v51 = vmul.f32 0.125, %v3223_v50 }
 0xa80   : > { %v3231_v52 = vsel %vm2436_vm8, %v3227_v51, -inf }
 0xa81   : > { %3232 = vmax.xlane.f32.xlu1 %v3231_v52 }
 0xae2   : > { %v3337_v53 = vpop.f32.mrf.mxu1 }
 0xae3   : > { %v3342_v54 = vmul.f32 0.125, %v3337_v53 }
 0xae5   : > { %v3344_v55 = vsel %vm2436_vm8, %v3342_v54, -inf }
 0xae6   : > { %3345 = vmax.xlane.f32.xlu0 %v3344_v55 }
 0xaea   : > { %v3339_v57 = vpop.f32.mrf.mxu1 }
 0xaeb   : > { %v3343_v58 = vmul.f32 0.125, %v3339_v57 }
 0xaec   : > { %v3230_v59 = vpop.xlane.xlu1 %3229 }
 0xaed   : > { %v3347_v61 = vsel %vm2436_vm8, %v3343_v58, -inf  ;;  %v3234_v9 = vsub.f32 %v3226_v48, %v3230_v59 }
 0xaee   : > { %3348 = vmax.xlane.f32.xlu2 %v3347_v61 }
 0xaef   : > { %v3236_v12 = vmul.f32 1.442695, %v3234_v9  ;;  %v5811_v9 = vld [vmem:[%s7357_s26 + $0x64] sm:$0xf0] }
 0xaf4   : > { %v3233_v62 = vpop.xlane.xlu1 %3232 }
 0xaf5   : > { %v3235_v63 = vsub.f32 %v3227_v51, %v3233_v62 }
 0xaf7   : > { %v3238_v0 = vmul.f32 1.442695, %v3235_v63 }
 0xaf9   : > { %6062 = vpow2.f32 %v3238_v0 }
 0xaff   : > { %v6063_v30 = vpop.eup %6062 }
 0xb00   : > { %v3243_v2 = vsel %vm2436_vm8, %v6063_v30, 0.0 }
 0xb01   : > { %3244 = vadd.xlane.f32.xlu0 %v3243_v2  ;;  %v5317_v2 = vld [vmem:[%s7356_s7 + $0x70] sm:$0xf]  ;;  %s7363_s7 = sld [smem:[#allocation38_spill]] }
 0xb06   : > { %3368 = vrot.lane.b32.xlu2 %v3251_v42, %s7288_s18 }
 0xb59   : > { %v3346_v3 = vpop.xlane.xlu0 %3345 }
 0xb5a   : > { %v3350_v4 = vsub.f32 %v3342_v54, %v3346_v3  ;;  %v5813_v3 = vld [vmem:[%s7357_s26 + $0x74] sm:$0xf0] }
 0xb5c   : > { %v3352_v5 = vmul.f32 1.442695, %v3350_v4  ;;  %v5812_v4 = vld [vmem:[%s7357_s26 + $0x74] sm:$0xf] }
 0xb5e   : > { %6064 = vpow2.f32 %v3352_v5  ;;  %v5318_v5 = vor.u32 %v5813_v3, %v5317_v2 }
 0xb60   : > { %3570 = vmatpush.bf16.msra.mxu0 %v5318_v5 }
 0xb61   : > { %v3349_v6 = vpop.xlane.xlu2 %3348 }
 0xb62   : > { %v3351_v7 = vsub.f32 %v3343_v58, %v3349_v6  ;;  %v5319_v6 = vld [vmem:[%s7357_s26 + $0x78] sm:$0xf0] }
 0xb64   : > { %v6065_v8 = vpop.eup %6064  ;;  %v3354_v10 = vmul.f32 1.442695, %v3351_v7  ;;  %v5322_v7 = vor.u32 %v5812_v4, %v5319_v6 }
 0xb65   : > { %v3356_v11 = vsel %vm2436_vm8, %v6065_v8, 0.0 }
 0xb66   : > { %6066 = vpow2.f32 %v3354_v10  ;;  %3357 = vadd.xlane.f32.xlu1 %v3356_v11  ;;  %3584 = vmatpush.bf16.msrb.mxu1 %v5322_v7  ;;  %v5810_v10 = vld [vmem:[%s7357_s26 + $0x64] sm:$0xf] }
 0xb67   : > { %6068 = vpow2.f32 %v3236_v12  ;;  %v5311_v12 = vld [vmem:[%s7357_s26 + $0x68] sm:$0xf0] }
 0xb69   : > { %v3369_v13 = vpop.permute.xlu2 %3368 }
 0xb6a   : > { %3381 = vmatpush.bf16.msra.mxu2 %v3369_v13  ;;  %v5314_v13 = vor.u32 %v5810_v10, %v5311_v12  ;;  %v6019_v10 = vld [vmem:[%s7358_s16] ss:$0 sm:$0xff]  ;;  %s7364_s16 = smov %s7363_s7 }
 0xb6c   : > { %v6067_v14 = vpop.eup %6066  ;;  %3585 = vmatpush.bf16.msrb.mxu1 %v5314_v13 }
 0xb6d   : > { %v3359_v15 = vsel %vm2436_vm8, %v6067_v14, 0.0  ;;  %v6069_v16 = vpop.eup %6068 }
 0xb6e   : > { %3360 = vadd.xlane.f32.xlu1 %v3359_v15  ;;  %v3240_v17 = vsel %vm2436_vm8, %v6069_v16, 0.0  ;;  %v5809_v15 = vld [vmem:[%s7357_s26 + $0x54] sm:$0xf0] }
 0xb74   : > { %v3245_v23 = vpop.xlane.xlu0 %3244 }
 0xb76   : > { %3241 = vadd.xlane.f32.xlu1 %v3240_v17 }
 0xbd9   : > { %v3358_v19 = vpop.xlane.xlu1 %3357 }
 0xbda   : > { %6070 = vrcp.f32 %v3358_v19 }
 0xbe0   : > { %v6071_v21 = vpop.eup %6070 }
 0xbe1   : > { %v3361_v20 = vpop.xlane.xlu1 %3360  ;;  %v3364_v1 = vmul.f32 %v6071_v21, %v6065_v8  ;;  %v5309_v8 = vld [vmem:[%s7357_s26 + $0x60] sm:$0xf]  ;;  %v5806_v21 = vld [vmem:[%s7357_s26 + $0x44] sm:$0xf] }
 0xbe2   : > { %6072 = vrcp.f32 %v3361_v20  ;;  %v5310_v11 = vor.u32 %v5811_v9, %v5309_v8  ;;  %v5293_v20 = vld [vmem:[%s7357_s26 + $0x40] sm:$0xf] }
 0xbe3   : > { %6074 = vrcp.f32 %v3245_v23  ;;  %v5807_v23 = vld [vmem:[%s7357_s26 + $0x44] sm:$0xf0] }
 0xbe4   : > { %3571 = vmatpush.bf16.msra.mxu0 %v5310_v11 }
 0xbe8   : > { %v6073_v22 = vpop.eup %6072 }
 0xbe9   : > { %v3365_v35 = vmul.f32 %v6073_v22, %v6067_v14  ;;  %v3242_v24 = vpop.xlane.xlu1 %3241  ;;  %v6075_v26 = vpop.eup %6074  ;;  %v5301_v14 = vld [vmem:[%s7357_s26 + $0x50] sm:$0xf]  ;;  %v5294_v22 = vor.u32 %v5807_v23, %v5293_v20  ;;  %v5829_v20 = vld [vmem:[%s7360_s11 + $0x78] sm:$0xff] }
 0xbea   : > { %6076 = vrcp.f32 %v3242_v24  ;;  %v3249_v27 = vmul.f32 %v6075_v26, %v6063_v30  ;;  %v5302_v17 = vor.u32 %v5809_v15, %v5301_v14  ;;  %v5285_v24 = vld [vmem:[%s7357_s26 + $0x30] sm:$0xf]  ;;  %v5804_v26 = vld [vmem:[%s7357_s26 + $0x34] sm:$0xf]  ;;  %v6020_v15 = vld [vmem:[%s7359_s10] ss:$0 sm:$0xff] }
 0xbeb   : > { %v3366_v25 = vpack.c.bf16 %v3365_v35, %v3364_v1  ;;  %v5295_v1 = vld [vmem:[%s7357_s26 + $0x48] sm:$0xf0]  ;;  %v5820_v23 = vld [vmem:[%s7360_s11 + $0x30] sm:$0xff]  ;;  %s7365_s10 = sld [smem:[#allocation36_spill]] }
 0xbec   : > { %3572 = vmatpush.bf16.msra.mxu0 %v5302_v17  ;;  %v5298_v35 = vor.u32 %v5806_v21, %v5295_v1  ;;  %v5819_v21 = vld [vmem:[%s7360_s11 + $0x28] sm:$0xff]  ;;  %v5818_v1 = vld [vmem:[%s7360_s11 + $0x20] sm:$0xff] }
 0xbed   : > { %5241 = vmatmul.msk.bf16.vlgmr.msra.gmra.mxu2 %vm2436_vm8, %v3366_v25  ;;  %v5805_v25 = vld [vmem:[%s7357_s26 + $0x34] sm:$0xf0] }
 0xbf0   : > { %v6077_v40 = vpop.eup %6076  ;;  %3573 = vmatpush.bf16.msra.mxu0 %v5294_v22  ;;  %v5827_v22 = vld [vmem:[%s7360_s11 + $0x68] sm:$0xff] }
 0xbf1   : > { %v3248_v29 = vmul.f32 %v6077_v40, %v6069_v16  ;;  %v5808_v16 = vld [vmem:[%s7357_s26 + $0x54] sm:$0xf]  ;;  %v5286_v40 = vor.u32 %v5805_v25, %v5285_v24  ;;  %v5817_v24 = vld [vmem:[%s7360_s11 + $0x18] sm:$0xff] }
 0xbf2   : > { %v5306_v19 = vor.u32 %v5808_v16, %v5303_v18  ;;  %v5825_v25 = vld [vmem:[%s7360_s11 + $0x58] sm:$0xff] }
 0xbf3   : > { %v3250_v31 = vpack.c.bf16 %v3249_v27, %v3248_v29  ;;  %v5287_v27 = vld [vmem:[%s7357_s26 + $0x38] sm:$0xf0] }
 0xbf4   : > { %3586 = vmatpush.bf16.msrb.mxu1 %v5306_v19  ;;  %v5290_v29 = vor.u32 %v5804_v26, %v5287_v27  ;;  %3574 = vmatpush.bf16.msra.mxu0 %v5286_v40  ;;  %v5816_v26 = vld [vmem:[%s7360_s11 + $0x10] sm:$0xff]  ;;  %v1641_v27 = vld [vmem:[%s7361_s28] sm:$0x3]  ;;  %s7366_s28 = sld [smem:[#allocation35_spill]] }
 0xbf5   : > { %5222 = vmatmul.msk.bf16.vlgmr.msra.gmra.mxu3 %vm2436_vm8, %v3250_v31  ;;  %v5277_v31 = vld [vmem:[%s7357_s26 + $0x20] sm:$0xf]  ;;  %v5824_v40 = vld [vmem:[%s7360_s11 + $0x50] sm:$0xff]  ;;  %v3487_v32 = vperm.slane %v1641_v27, 1 }
 0xbf6   : > { %v5278_v33 = vor.u32 %v5803_v39, %v5277_v31  ;;  %3746 = vmatpush.bf16.msra.mxu3 %v5829_v20  ;;  %v5823_v31 = vld [vmem:[%s7360_s11 + $0x48] sm:$0xff]  ;;  %v3486_v39 = vperm.slane %v1641_v27, 0 }
 0xbf8   : > { %3587 = vmatpush.bf16.msrb.mxu1 %v5298_v35  ;;  %3575 = vmatpush.bf16.msra.mxu0 %v5278_v33  ;;  %v5826_v35 = vld [vmem:[%s7360_s11 + $0x60] sm:$0xff] }
 0xbfc   : > { %3588 = vmatpush.bf16.msrb.mxu1 %v5290_v29  ;;  %v5815_v29 = vld [vmem:[%s7360_s11 + $0x8] sm:$0xff] }
 0xc00   : > { %3589 = vmatpush.bf16.msrb.mxu1 %v5282_v56  ;;  %v5814_v56 = vld [vmem:[%s7360_s11] sm:$0xff] }
 0xc70   : > { %v3383_v60 = vpop.f32.mrf.mxu2 }
 0xc78   : > { %v3264_v41 = vpop.f32.mrf.mxu3  ;;  %v3385_v42 = vpop.f32.mrf.mxu2 }
 0xc79   : > { %v3388_v43 = vpack.c.bf16 %v3385_v42, %v3383_v60  ;;  %v5800_v60 = vld [vmem:[%s7357_s26 + $0x14] sm:$0xf]  ;;  %v5271_v42 = vld [vmem:[%s7357_s26 + $0x18] sm:$0xf0] }
 0xc7b   : > { %5258 = vmatmul.msk.bf16.vlgmr.msrb.gmra.mxu3 %vm2413_vm7, %v3388_v43  ;;  %v5261_v43 = vld [vmem:[%s7357_s26] sm:$0xf] }
 0xc80   : > { %v3266_v45 = vpop.f32.mrf.mxu3 }
 0xc81   : > { %v3269_v46 = vpack.c.bf16 %v3266_v45, %v3264_v41  ;;  %v5270_v41 = vor.u32 %v5801_v38, %v5269_v36  ;;  %v5799_v45 = vld [vmem:[%s7357_s26 + $0x4] sm:$0xf0]  ;;  %v5822_v36 = vld [vmem:[%s7360_s11 + $0x40] sm:$0xff] }
 0xc83   : > { %5239 = vmatmul.msk.bf16.vlgmr.msrb.gmra.mxu0 %vm2413_vm7, %v3269_v46 }
 0xc84   : > { %3576 = vmatpush.bf16.msra.mxu0 %v5270_v41 }
 0xcfe   : > { %v3425_v48 = vpop.f32.mrf.mxu3 }
 0xd00   : > { %v3306_v49 = vpop.f32.mrf.mxu0 }
 0xd01   : > { %v3314_v50 = vadd.f32 %v6018_v47, %v3306_v49  ;;  %v5263_v49 = vld [vmem:[%s7357_s26 + $0x8] sm:$0xf0] }
 0xd03   : > { %v3430_v51 = vadd.f32 %v3425_v48, %v3314_v50  ;;  %v5798_v48 = vld [vmem:[%s7357_s26 + $0x4] sm:$0xf] }
 0xd05   : > { %v7002_v52 = vadd.f32 %v3430_v51, %v6899_v28  ;;  %v5262_v51 = vor.u32 %v5799_v45, %v5261_v43 }
 0xd06   : > { %v3427_v55 = vpop.f32.mrf.mxu3 }
 0xd07   : > { %3434 = vadd.xlane.f32.xlu1 %v7002_v52  ;;  %3577 = vmatpush.bf16.msra.mxu0 %v5262_v51 }
 0xd08   : > { %v3308_v53 = vpop.f32.mrf.mxu0 }
 0xd09   : > { %v3315_v54 = vadd.f32 %v6018_v47, %v3308_v53  ;;  %v5274_v47 = vor.u32 %v5800_v60, %v5271_v42  ;;  %v5266_v53 = vor.u32 %v5798_v48, %v5263_v49 }
 0xd0b   : > { %v3431_v57 = vadd.f32 %v3427_v55, %v3315_v54  ;;  %3590 = vmatpush.bf16.msrb.mxu1 %v5274_v47 }
 0xd0d   : > { %v7006_v58 = vadd.f32 %v3431_v57, %v6903_v34 }
 0xd0f   : > { %3436 = vadd.xlane.f32.xlu0 %v7006_v58  ;;  %3591 = vmatpush.bf16.msrb.mxu1 %v5266_v53 }
 0xd7a   : > { %v3435_v59 = vpop.xlane.xlu1 %3434 }
 0xd7b   : > { %v3438_v61 = vmul.f32 %v3435_v59, %v6721_v37 }
 0xd7d   : > { %v7011_v28 = vsub.f32 %v7002_v52, %v3438_v61 }
 0xd7f   : > { %v3442_v62 = vmul.f32 %v7011_v28, %v7011_v28 }
 0xd81   : > { %3444 = vadd.xlane.f32.xlu1 %v3442_v62 }
 0xd82   : > { %v3437_v63 = vpop.xlane.xlu0 %3436 }
 0xd83   : > { %v3439_v34 = vmul.f32 %v3437_v63, %v6721_v37 }
 0xd85   : > { %v7017_v0 = vsub.f32 %v7006_v58, %v3439_v34 }
 0xd87   : > { %v3443_v30 = vmul.f32 %v7017_v0, %v7017_v0 }
 0xd89   : > { %3446 = vadd.xlane.f32.xlu0 %v3443_v30 }
 0xdf4   : > { %v3445_v46 = vpop.xlane.xlu1 %3444 }
 0xdf5   : > { %v3448_v50 = vmul.f32 %v3445_v46, %v6721_v37 }
 0xdf7   : > { %v3450_v54 = vadd.f32 1e-06, %v3448_v50 }
 0xdf9   : > { %6078 = vrsqrt.f32 %v3450_v54  ;;  %vm3458_vm6 = vweird.f32 %v3450_v54 }
 0xdfc   : > { %v3447_v55 = vpop.xlane.xlu0 %3446 }
 0xdfd   : > { %v3449_v57 = vmul.f32 %v3447_v55, %v6721_v37 }
 0xdff   : > { %v6079_v59 = vpop.eup %6078  ;;  %v3451_v61 = vadd.f32 1e-06, %v3449_v57 }
 0xe00   : > { %v3453_v62 = vmul.f32 %v6079_v59, %v3450_v54  ;;  %vm3459_vm5 = vweird.f32 %v6079_v59 }
 0xe01   : > { %6080 = vrsqrt.f32 %v3451_v61  ;;  %vm3460_vm9 = vmor %vm3458_vm6, %vm3459_vm5  ;;  %vm3468_vm11 = vweird.f32 %v3451_v61 }
 0xe02   : > { %v3454_v63 = vmul.f32 %v6079_v59, %v3453_v62 }
 0xe04   : > { %v3455_v34 = vmul.f32 0.5, %v3454_v63 }
 0xe06   : > { %v3456_v30 = vsub.f32 1.5, %v3455_v34 }
 0xe07   : > { %v6081_v2 = vpop.eup %6080 }
 0xe08   : > { %v3457_v3 = vmul.f32 %v6079_v59, %v3456_v30  ;;  %v3463_v4 = vmul.f32 %v6081_v2, %v3451_v61  ;;  %vm3469_vm10 = vweird.f32 %v6081_v2 }
 0xe09   : > { %vm3470_vm12 = vmor %vm3468_vm11, %vm3469_vm10 }
 0xe0a   : > { %v3464_v5 = vmul.f32 %v6081_v2, %v3463_v4  ;;  %v3461_v6 = vsel %vm3460_vm9, %v6079_v59, %v3457_v3 }
 0xe0b   : > { %v3472_v9 = vmul.f32 %v3461_v6, %v7011_v28  ;;  %v5821_v28 = vld [vmem:[%s7360_s11 + $0x38] sm:$0xff] }
 0xe0c   : > { %v3465_v7 = vmul.f32 0.5, %v3464_v5  ;;  %3732 = vmatpush.bf16.msrb.mxu2 %v5821_v28 }
 0xe0d   : > { %v3477_v14 = vmul.f32 %v6019_v10, %v3472_v9 }
 0xe0e   : > { %v3466_v8 = vsub.f32 1.5, %v3465_v7 }
 0xe0f   : > { %v3482_v17 = vadd.f32 %v6020_v15, %v3477_v14 }
 0xe10   : > { %v3467_v11 = vmul.f32 %v6081_v2, %v3466_v8  ;;  %3733 = vmatpush.bf16.msrb.mxu2 %v5820_v23 }
 0xe12   : > { %v3471_v12 = vsel %vm3470_vm12, %v6081_v2, %v3467_v11 }
 0xe13   : > { %v3473_v13 = vmul.f32 %v3471_v12, %v7017_v0  ;;  %v5828_v0 = vld [vmem:[%s7360_s11 + $0x70] sm:$0xff] }
 0xe14   : > { %3747 = vmatpush.bf16.msra.mxu3 %v5828_v0  ;;  %3734 = vmatpush.bf16.msrb.mxu2 %v5819_v21 }
 0xe15   : > { %v3478_v16 = vmul.f32 %v6019_v10, %v3473_v13 }
 0xe17   : > { %v3483_v18 = vadd.f32 %v6020_v15, %v3478_v16 }
 0xe18   : > { %3748 = vmatpush.bf16.msra.mxu3 %v5827_v22  ;;  %3735 = vmatpush.bf16.msrb.mxu2 %v5818_v1 }
 0xe19   : > { %v3484_v19 = vpack.c.bf16 %v3483_v18, %v3482_v17 }
 0xe1b   : > { %3578 = vmatmul.bf16.vlgmr.msra.gmra.mxu0 %v3484_v19  ;;  %3592 = vmatmul.bf16.vlgmr.msrb.gmra.mxu1 %v3484_v19 }
 0xe1c   : > { %3749 = vmatpush.bf16.msra.mxu3 %v5826_v35  ;;  %3736 = vmatpush.bf16.msrb.mxu2 %v5817_v24  ;;  %v6021_v35 = vld [vmem:[%s7362_s2] ss:$0 sm:$0xff]  ;;  %s7367_s2 = sld [smem:[#allocation33_spill]] }
 0xe20   : > { %3750 = vmatpush.bf16.msra.mxu3 %v5825_v25  ;;  %3737 = vmatpush.bf16.msrb.mxu2 %v5816_v26 }
 0xe24   : > { %3751 = vmatpush.bf16.msra.mxu3 %v5824_v40  ;;  %3738 = vmatpush.bf16.msrb.mxu2 %v5815_v29 }
 0xe28   : > { %3752 = vmatpush.bf16.msra.mxu3 %v5823_v31  ;;  %3739 = vmatpush.bf16.msrb.mxu2 %v5814_v56 }
 0xe2c   : > { %3753 = vmatpush.bf16.msra.mxu3 %v5822_v36 }
 0xe98   : > { %v3579_v33 = vpop.f32.mrf.mxu0  ;;  %v3593_v44 = vpop.f32.mrf.mxu1 }
 0xe99   : > { %v3580_v38 = vadd.f32 %v3579_v33, %v3486_v39  ;;  %v3594_v60 = vadd.f32 %v3593_v44, %v3487_v32 }
 0xe9b   : > { %v3598_v41 = vmul.f32 %v3580_v38, %v3580_v38  ;;  %v3599_v42 = vmul.f32 %v3594_v60, %v3594_v60 }
 0xe9d   : > { %v3602_v43 = vmul.f32 %v3598_v41, %v3580_v38  ;;  %v3603_v45 = vmul.f32 %v3599_v42, %v3594_v60  ;;  %v5852_v41 = vld [vmem:[%s7364_s16 + $0x74] sm:$0xf] }
 0xe9f   : > { %v3606_v46 = vmul.f32 0.044715, %v3602_v43  ;;  %v3607_v47 = vmul.f32 0.044715, %v3603_v45  ;;  %v5479_v43 = vld [vmem:[%s7364_s16 + $0x78] sm:$0xf0] }
 0xea0   : > { %v3581_v48 = vpop.f32.mrf.mxu0  ;;  %v3595_v49 = vpop.f32.mrf.mxu1  ;;  %v5482_v45 = vor.u32 %v5852_v41, %v5479_v43 }
 0xea1   : > { %v3610_v50 = vadd.f32 %v3606_v46, %v3580_v38  ;;  %v3611_v51 = vadd.f32 %v3607_v47, %v3594_v60  ;;  %v3582_v53 = vadd.f32 %v3581_v48, %v3486_v39  ;;  %v3596_v54 = vadd.f32 %v3595_v49, %v3487_v32  ;;  %v5469_v46 = vld [vmem:[%s7364_s16 + $0x60] sm:$0xf]  ;;  %v5851_v47 = vld [vmem:[%s7364_s16 + $0x64] sm:$0xf0]  ;;  %v5850_v48 = vld [vmem:[%s7364_s16 + $0x64] sm:$0xf] }
 0xea2   : > { %3979 = vmatpush.bf16.msra.mxu2 %v5482_v45  ;;  %v5470_v49 = vor.u32 %v5851_v47, %v5469_v46 }
 0xea3   : > { %v3614_v55 = vmul.f32 0.7978846, %v3610_v50  ;;  %v3600_v57 = vmul.f32 %v3582_v53, %v3582_v53  ;;  %v3601_v59 = vmul.f32 %v3596_v54, %v3596_v54  ;;  %v3615_v61 = vmul.f32 0.7978846, %v3611_v51  ;;  %v5471_v50 = vld [vmem:[%s7364_s16 + $0x68] sm:$0xf0] }
 0xea4   : > { %v5474_v51 = vor.u32 %v5850_v48, %v5471_v50 }
 0xea5   : > { %v3604_v62 = vmul.f32 %v3600_v57, %v3582_v53  ;;  %v3605_v63 = vmul.f32 %v3601_v59, %v3596_v54  ;;  %6082 = vtanh.f32 %v3614_v55  ;;  %v5848_v55 = vld [vmem:[%s7364_s16 + $0x54] sm:$0xf]  ;;  %v5837_v57 = vld [vmem:[%s7365_s10 + $0x38] sm:$0xff] }
 0xea6   : > { %6084 = vtanh.f32 %v3615_v61  ;;  %3980 = vmatpush.bf16.msra.mxu2 %v5474_v51  ;;  %v5463_v61 = vld [vmem:[%s7364_s16 + $0x58] sm:$0xf0]  ;;  %3866 = vmatpush.bf16.msrb.mxu0 %v5837_v57  ;;  %v6022_v51 = vld [vmem:[%s7367_s2] ss:$0 sm:$0xff]  ;;  %s7370_s2 = sld [smem:[#allocation39_spill]] }
 0xea7   : > { %v3608_v34 = vmul.f32 0.044715, %v3604_v62  ;;  %v3609_v30 = vmul.f32 0.044715, %v3605_v63  ;;  %v5466_v62 = vor.u32 %v5848_v55, %v5463_v61  ;;  %v5453_v63 = vld [vmem:[%s7364_s16 + $0x40] sm:$0xf] }
 0xea9   : > { %v3612_v2 = vadd.f32 %v3608_v34, %v3582_v53  ;;  %v3613_v3 = vadd.f32 %v3609_v30, %v3596_v54  ;;  %v5847_v34 = vld [vmem:[%s7364_s16 + $0x44] sm:$0xf0]  ;;  %v5846_v30 = vld [vmem:[%s7364_s16 + $0x44] sm:$0xf] }
 0xeaa   : > { %3981 = vmatpush.bf16.msra.mxu2 %v5466_v62 }
 0xeab   : > { %v3616_v4 = vmul.f32 0.7978846, %v3612_v2  ;;  %v3617_v5 = vmul.f32 0.7978846, %v3613_v3  ;;  %v6083_v6 = vpop.eup %6082  ;;  %v5836_v2 = vld [vmem:[%s7365_s10 + $0x30] sm:$0xff]  ;;  %v5454_v3 = vor.u32 %v5847_v34, %v5453_v63 }
 0xeac   : > { %v6085_v7 = vpop.eup %6084  ;;  %v3622_v8 = vadd.f32 1.0, %v6083_v6  ;;  %3867 = vmatpush.bf16.msrb.mxu0 %v5836_v2  ;;  %v5445_v6 = vld [vmem:[%s7364_s16 + $0x30] sm:$0xf] }
 0xead   : > { %6086 = vtanh.f32 %v3616_v4  ;;  %v3623_v9 = vadd.f32 1.0, %v6085_v7  ;;  %v5455_v4 = vld [vmem:[%s7364_s16 + $0x48] sm:$0xf0]  ;;  %v5845_v7 = vld [vmem:[%s7364_s16 + $0x34] sm:$0xf0] }
 0xeae   : > { %6088 = vtanh.f32 %v3617_v5  ;;  %v3626_v12 = vmul.f32 0.5, %v3622_v8  ;;  %v5458_v5 = vor.u32 %v5846_v30, %v5455_v4  ;;  %v5844_v8 = vld [vmem:[%s7364_s16 + $0x34] sm:$0xf] }
 0xeaf   : > { %v3627_v14 = vmul.f32 0.5, %v3623_v9  ;;  %v5835_v9 = vld [vmem:[%s7365_s10 + $0x28] sm:$0xff] }
 0xeb0   : > { %v3630_v18 = vmul.f32 %v3626_v12, %v3580_v38  ;;  %v5477_v38 = vld [vmem:[%s7363_s7 + $0x70] sm:$0xf]  ;;  %3982 = vmatpush.bf16.msra.mxu2 %v5458_v5  ;;  %3868 = vmatpush.bf16.msrb.mxu0 %v5835_v9  ;;  %s7368_s7 = sld [smem:[#allocation34_spill]]  ;;  %v1694_v5 = vld [vmem:[%s7369_s3] sm:$0x1] }
 0xeb1   : > { %v3631_v28 = vmul.f32 %v3627_v14, %v3594_v60  ;;  %v5853_v60 = vld [vmem:[%s7364_s16 + $0x74] sm:$0xf0]  ;;  %v5843_v14 = vld [vmem:[%s7364_s16 + $0x24] sm:$0xf0]  ;;  %s7372_s3 = sld [smem:[#allocation40_spill]] }
 0xeb2   : > { %v5478_v42 = vor.u32 %v5853_v60, %v5477_v38 }
 0xeb3   : > { %v6087_v10 = vpop.eup %6086 }
 0xeb4   : > { %v6089_v11 = vpop.eup %6088  ;;  %v3624_v13 = vadd.f32 1.0, %v6087_v10  ;;  %3965 = vmatpush.bf16.msra.mxu1 %v5478_v42  ;;  %v5446_v10 = vor.u32 %v5845_v7, %v5445_v6 }
 0xeb5   : > { %v3625_v15 = vadd.f32 1.0, %v6089_v11  ;;  %v5447_v11 = vld [vmem:[%s7364_s16 + $0x38] sm:$0xf0] }
 0xeb6   : > { %v3628_v16 = vmul.f32 0.5, %v3624_v13  ;;  %v5450_v12 = vor.u32 %v5844_v8, %v5447_v11  ;;  %v5437_v13 = vld [vmem:[%s7364_s16 + $0x20] sm:$0xf] }
 0xeb7   : > { %v3629_v17 = vmul.f32 0.5, %v3625_v15  ;;  %v5842_v15 = vld [vmem:[%s7364_s16 + $0x24] sm:$0xf]  ;;  %v6023_v57 = vld [vmem:[%s7368_s7] ss:$0 sm:$0xff]  ;;  %s7371_s7 = smov 64  }
 0xeb8   : > { %v3632_v19 = vmul.f32 %v3628_v16, %v3582_v53  ;;  %3966 = vmatpush.bf16.msra.mxu1 %v5470_v49  ;;  %v5461_v53 = vld [vmem:[%s7364_s16 + $0x50] sm:$0xf]  ;;  %3983 = vmatpush.bf16.msra.mxu2 %v5450_v12  ;;  %v5834_v16 = vld [vmem:[%s7365_s10 + $0x20] sm:$0xff] }
 0xeb9   : > { %v3633_v20 = vmul.f32 %v3629_v17, %v3596_v54  ;;  %v5849_v54 = vld [vmem:[%s7364_s16 + $0x54] sm:$0xf0]  ;;  %v5438_v17 = vor.u32 %v5843_v14, %v5437_v13  ;;  %3869 = vmatpush.bf16.msrb.mxu0 %v5834_v16  ;;  %v1711_v11 = vld [vmem:[%s7370_s2] sm:$0x3]  ;;  %s7374_s2 = sld [smem:[#allocation44_spill]] }
 0xeba   : > { %v3634_v23 = vpack.c.bf16 %v3632_v19, %v3630_v18  ;;  %v5462_v59 = vor.u32 %v5849_v54, %v5461_v53  ;;  %v5439_v18 = vld [vmem:[%s7364_s16 + $0x28] sm:$0xf0]  ;;  %v3881_v12 = vperm.slane %v1711_v11, 0  ;;  %v3882_v16 = vperm.slane %v1711_v11, 1 }
 0xebb   : > { %v3635_v0 = vpack.c.bf16 %v3633_v20, %v3631_v28  ;;  %v5442_v19 = vor.u32 %v5842_v15, %v5439_v18  ;;  %v5429_v28 = vld [vmem:[%s7364_s16 + $0x10] sm:$0xf]  ;;  %v5841_v20 = vld [vmem:[%s7364_s16 + $0x14] sm:$0xf0] }
 0xebc   : > { %3740 = vmatmul.bf16.vlgmr.msrb.gmra.mxu2 %v3634_v23  ;;  %3967 = vmatpush.bf16.msra.mxu1 %v5462_v59  ;;  %v5840_v23 = vld [vmem:[%s7364_s16 + $0x14] sm:$0xf] }
 0xebd   : > { %3754 = vmatmul.bf16.vlgmr.msra.gmra.mxu3 %v3635_v0  ;;  %3984 = vmatpush.bf16.msra.mxu2 %v5442_v19  ;;  %v5833_v0 = vld [vmem:[%s7365_s10 + $0x18] sm:$0xff] }
 0xebe   : > { %3870 = vmatpush.bf16.msrb.mxu0 %v5833_v0 }
 0xebf   : > { %s7375_s6 = smov %s7374_s2 }
 0xec0   : > { %3968 = vmatpush.bf16.msra.mxu1 %v5454_v3 }
 0xec4   : > { %3969 = vmatpush.bf16.msra.mxu1 %v5446_v10 }
 0xec8   : > { %3970 = vmatpush.bf16.msra.mxu1 %v5438_v17 }
 0xf3f   : > { %v3741_v21 = vpop.f32.mrf.mxu2 }
 0xf40   : > { %v3755_v22 = vpop.f32.mrf.mxu3 }
 0xf41   : > { %v3756_v1 = vadd.f32 %v3755_v22, %v3741_v21  ;;  %v5430_v21 = vor.u32 %v5841_v20, %v5429_v28  ;;  %v5431_v22 = vld [vmem:[%s7364_s16 + $0x18] sm:$0xf0] }
 0xf43   : > { %v3760_v24 = vadd.f32 %v3756_v1, %v7002_v52  ;;  %v5434_v1 = vor.u32 %v5840_v23, %v5431_v22  ;;  %3971 = vmatpush.bf16.msra.mxu1 %v5430_v21 }
 0xf45   : > { %v3765_v25 = vadd.f32 %v6021_v35, %v3760_v24  ;;  %v5839_v24 = vld [vmem:[%s7364_s16 + $0x4] sm:$0xf0]  ;;  %3985 = vmatpush.bf16.msra.mxu2 %v5434_v1 }
 0xf47   : > { %3767 = vadd.xlane.f32.xlu1 %v3765_v25  ;;  %v3743_v26 = vpop.f32.mrf.mxu2 }
 0xf48   : > { %v3757_v40 = vpop.f32.mrf.mxu3 }
 0xf49   : > { %v3758_v27 = vadd.f32 %v3757_v40, %v3743_v26  ;;  %v5832_v26 = vld [vmem:[%s7365_s10 + $0x10] sm:$0xff] }
 0xf4a   : > { %3871 = vmatpush.bf16.msrb.mxu0 %v5832_v26 }
 0xf4b   : > { %v3761_v29 = vadd.f32 %v3758_v27, %v7006_v58  ;;  %v5838_v27 = vld [vmem:[%s7364_s16 + $0x4] sm:$0xf] }
 0xf4d   : > { %v3766_v31 = vadd.f32 %v6021_v35, %v3761_v29  ;;  %v5421_v35 = vld [vmem:[%s7364_s16] sm:$0xf]  ;;  %v5423_v29 = vld [vmem:[%s7364_s16 + $0x8] sm:$0xf0] }
 0xf4e   : > { %v5422_v40 = vor.u32 %v5839_v24, %v5421_v35 }
 0xf4f   : > { %3769 = vadd.xlane.f32.xlu0 %v3766_v31 }
 0xf50   : > { %3972 = vmatpush.bf16.msra.mxu1 %v5422_v40 }
 0xfba   : > { %v3768_v39 = vpop.xlane.xlu1 %3767 }
 0xfbb   : > { %v3771_v32 = vmul.f32 %v3768_v39, %v6721_v37  ;;  %v5426_v39 = vor.u32 %v5838_v27, %v5423_v29 }
 0xfbd   : > { %v7080_v33 = vsub.f32 %v3765_v25, %v3771_v32  ;;  %3986 = vmatpush.bf16.msra.mxu2 %v5426_v39 }
 0xfbf   : > { %v3775_v52 = vmul.f32 %v7080_v33, %v7080_v33 }
 0xfc1   : > { %3777 = vadd.xlane.f32.xlu2 %v3775_v52  ;;  %v5831_v52 = vld [vmem:[%s7365_s10 + $0x8] sm:$0xff] }
 0xfc2   : > { %v3770_v44 = vpop.xlane.xlu0 %3769  ;;  %3872 = vmatpush.bf16.msrb.mxu0 %v5831_v52 }
 0xfc3   : > { %v3772_v56 = vmul.f32 %v3770_v44, %v6721_v37 }
 0xfc5   : > { %v7085_v58 = vsub.f32 %v3766_v31, %v3772_v56  ;;  %v5830_v56 = vld [vmem:[%s7365_s10] sm:$0xff] }
 0xfc6   : > { %3873 = vmatpush.bf16.msrb.mxu0 %v5830_v56 }
 0xfc7   : > { %v3776_v36 = vmul.f32 %v7085_v58, %v7085_v58 }
 0xfc9   : > { %3779 = vadd.xlane.f32.xlu1 %v3776_v36  ;;  %v1677_v36 = vld [vmem:[%s7366_s28] sm:$0x1]  ;;  %s7133_s28 = sand.u32 1, %s6262_s1  }
 0xfca   : > { %v3817_v42 = vpack.c.bf16 %v1677_v36, %v1677_v36  ;;  %s4668_s18 = sshll.u32 %s7133_s28, 4 }
 0xfcb   : > { %s7139_s5 = scalar_lea.vmem [#allocation7], %s4668_s18  ;;  %s7373_s18 = sld [smem:[#allocation41_spill]] }
 0xfcc   : > { %3874 = vmatmul.bf16.vlgmr.msrb.gmra.mxu0 %v3817_v42 }
0x1034   : > { %v3778_v25 = vpop.xlane.xlu2 %3777 }
0x1035   : > { %v3781_v31 = vmul.f32 %v3778_v25, %v6721_v37 }
0x1037   : > { %v3783_v32 = vadd.f32 1e-06, %v3781_v31 }
0x1039   : > { %6090 = vrsqrt.f32 %v3783_v32  ;;  %vm3791_vm14 = vweird.f32 %v3783_v32 }
0x103c   : > { %v3780_v44 = vpop.xlane.xlu1 %3779 }
0x103d   : > { %v3782_v38 = vmul.f32 %v3780_v44, %v6721_v37 }
0x103f   : > { %v6091_v60 = vpop.eup %6090  ;;  %v3784_v41 = vadd.f32 1e-06, %v3782_v38 }
0x1040   : > { %v3786_v43 = vmul.f32 %v6091_v60, %v3783_v32  ;;  %vm3792_vm13 = vweird.f32 %v6091_v60 }
0x1041   : > { %6092 = vrsqrt.f32 %v3784_v41  ;;  %vm3793_vm15 = vmor %vm3791_vm14, %vm3792_vm13  ;;  %vm3801_vm1 = vweird.f32 %v3784_v41 }
0x1042   : > { %v3787_v45 = vmul.f32 %v6091_v60, %v3786_v43 }
0x1044   : > { %v3788_v46 = vmul.f32 0.5, %v3787_v45 }
0x1046   : > { %v3789_v47 = vsub.f32 1.5, %v3788_v46 }
0x1047   : > { %v6093_v48 = vpop.eup %6092 }
0x1048   : > { %v3790_v49 = vmul.f32 %v6091_v60, %v3789_v47  ;;  %v3796_v50 = vmul.f32 %v6093_v48, %v3784_v41  ;;  %vm3802_vm0 = vweird.f32 %v6093_v48  ;;  %v5857_v47 = vld [vmem:[%s7372_s3 + $0x18] sm:$0xff] }
0x1049   : > { %vm3803_vm2 = vmor %vm3801_vm1, %vm3802_vm0  ;;  %v3875_v6 = vpop.f32.mrf.mxu0  ;;  %4077 = vmatpush.bf16.msra.mxu0 %v5857_v47  ;;  %v5867_v47 = vld [vmem:[%s7375_s6 + $0x24] sm:$0xf0] }
0x104a   : > { %v3794_v53 = vsel %vm3793_vm15, %v6091_v60, %v3790_v49  ;;  %v3797_v54 = vmul.f32 %v6093_v48, %v3796_v50  ;;  %v3876_v7 = vadd.f32 %v3875_v6, %v1694_v5  ;;  %v5855_v49 = vld [vmem:[%s7372_s3 + $0x8] sm:$0xff] }
0x104b   : > { %v3805_v55 = vmul.f32 %v3794_v53, %v7080_v33 }
0x104c   : > { %v3798_v59 = vmul.f32 0.5, %v3797_v54  ;;  %v3993_v8 = vpack.c.bf16 %v3876_v7, %v3876_v7  ;;  %v1728_v7 = vld [vmem:[%s7373_s18] sm:$0x1]  ;;  %s7377_s18 = sld [smem:[#allocation45_spill]] }
0x104d   : > { %v3810_v61 = vmul.f32 %v6022_v51, %v3805_v55 }
0x104e   : > { %v3799_v62 = vsub.f32 1.5, %v3798_v59  ;;  %4088 = vrot.lane.b32.xlu1 %v3993_v8, %s7371_s7  ;;  %v5861_v59 = vld [vmem:[%s7372_s3 + $0x38] sm:$0xff] }
0x104f   : > { %v3815_v63 = vadd.f32 %v6023_v57, %v3810_v61  ;;  %v5860_v61 = vld [vmem:[%s7372_s3 + $0x30] sm:$0xff] }
0x1050   : > { %v3800_v34 = vmul.f32 %v6093_v48, %v3799_v62  ;;  %v5859_v62 = vld [vmem:[%s7372_s3 + $0x28] sm:$0xff] }
0x1051   : > { %4468 = vst [vmem:[%s7139_s5] sm:$0xff] %v3815_v63  ;;  %v3877_v9 = vpop.f32.mrf.mxu0 }
0x1052   : > { %v3804_v30 = vsel %vm3803_vm2, %v6093_v48, %v3800_v34  ;;  %v5856_v48 = vld [vmem:[%s7372_s3 + $0x10] sm:$0xff] }
0x1053   : > { %v3806_v33 = vmul.f32 %v3804_v30, %v7085_v58  ;;  %4078 = vmatpush.bf16.msra.mxu0 %v5856_v48  ;;  %v5866_v48 = vld [vmem:[%s7375_s6 + $0x24] sm:$0xf] }
0x1055   : > { %v3811_v2 = vmul.f32 %v6022_v51, %v3806_v33  ;;  %v5854_v51 = vld [vmem:[%s7372_s3] sm:$0xff] }
0x1056   : > { %v5858_v33 = vld [vmem:[%s7372_s3 + $0x20] sm:$0xff] }
0x1057   : > { %v3816_v3 = vadd.f32 %v6023_v57, %v3811_v2  ;;  %4079 = vmatpush.bf16.msra.mxu0 %v5855_v49 }
0x1059   : > { %v3879_v4 = vpack.c.bf16 %v3816_v3, %v3815_v63  ;;  %4469 = vst [vmem:[%s7139_s5 + $0x8] sm:$0xff] %v3816_v3 }
0x105b   : > { %3973 = vmatmul.bf16.vlgmr.msra.gmra.mxu1 %v3879_v4  ;;  %3987 = vmatmul.bf16.vlgmr.msra.gmra.mxu2 %v3879_v4 }
0x105c   : > { %4080 = vmatpush.bf16.msra.mxu0 %v5854_v51 }
0x10c0   : > { %v4089_v22 = vpop.permute.xlu1 %4088 }
0x10d8   : > { %v3974_v10 = vpop.f32.mrf.mxu1 }
0x10d9   : > { %v3975_v15 = vadd.f32 %v3974_v10, %v3881_v12 }
0x10de   : > { %v3988_v13 = vpop.f32.mrf.mxu2 }
0x10df   : > { %v3989_v28 = vadd.f32 %v3988_v13, %v3882_v16  ;;  %v5579_v13 = vld [vmem:[%s7374_s2 + $0x70] sm:$0xf]  ;;  %s5894_s2 = sshll.u32 %s6573_s0, 4 }
0x10e0   : > { %v3976_v14 = vpop.f32.mrf.mxu1 }
0x10e1   : > { %v3977_v58 = vadd.f32 %v3976_v14, %v3881_v12  ;;  %v5877_v14 = vld [vmem:[%s7375_s6 + $0x74] sm:$0xf0] }
0x10e3   : > { %v3994_v17 = vpack.c.bf16 %v3977_v58, %v3975_v15  ;;  %v5876_v15 = vld [vmem:[%s7375_s6 + $0x74] sm:$0xf]  ;;  %v5580_v58 = vor.u32 %v5877_v14, %v5579_v13 }
0x10e5   : > { %4091 = vrot.lane.b32.xlu0 %v3994_v17, %s7371_s7  ;;  %v3999_v18 = vsel %vm2413_vm7, %v3994_v17, 0  ;;  %4298 = vmatpush.bf16.msrb.mxu0 %v5580_v58 }
0x10e6   : > { %v3990_v19 = vpop.f32.mrf.mxu2  ;;  %4008 = vmatpush.bf16.xpose.msrb.mxu3 %v3999_v18 }
0x10e7   : > { %v3991_v20 = vadd.f32 %v3990_v19, %v3882_v16  ;;  %v5581_v16 = vld [vmem:[%s7375_s6 + $0x78] sm:$0xf0] }
0x10e8   : > { %v5584_v17 = vor.u32 %v5876_v15, %v5581_v16  ;;  %v1730_v16 = vld [vmem:[#allocation2] sm:$0x1] }
0x10e9   : > { %v4028_v23 = vpack.c.bf16 %v3991_v20, %v3989_v28 }
0x10ed   : > { %5483 = vmatmul.msk.bf16.vlgmr.msrb.gmra.mxu3 %vm2413_vm7, %v3993_v8 }
0x10ee   : > { %4039 = vmatpush.bf16.msra.mxu3 %v4028_v23 }
0x10f2   : > { %4177 = vmatpush.bf16.msrb.mxu3 %v5861_v59  ;;  %v5533_v59 = vld [vmem:[%s7375_s6 + $0x18] sm:$0xf0] }
0x10f6   : > { %4178 = vmatpush.bf16.msrb.mxu3 %v5860_v61 }
0x10fa   : > { %4179 = vmatpush.bf16.msrb.mxu3 %v5859_v62  ;;  %v5523_v62 = vld [vmem:[%s7375_s6] sm:$0xf] }
0x10fe   : > { %4180 = vmatpush.bf16.msrb.mxu3 %v5858_v33  ;;  %v5525_v33 = vld [vmem:[%s7375_s6 + $0x8] sm:$0xf0] }
0x1157   : > { %v4092_v0 = vpop.permute.xlu0 %4091 }
0x1158   : > { %v4097_v21 = vsel %vm2413_vm7, %v4092_v0, 0  ;;  %v5571_v0 = vld [vmem:[%s7375_s6 + $0x60] sm:$0xf] }
0x1159   : > { %4106 = vmatpush.bf16.xpose.msrb.mxu1 %v4097_v21  ;;  %v5875_v21 = vld [vmem:[%s7375_s6 + $0x64] sm:$0xf0] }
0x1160   : > { %5502 = vmatmul.msk.bf16.vlgmr.msrb.gmra.mxu1 %vm2413_vm7, %v4089_v22  ;;  %v5874_v22 = vld [vmem:[%s7375_s6 + $0x64] sm:$0xf] }
0x1161   : > { %4311 = vmatpush.bf16.msra.mxu1 %v5584_v17 }
0x1170   : > { %v4010_v1 = vpop.f32.mrf.mxu3 }
0x1171   : > { %v4014_v35 = vmul.f32 0.125, %v4010_v1  ;;  %v5572_v1 = vor.u32 %v5875_v21, %v5571_v0  ;;  %v5883_v0 = vld [vmem:[%s7333_s4 + $0x28] sm:$0xff] }
0x1172   : > { %v5891_v21 = vld [vmem:[%s7333_s4 + $0x68] sm:$0xff] }
0x1173   : > { %v4016_v24 = vsel %vm4015_vm3, %v4014_v35, -inf  ;;  %4299 = vmatpush.bf16.msrb.mxu0 %v5572_v1  ;;  %v5881_v1 = vld [vmem:[%s7333_s4 + $0x18] sm:$0xff] }
0x1174   : > { %4017 = vmax.xlane.f32.xlu1 %v4016_v24 }
0x1178   : > { %v4012_v25 = vpop.f32.mrf.mxu3 }
0x1179   : > { %v5563_v25 = vld [vmem:[%s7375_s6 + $0x50] sm:$0xf] }
0x11dd   : > { %v4108_v26 = vpop.f32.mrf.mxu1 }
0x11de   : > { %v4112_v40 = vmul.f32 0.125, %v4108_v26  ;;  %v5873_v26 = vld [vmem:[%s7375_s6 + $0x54] sm:$0xf0] }
0x11e0   : > { %v4113_v27 = vsel %vm4015_vm3, %v4112_v40, -inf }
0x11e1   : > { %4114 = vmax.xlane.f32.xlu0 %v4113_v27  ;;  %v5564_v27 = vor.u32 %v5873_v26, %v5563_v25  ;;  %v5888_v25 = vld [vmem:[%s7333_s4 + $0x50] sm:$0xff]  ;;  %v5879_v26 = vld [vmem:[%s7333_s4 + $0x8] sm:$0xff] }
0x11e3   : > { %4300 = vmatpush.bf16.msrb.mxu0 %v5564_v27  ;;  %v5878_v27 = vld [vmem:[%s7333_s4] sm:$0xff] }
0x11e5   : > { %v4110_v29 = vpop.f32.mrf.mxu1 }
0x11e6   : > { %v5565_v29 = vld [vmem:[%s7375_s6 + $0x58] sm:$0xf0] }
0x11e7   : > { %v4018_v31 = vpop.xlane.xlu1 %4017 }
0x11e8   : > { %v4019_v39 = vsub.f32 %v4014_v35, %v4018_v31  ;;  %v5573_v35 = vld [vmem:[%s7375_s6 + $0x68] sm:$0xf0] }
0x11e9   : > { %v5576_v24 = vor.u32 %v5874_v22, %v5573_v35  ;;  %v5890_v22 = vld [vmem:[%s7333_s4 + $0x60] sm:$0xff]  ;;  %v5889_v35 = vld [vmem:[%s7333_s4 + $0x58] sm:$0xff] }
0x11ea   : > { %v4020_v32 = vmul.f32 1.442695, %v4019_v39  ;;  %v5555_v39 = vld [vmem:[%s7375_s6 + $0x40] sm:$0xf] }
0x11eb   : > { %4312 = vmatpush.bf16.msra.mxu1 %v5576_v24  ;;  %v5880_v24 = vld [vmem:[%s7333_s4 + $0x10] sm:$0xff] }
0x11ec   : > { %6094 = vpow2.f32 %v4020_v32  ;;  %v5871_v32 = vld [vmem:[%s7375_s6 + $0x44] sm:$0xf0] }
0x11f2   : > { %v6095_v52 = vpop.eup %6094 }
0x11f3   : > { %v4022_v44 = vsel %vm4015_vm3, %v6095_v52, 0.0 }
0x11f4   : > { %4023 = vadd.xlane.f32.xlu2 %v4022_v44  ;;  %v5556_v44 = vor.u32 %v5871_v32, %v5555_v39 }
0x11f6   : > { %4301 = vmatpush.bf16.msrb.mxu0 %v5556_v44 }
0x1254   : > { %v4115_v56 = vpop.xlane.xlu0 %4114 }
0x1255   : > { %v4116_v36 = vsub.f32 %v4112_v40, %v4115_v56  ;;  %v5872_v40 = vld [vmem:[%s7375_s6 + $0x54] sm:$0xf]  ;;  %v5557_v56 = vld [vmem:[%s7375_s6 + $0x48] sm:$0xf0] }
0x1256   : > { %v5568_v31 = vor.u32 %v5872_v40, %v5565_v29  ;;  %v5887_v40 = vld [vmem:[%s7333_s4 + $0x48] sm:$0xff]  ;;  %v5886_v29 = vld [vmem:[%s7333_s4 + $0x40] sm:$0xff] }
0x1257   : > { %v4117_v38 = vmul.f32 1.442695, %v4116_v36 }
0x1258   : > { %4313 = vmatpush.bf16.msra.mxu1 %v5568_v31  ;;  %v1747_v31 = vld [vmem:[%s7377_s18] sm:$0x3]  ;;  %s4488_s18 = sshll.u32 %s7139_s5, 4  ;;  %s4489_s18 = int_to_ptr.vmem [resolvable:$true] %s4488_s18 }
0x1259   : > { %6096 = vpow2.f32 %v4117_v38  ;;  %v5547_v38 = vld [vmem:[%s7375_s6 + $0x30] sm:$0xf]  ;;  %v4294_v39 = vperm.slane %v1747_v31, 0  ;;  %v4295_v32 = vperm.slane %v1747_v31, 1 }
0x125f   : > { %v6097_v60 = vpop.eup %6096 }
0x1260   : > { %v4119_v41 = vsel %vm4015_vm3, %v6097_v60, 0.0 }
0x1261   : > { %4120 = vadd.xlane.f32.xlu2 %v4119_v41  ;;  %v5868_v41 = vld [vmem:[%s7375_s6 + $0x34] sm:$0xf] }
0x1267   : > { %v4024_v42 = vpop.xlane.xlu2 %4023 }
0x1268   : > { %6098 = vrcp.f32 %v4024_v42 }
0x126e   : > { %v6099_v43 = vpop.eup %6098 }
0x126f   : > { %v4026_v45 = vmul.f32 %v6099_v43, %v6095_v52  ;;  %v5870_v52 = vld [vmem:[%s7375_s6 + $0x44] sm:$0xf]  ;;  %v5549_v43 = vld [vmem:[%s7375_s6 + $0x38] sm:$0xf0] }
0x1270   : > { %v5560_v36 = vor.u32 %v5870_v52, %v5557_v56 }
0x1271   : > { %v4027_v46 = vpack.c.bf16 %v4026_v45, %v4026_v45  ;;  %v5552_v45 = vor.u32 %v5868_v41, %v5549_v43 }
0x1272   : > { %4314 = vmatpush.bf16.msra.mxu1 %v5560_v36 }
0x1273   : > { %5484 = vmatmul.msk.bf16.vlgmr.msra.gmra.mxu3 %vm2436_vm8, %v4027_v46  ;;  %v5539_v46 = vld [vmem:[%s7375_s6 + $0x20] sm:$0xf] }
0x1274   : > { %v5540_v49 = vor.u32 %v5867_v47, %v5539_v46 }
0x1276   : > { %4315 = vmatpush.bf16.msra.mxu1 %v5552_v45 }
0x1279   : > { %4126 = vrot.lane.b32.xlu2 %v4028_v23, %s7371_s7  ;;  %s7376_s7 = sld [smem:[#allocation42_spill]] }
0x127f   : > { %v1729_v58 = vld [vmem:[%s7376_s7] sm:$0x1]  ;;  %s4487_s7 = scalar_lea.hbm %s6545_s20, %s5894_s2 }
0x1280   : > { %s4490_s3 = sshll.u32 %s4487_s7, 4  ;;  %s4491_s3 = int_to_ptr.hbm [resolvable:$true] %s4490_s3 }
0x12d4   : > { %v4121_v50 = vpop.xlane.xlu2 %4120 }
0x12d5   : > { %6100 = vrcp.f32 %v4121_v50  ;;  %v5541_v50 = vld [vmem:[%s7375_s6 + $0x28] sm:$0xf0] }
0x12d6   : > { %v5544_v51 = vor.u32 %v5866_v48, %v5541_v50 }
0x12d8   : > { %4316 = vmatpush.bf16.msra.mxu1 %v5544_v51 }
0x12db   : > { %v6101_v53 = vpop.eup %6100 }
0x12dc   : > { %v4123_v54 = vmul.f32 %v6101_v53, %v6097_v60  ;;  %v4127_v55 = vpop.permute.xlu2 %4126  ;;  %v5869_v60 = vld [vmem:[%s7375_s6 + $0x34] sm:$0xf0]  ;;  %v5531_v53 = vld [vmem:[%s7375_s6 + $0x10] sm:$0xf] }
0x12dd   : > { %4139 = vmatpush.bf16.msrb.mxu2 %v4127_v55  ;;  %v5548_v42 = vor.u32 %v5869_v60, %v5547_v38  ;;  %v5864_v55 = vld [vmem:[%s7375_s6 + $0x14] sm:$0xf] }
0x12de   : > { %v4124_v57 = vpack.c.bf16 %v4123_v54, %v4123_v54  ;;  %v5865_v54 = vld [vmem:[%s7375_s6 + $0x14] sm:$0xf0]  ;;  %v5536_v61 = vor.u32 %v5864_v55, %v5533_v59 }
0x12df   : > { %4302 = vmatpush.bf16.msrb.mxu0 %v5548_v42 }
0x12e0   : > { %5503 = vmatmul.msk.bf16.vlgmr.msrb.gmra.mxu2 %vm2436_vm8, %v4124_v57  ;;  %vm4187_vm8 = vcmask 1040384   ;;  %v5532_v57 = vor.u32 %v5865_v54, %v5531_v53  ;;  %4317 = vmatpush.bf16.msra.mxu1 %v5536_v61 }
0x12e3   : > { %4303 = vmatpush.bf16.msrb.mxu0 %v5540_v49 }
0x12e7   : > { %4304 = vmatpush.bf16.msrb.mxu0 %v5532_v57 }
0x12f6   : > { %v4041_v63 = vpop.f32.mrf.mxu3 }
0x12f7   : > { %v4045_v34 = vpack.c.bf16 %v4041_v63, %v4041_v63  ;;  %v5863_v63 = vld [vmem:[%s7375_s6 + $0x4] sm:$0xf0] }
0x12f9   : > { %5501 = vmatmul.msk.bf16.vlgmr.msra.gmra.mxu0 %vm2413_vm7, %v4045_v34  ;;  %v5862_v34 = vld [vmem:[%s7375_s6 + $0x4] sm:$0xf]  ;;  %s6182_s6 = sshra.s32 %s4491_s3, 4  ;;  %s6183_s6 = int_to_ptr.hbm [resolvable:$true] %s6182_s6 }
0x12fa   : > { %s6184_s8 = scalar_lea.hbm %s6183_s6, 16  ;;  %p6189_p8 = scmp.lt.s32.totalorder %s6183_s6, %s6545_s20 }
0x12fb   : > { %p6185_p10 = scmp.ne.s32.totalorder %s6183_s6, %s6184_s8  ;;  %p6190_p11 = scmp.lt.s32.totalorder %s6188_s9, %s6184_s8 }
0x12fd   : > { %p6186_p12 = pnand %p6185_p10, %p6590_p5  ;;  %p6191_p13 = por %p6190_p11, %p6189_p8 }
0x12fe   : > { %v4043_v30 = vpop.f32.mrf.mxu3 }
0x12ff   : > { %v5524_v30 = vor.u32 %v5863_v63, %v5523_v62  ;;  %p6187_p0 = pneg %p6186_p12 }
0x1301   : > { %4305 = vmatpush.bf16.msrb.mxu0 %v5524_v30  ;;  %p6192_p1 = pnand %p6191_p13, %p6187_p0 }
0x1363   : > { %v4141_v2 = vpop.f32.mrf.mxu2 }
0x1364   : > { %v4145_v3 = vpack.c.bf16 %v4141_v2, %v4141_v2  ;;  %v5528_v2 = vor.u32 %v5862_v34, %v5525_v33 }
0x1366   : > { %5520 = vmatmul.msk.bf16.vlgmr.msrb.gmra.mxu3 %vm2413_vm7, %v4145_v3  ;;  %4318 = vmatpush.bf16.msra.mxu1 %v5528_v2  ;;  %v5885_v3 = vld [vmem:[%s7333_s4 + $0x38] sm:$0xff] }
0x1367   : > { %4440 = vmatpush.bf16.msra.mxu2 %v5885_v3 }
0x136b   : > { %v4143_v4 = vpop.f32.mrf.mxu2 }
0x136c   : > { %v5893_v4 = vld [vmem:[%s7333_s4 + $0x78] sm:$0xff] }
0x136d   : > { %4453 = vmatpush.bf16.msra.mxu3 %v5893_v4 }
0x1376   : > { %v4082_v5 = vpop.f32.mrf.mxu0 }
0x1377   : > { %v4086_v8 = vadd.f32 %v4082_v5, %v1728_v7 }
0x137e   : > { %v4084_v6 = vpop.f32.mrf.mxu0 }
0x13e9   : > { %v4182_v9 = vpop.f32.mrf.mxu3 }
0x13ea   : > { %v7170_v10 = vadd.f32 %v4182_v9, %v4086_v8 }
0x13ec   : > { %v4188_v11 = vsel %vm4187_vm8, %v7170_v10, 0.0 }
0x13ed   : > { %4189 = vadd.xlane.f32.xlu0 %v4188_v11 }
0x13f1   : > { %v4184_v12 = vpop.f32.mrf.mxu3 }
0x1460   : > { %v4190_v18 = vpop.xlane.xlu0 %4189 }
0x1461   : > { %v4191_v19 = vmul.f32 %v4190_v18, %v6721_v37 }
0x1463   : > { %v7180_v28 = vsub.f32 %v7170_v10, %v4191_v19 }
0x1465   : > { %v4193_v20 = vmul.f32 %v7180_v28, %v7180_v28 }
0x1467   : > { %v4194_v23 = vsel %vm4187_vm8, %v4193_v20, 0.0  ;;  %v5884_v20 = vld [vmem:[%s7333_s4 + $0x30] sm:$0xff] }
0x1468   : > { %4195 = vadd.xlane.f32.xlu0 %v4194_v23  ;;  %v5892_v23 = vld [vmem:[%s7333_s4 + $0x70] sm:$0xff]  ;;  %4441 = vmatpush.bf16.msra.mxu2 %v5884_v20 }
0x1469   : > { %4454 = vmatpush.bf16.msra.mxu3 %v5892_v23 }
0x146c   : > { %4442 = vmatpush.bf16.msra.mxu2 %v5883_v0 }
0x146d   : > { %4455 = vmatpush.bf16.msra.mxu3 %v5891_v21 }
0x1471   : > { %4456 = vmatpush.bf16.msra.mxu3 %v5890_v22 }
0x1475   : > { %4457 = vmatpush.bf16.msra.mxu3 %v5889_v35 }
0x1479   : > { %4458 = vmatpush.bf16.msra.mxu3 %v5888_v25 }
0x147d   : > { %4459 = vmatpush.bf16.msra.mxu3 %v5887_v40 }
0x1481   : > { %4460 = vmatpush.bf16.msra.mxu3 %v5886_v29 }
0x14db   : > { %v4196_v5 = vpop.xlane.xlu0 %4195 }
0x14dc   : > { %v4197_v6 = vmul.f32 %v4196_v5, %v6721_v37 }
0x14de   : > { %v4198_v7 = vadd.f32 1e-06, %v4197_v6 }
0x14e0   : > { %6102 = vrsqrt.f32 %v4198_v7  ;;  %vm4205_vm4 = vweird.f32 %v4198_v7 }
0x14e6   : > { %v6103_v8 = vpop.eup %6102 }
0x14e7   : > { %v4200_v9 = vmul.f32 %v6103_v8, %v4198_v7  ;;  %vm4206_vm7 = vweird.f32 %v6103_v8 }
0x14e8   : > { %vm4207_vm5 = vmor %vm4205_vm4, %vm4206_vm7 }
0x14e9   : > { %v4201_v11 = vmul.f32 %v6103_v8, %v4200_v9 }
0x14eb   : > { %v4202_v12 = vmul.f32 0.5, %v4201_v11 }
0x14ed   : > { %v4203_v13 = vsub.f32 1.5, %v4202_v12 }
0x14ef   : > { %v4204_v14 = vmul.f32 %v6103_v8, %v4203_v13 }
0x14f1   : > { %v4208_v15 = vsel %vm4207_vm5, %v6103_v8, %v4204_v14 }
0x14f2   : > { %v4209_v37 = vmul.f32 %v4208_v15, %v7180_v28  ;;  %v5882_v28 = vld [vmem:[%s7333_s4 + $0x20] sm:$0xff]  ;;  %s4472_s4 = scalar_lea.sflag [#allocation4], %s7133_s28 }
0x14f3   : > { %4443 = vmatpush.bf16.msra.mxu2 %v5882_v28 }
0x14f4   : > { %v4210_v17 = vmul.f32 %v4209_v37, %v1729_v58 }
0x14f6   : > { %v4211_v18 = vadd.f32 %v4210_v17, %v1730_v16 }
0x14f7   : > { %4444 = vmatpush.bf16.msra.mxu2 %v5881_v1 }
0x14f8   : > { %v4212_v19 = vpack.c.bf16 %v4211_v18, %v4211_v18 }
0x14fa   : > { %4306 = vmatmul.bf16.vlgmr.msrb.gmra.mxu0 %v4212_v19  ;;  %4319 = vmatmul.bf16.vlgmr.msra.gmra.mxu1 %v4212_v19 }
0x14fb   : > { %4445 = vmatpush.bf16.msra.mxu2 %v5880_v24 }
0x14ff   : > { %4446 = vmatpush.bf16.msra.mxu2 %v5879_v26 }
0x1503   : > { %4447 = vmatpush.bf16.msra.mxu2 %v5878_v27 }
0x1577   : > { %v4307_v52 = vpop.f32.mrf.mxu0  ;;  %v4320_v44 = vpop.f32.mrf.mxu1 }
0x1578   : > { %v4308_v56 = vadd.f32 %v4307_v52, %v4294_v39  ;;  %v4321_v36 = vadd.f32 %v4320_v44, %v4295_v32 }
0x157a   : > { %v4324_v38 = vmul.f32 %v4308_v56, %v4308_v56  ;;  %v4325_v60 = vmul.f32 %v4321_v36, %v4321_v36 }
0x157c   : > { %v4326_v41 = vmul.f32 %v4324_v38, %v4308_v56  ;;  %v4327_v42 = vmul.f32 %v4325_v60, %v4321_v36 }
0x157e   : > { %v4328_v43 = vmul.f32 0.044715, %v4326_v41  ;;  %v4329_v45 = vmul.f32 0.044715, %v4327_v42 }
0x157f   : > { %v4309_v46 = vpop.f32.mrf.mxu0  ;;  %v4322_v47 = vpop.f32.mrf.mxu1 }
0x1580   : > { %v4330_v48 = vadd.f32 %v4328_v43, %v4308_v56  ;;  %v4331_v49 = vadd.f32 %v4329_v45, %v4321_v36 }
0x1582   : > { %v4332_v50 = vmul.f32 0.7978846, %v4330_v48  ;;  %v4333_v51 = vmul.f32 0.7978846, %v4331_v49 }
0x1584   : > { %6104 = vtanh.f32 %v4332_v50 }
0x1585   : > { %6106 = vtanh.f32 %v4333_v51 }
0x158a   : > { %v6105_v53 = vpop.eup %6104 }
0x158b   : > { %v6107_v54 = vpop.eup %6106  ;;  %v4336_v55 = vadd.f32 1.0, %v6105_v53 }
0x158c   : > { %v4337_v57 = vadd.f32 1.0, %v6107_v54 }
0x158d   : > { %v4338_v59 = vmul.f32 0.5, %v4336_v55 }
0x158e   : > { %v4339_v61 = vmul.f32 0.5, %v4337_v57 }
0x158f   : > { %v4340_v62 = vmul.f32 %v4338_v59, %v4308_v56 }
0x1590   : > { %v4341_v63 = vmul.f32 %v4339_v61, %v4321_v36 }
0x1591   : > { %v4342_v34 = vpack.c.bf16 %v4340_v62, %v4340_v62 }
0x1592   : > { %v4343_v30 = vpack.c.bf16 %v4341_v63, %v4341_v63 }
0x1593   : > { %4448 = vmatmul.bf16.vlgmr.msra.gmra.mxu2 %v4342_v34 }
0x1594   : > { %4461 = vmatmul.bf16.vlgmr.msra.gmra.mxu3 %v4343_v30 }
0x1595   : > { %6195 = shalt.err (!%p6192_p1)
}
0x1596   : > { %s6320_s10 = smov 128   ;;  %s7378_s5 = sld [smem:[#allocation47_spill]]  ;;  %v1780_v4 = vld [vmem:[#allocation5] sm:$0x1] }
0x1597   : > { %s6321_s2 = smov 8   ;;  %s1358_s6 = scalar_lea.vmem [#allocation8], %s7133_s28 }
0x1598   : > { %5904 = dma.vmem_to_hbm [thread:$0]  (%p6590_p5), %s4489_s18, 256, %s4491_s3, %s4472_s4, %s6320_s10, %s6320_s10, %s6321_s2  }
0x1599   : > { %s4504_s9 = sshll.u32 %s1358_s6, 4  ;;  %s4477_s4 = scalar_lea.sflag [#allocation9], %s7133_s28  ;;  %s4505_s9 = int_to_ptr.vmem [resolvable:$true] %s4504_s9 }
0x159c   : > { %s4502_s7 = scalar_lea.hbm %s7378_s5, %s6573_s0  ;;  %s6216_s3 = scalar_lea.hbm %s7378_s5, 2 }
0x159d   : > { %s4506_s8 = sshll.u32 %s4502_s7, 4  ;;  %s4507_s8 = int_to_ptr.hbm [resolvable:$true] %s4506_s8 }
0x159e   : > { %s6210_s10 = sshra.s32 %s4507_s8, 4  ;;  %s6211_s10 = int_to_ptr.hbm [resolvable:$true] %s6210_s10 }
0x159f   : > { %s6212_s0 = scalar_lea.hbm %s6211_s10, 1  ;;  %p6217_p7 = scmp.lt.s32.totalorder %s6211_s10, %s7378_s5 }
0x15a0   : > { %p6213_p2 = scmp.ne.s32.totalorder %s6211_s10, %s6212_s0  ;;  %p6218_p9 = scmp.lt.s32.totalorder %s6216_s3, %s6212_s0 }
0x15a2   : > { %p6214_p3 = pnand %p6213_p2, %p6590_p5  ;;  %p6219_p10 = por %p6218_p9, %p6217_p7 }
0x15a4   : > { %p6215_p4 = pneg %p6214_p3 }
0x15a6   : > { %p6220_p12 = pnand %p6219_p10, %p6215_p4 }
0x1616   : > { %v4449_v33 = vpop.f32.mrf.mxu2 }
0x1617   : > { %v4462_v2 = vpop.f32.mrf.mxu3 }
0x1618   : > { %v4463_v3 = vadd.f32 %v4462_v2, %v4449_v33 }
0x161a   : > { %v4466_v5 = vadd.f32 %v4463_v3, %v7170_v10 }
0x161c   : > { %v4467_v6 = vadd.f32 %v4466_v5, %v1780_v4 }
0x161e   : > { %v4451_v7 = vpop.f32.mrf.mxu2  ;;  %4470 = vst [vmem:[%s1358_s6] sm:$0x1] %v4467_v6 }
0x161f   : > { %v4464_v8 = vpop.f32.mrf.mxu3 }
0x1620   : > { %6223 = shalt.err (!%p6220_p12)
}
0x1621   : > { %5905 = dma.vmem_to_hbm [thread:$0]  (%p6590_p5), %s4505_s9, 16, %s4507_s8, %s4477_s4  }
0x1622 PF: > { %s7379_s18 = sld [smem:[#allocation50_spill]] }
0x1623   : > { %s7380_s2 = sld [smem:[#allocation48_spill]] }
0x1628   : > { %p5926_p0 = scmp.ge.s32.totalorder %s7379_s18, 2 }
0x1629   : > { %s4518_s7 = sand.u32 1, %s7380_s2  }
0x162a   : > { %p5916_p8 = pnand %p5926_p0, %p6594_p6  ;;  %s4519_s6 = scalar_lea.sflag [#allocation4], %s4518_s7 }
0x162c   : > { %p5917_p11 = pneg %p5916_p8 }
0x162e   : > { %6249 = dma.done.wait (%p5917_p11), %s4519_s6, 256  }
0x162f   : > { %6251 = vsyncadd (%p5917_p11), %s4519_s6, 4294967040  ;;  %s4529_s10 = scalar_lea.sflag [#allocation9], %s4518_s7 }
0x1630   : > { %6253 = dma.done.wait (%p5917_p11), %s4529_s10, 16  }
0x1631   : > { %6255 = vsyncadd (%p5917_p11), %s4529_s10, 4294967280  ;;  %s7382_s7 = sld [smem:[#allocation51_spill]]  ;;  %s7385_s28 = smov %s6262_s1 }
0x1632   : > { %s7383_s0 = sld [smem:[#allocation49_spill]] }
0x1633   : > { %s7384_s2 = sld [smem:[#allocation52_spill]] }
0x1637   : > { %p105_p5 = scmp.ge.s32.totalorder %s7382_s7, 4  }
0x1638   : > { %s7386_s1 = smov %s7383_s0 }
0x1639   :  { %107 = sbr.rel (!%p105_p5) target bundleno = 104 (0x68), region = 297 }
0x163e   :  { %4534 = vsyncpa [#allocation3], 1 }
0x163f   :  { %4536 = vsyncpa [#allocation3 + $0x1], 1 }
0x1640   :  { %4537 = vsyncpa [#allocation6], 1 }
0x1641   :  { %4538 = vsyncpa [#allocation4], 1 }
0x1642   :  { %4540 = vsyncpa [#allocation4 + $0x1], 1 }
0x1643   :  { %4541 = vsyncpa [#allocation9], 1 }
0x1644   :  { %4543 = vsyncpa [#allocation9 + $0x1], 1 }

</bundles_post_ra>
